<compile_context>
chip_gen: v7x
topology: tpu7x:2x2x1
jax: 0.10.0
libtpu: 0.0.40
codegen_flags: <defaults>
</compile_context>

<pallas_src>
import jax
import jax.numpy as jnp
from jax import lax
from jax.experimental import pallas as pl
from jax.experimental.pallas import tpu as pltpu

# Full-f32 matmul precision everywhere (reference + kernel) so the numerical
# comparison is apples-to-apples.
jax.config.update("jax_default_matmul_precision", "highest")

# ---- small, module-consistent configuration ---------------------------------
VOCAB = 64        # vocab size (synthetic)
CONTEXT = 8       # context_length L
WIDTH = 32        # transformer_width W
HEADS = 4         # transformer_heads
LAYERS = 2        # transformer_layers
EMBED = 32        # embed_dim E
BATCH = 2
EPS = 1e-5        # LayerNorm eps (PyTorch default)

E_PAD = 128       # lane-dense padded output width
NEG_MASK = -1e9   # finite large-negative mask value


def _cdiv(a, b):
    return -(-a // b)


# ---- Pallas kernel -----------------------------------------------------------
def text_transformer_kernel(
    x_ref,                          # (M, W)   token embeddings for this batch tile
    pos_ref,                        # (M, W)   positional embedding tiled per sequence
    mask_ref,                       # (M, M)   block-diagonal causal mask (0 / -1e9)
    sel_ref,                        # (SEL, M) one-hot EOT-row selector (padded rows = 0)
    ln1_w_ref, ln1_b_ref,           # (NL, W)
    wqkv_ref, bqkv_ref,             # (NL, W, 3W), (NL, 3W)   q-scale folded in
    wo_ref, bo_ref,                 # (NL, W, W), (NL, W)
    ln2_w_ref, ln2_b_ref,           # (NL, W)
    wfc_ref, bfc_ref,               # (NL, W, 4W), (NL, 4W)
    wcp_ref, bcp_ref,               # (NL, 4W, W), (NL, W)
    lnf_w_ref, lnf_b_ref,           # (1, W)
    tpw_ref, tpb_ref,               # (W, E_PAD), (1, E_PAD)
    out_ref,                        # (SEL, E_PAD)
):
    W = WIDTH
    Dh = W // HEADS

    def layer_norm(v, w, b):
        mu = jnp.mean(v, axis=-1, keepdims=True)
        var = jnp.mean((v - mu) ** 2, axis=-1, keepdims=True)
        return (v - mu) * lax.rsqrt(var + EPS) * w + b

    def matmul(a, b):               # a [M, K] @ b [K, N]  (weights pre-transposed)
        return lax.dot_general(a, b, (((1,), (0,)), ((), ())),
                               preferred_element_type=jnp.float32,
                               precision=lax.Precision.HIGHEST)

    x = x_ref[...] + pos_ref[...]                              # [M, W]

    for l in range(LAYERS):                                    # static loop over blocks
        # ---- causal multi-head self-attention ----
        xn = layer_norm(x, ln1_w_ref[l], ln1_b_ref[l])
        # Fused QKV projection: one MXU push per layer (1/sqrt(Dh) folded into q).
        qkv = matmul(xn, wqkv_ref[l]) + bqkv_ref[l]            # [M, 3W]

        ctx_heads = []
        for h in range(HEADS):      # static; per-head split = free static lane slices
            q = qkv[:, h * Dh:(h + 1) * Dh]                    # [M, Dh] (pre-scaled)
            k = qkv[:, W + h * Dh: W + (h + 1) * Dh]           # [M, Dh]
            v = qkv[:, 2 * W + h * Dh: 2 * W + (h + 1) * Dh]   # [M, Dh]
            s = lax.dot_general(q, k, (((1,), (1,)), ((), ())),
                                preferred_element_type=jnp.float32,
                                precision=lax.Precision.HIGHEST)    # [M, M]
            s = s + mask_ref[...]                              # mask read at use site
            s = s - jnp.max(s, axis=-1, keepdims=True)
            p = jnp.exp(s)
            # Exact normalization (approx reciprocal was the dominant error source
            # against the 2e-3 reference tolerance).
            p = p / jnp.sum(p, axis=-1, keepdims=True)
            ctx_heads.append(matmul(p, v))                     # [M, Dh]

        ctx = jnp.concatenate(ctx_heads, axis=-1)              # [M, W] heads packed on lanes
        x = x + matmul(ctx, wo_ref[l]) + bo_ref[l]             # fused output projection

        # ---- MLP (c_fc -> QuickGELU -> c_proj) ----
        xn = layer_norm(x, ln2_w_ref[l], ln2_b_ref[l])
        hmid = matmul(xn, wfc_ref[l]) + bfc_ref[l]             # [M, 4W] (lane-dense)
        hmid = hmid * jax.nn.sigmoid(1.702 * hmid)             # QuickGELU
        x = x + matmul(hmid, wcp_ref[l]) + bcp_ref[l]

    # ---- ln_final ----
    x = layer_norm(x, lnf_w_ref[0], lnf_b_ref[0])              # [M, W]

    # ---- EOT pooling (selection matmul) + text_projection (lane-dense) ----
    pooled = matmul(sel_ref[...], x)                           # [SEL, W]
    out_ref[...] = matmul(pooled, tpw_ref[...]) + tpb_ref[0]   # [SEL, E_PAD]


# ---- parameter construction (PyTorch layout, mirrors initialize_parameters) --
def build_params(key):
    NL, W, E = LAYERS, WIDTH, EMBED
    ks = jax.random.split(key, 12)
    attn_std = W ** -0.5
    proj_std = (W ** -0.5) * ((2 * NL) ** -0.5)
    fc_std = (2 * W) ** -0.5
    p = dict(
        tok_emb=jax.random.normal(ks[0], (VOCAB, W)) * 0.02,
        pos_emb=jax.random.normal(ks[1], (CONTEXT, W)) * 0.01,
        ln1_w=jnp.ones((NL, W)), ln1_b=jnp.zeros((NL, W)),
        w_in=jax.random.normal(ks[2], (NL, 3 * W, W)) * attn_std,
        b_in=jax.random.normal(ks[3], (NL, 3 * W)) * 0.02,
        w_out=jax.random.normal(ks[4], (NL, W, W)) * proj_std,
        b_out=jax.random.normal(ks[5], (NL, W)) * 0.02,
        ln2_w=jnp.ones((NL, W)), ln2_b=jnp.zeros((NL, W)),
        w_fc=jax.random.normal(ks[6], (NL, 4 * W, W)) * fc_std,
        b_fc=jax.random.normal(ks[7], (NL, 4 * W)) * 0.02,
        w_cp=jax.random.normal(ks[8], (NL, W, 4 * W)) * proj_std,
        b_cp=jax.random.normal(ks[9], (NL, W)) * 0.02,
        lnf_w=jnp.ones((1, W)), lnf_b=jnp.zeros((1, W)),
        tp_w=jax.random.normal(ks[10], (E, W)) * attn_std,
        tp_b=jax.random.normal(ks[11], (1, E)) * 0.02,
    )
    return {k: v.astype(jnp.float32) for k, v in p.items()}


# ---- one-time kernel-layout parameter preparation ----------------------------
def prepare_kernel_params(p):
    NL, W, H, E = LAYERS, WIDTH, HEADS, EMBED
    Dh = W // H
    scale = Dh ** -0.5

    # Fused QKV weight, pre-transposed to [in, out], with the 1/sqrt(Dh) scale
    # folded into the q output columns (weights AND bias).
    col_scale = jnp.concatenate(
        [jnp.full((W,), scale, jnp.float32), jnp.ones((2 * W,), jnp.float32)])
    wqkv = jnp.transpose(p["w_in"], (0, 2, 1)) * col_scale[None, None, :]   # [NL, W, 3W]
    bqkv = p["b_in"] * col_scale[None, :]                                   # [NL, 3W]

    wo = jnp.transpose(p["w_out"], (0, 2, 1))                               # [NL, W, W]
    wfc = jnp.transpose(p["w_fc"], (0, 2, 1))                               # [NL, W, 4W]
    wcp = jnp.transpose(p["w_cp"], (0, 2, 1))                               # [NL, 4W, W]
    tpw = jnp.zeros((W, E_PAD), jnp.float32).at[:, :E].set(p["tp_w"].T)     # lane-dense
    tpb = jnp.zeros((1, E_PAD), jnp.float32).at[:, :E].set(p["tp_b"])

    kp = dict(
        tok_emb=p["tok_emb"], pos_emb=p["pos_emb"],
        ln1_w=p["ln1_w"], ln1_b=p["ln1_b"],
        wqkv=wqkv, bqkv=bqkv, wo=wo, bo=p["b_out"],
        ln2_w=p["ln2_w"], ln2_b=p["ln2_b"],
        wfc=wfc, bfc=p["b_fc"], wcp=wcp, bcp=p["b_cp"],
        lnf_w=p["lnf_w"], lnf_b=p["lnf_b"],
        tpw=tpw, tpb=tpb,
    )
    return {k: v.astype(jnp.float32) for k, v in kp.items()}


# ---- wrapper around pallas_call ----------------------------------------------
@jax.jit
def text_transformer_forward(tokens, kp):
    B, L = tokens.shape
    W = WIDTH

    # --- static tiling decisions (trace-time Python ints) ---
    max_bt = max(1, 128 // L)                 # cap tile at 128 activation rows
    b_tile = max(1, min(B, max_bt))           # adaptive: no padded sequences when possible
    n_tiles = _cdiv(B, b_tile)
    if n_tiles < 2 and B > 1:                 # >=2 grid steps so v7x's 2nd TC gets work
        b_tile = _cdiv(B, 2)
        n_tiles = _cdiv(B, b_tile)
    b_pad = n_tiles * b_tile
    m_tile = b_tile * L                       # rows per grid step (multiple of 8, L=8)
    sel_pad = _cdiv(b_tile, 8) * 8            # sublane-aligned pooled rows per tile

    # --- XLA glue: embedding gather, batch padding, positional tile, mask, EOT sel ---
    x = kp["tok_emb"][tokens]                                      # [B, L, W]
    x = jnp.pad(x, ((0, b_pad - B), (0, 0), (0, 0)))
    x_flat = x.reshape(b_pad * L, W)                               # [b_pad*L, W]

    pos_tiled = jnp.tile(kp["pos_emb"], (b_tile, 1))               # [m_tile, W]

    row = jnp.arange(m_tile, dtype=jnp.int32)
    seq_id, pos_id = row // L, row % L
    allowed = (seq_id[:, None] == seq_id[None, :]) & (pos_id[None, :] <= pos_id[:, None])
    mask = jnp.where(allowed, 0.0, NEG_MASK).astype(jnp.float32)   # [m_tile, m_tile]

    eot = jnp.argmax(tokens, axis=-1).astype(jnp.int32)            # [B]
    eot = jnp.pad(eot, (0, b_pad - B))
    rows = jnp.arange(n_tiles * sel_pad, dtype=jnp.int32)
    local = rows % sel_pad
    bglob = (rows // sel_pad) * b_tile + local
    valid = (local < b_tile) & (bglob < B)
    target = local * L + eot[jnp.clip(bglob, 0, b_pad - 1)]
    sel = ((jnp.arange(m_tile, dtype=jnp.int32)[None, :] == target[:, None])
           & valid[:, None]).astype(jnp.float32)                   # [n_tiles*sel_pad, m_tile]

    weights = [
        kp["ln1_w"], kp["ln1_b"],
        kp["wqkv"], kp["bqkv"], kp["wo"], kp["bo"],
        kp["ln2_w"], kp["ln2_b"],
        kp["wfc"], kp["bfc"], kp["wcp"], kp["bcp"],
        kp["lnf_w"], kp["lnf_b"],
        kp["tpw"], kp["tpb"],
    ]

    def full_spec(a):
        nd = a.ndim
        return pl.BlockSpec(a.shape, lambda i, _nd=nd: (0,) * _nd)

    in_specs = [
        pl.BlockSpec((m_tile, W), lambda i: (i, 0)),               # activation rows per tile
        full_spec(pos_tiled),
        full_spec(mask),
        pl.BlockSpec((sel_pad, m_tile), lambda i: (i, 0)),         # EOT selector rows per tile
    ] + [full_spec(a) for a in weights]

    grid_spec = pltpu.PrefetchScalarGridSpec(
        num_scalar_prefetch=0,
        grid=(n_tiles,),
        in_specs=in_specs,
        out_specs=pl.BlockSpec((sel_pad, E_PAD), lambda i: (i, 0)),
    )

    out = pl.pallas_call(
        text_transformer_kernel,
        grid_spec=grid_spec,
        out_shape=jax.ShapeDtypeStruct((n_tiles * sel_pad, E_PAD), jnp.float32),
        compiler_params=pltpu.CompilerParams(dimension_semantics=("parallel",)),
    )(x_flat, pos_tiled, mask, sel, *weights)

    out = out.reshape(n_tiles, sel_pad, E_PAD)[:, :b_tile, :].reshape(b_pad, E_PAD)
    return out[:B, :EMBED]


# ---- pure-JAX reference (semantics check) ------------------------------------
def reference_forward(tokens, params):
    x = params["tok_emb"][tokens] + params["pos_emb"][None]
    mask = jnp.triu(jnp.full((CONTEXT, CONTEXT), -jnp.inf, dtype=jnp.float32), 1)

    def ln(v, w, b):
        mu = v.mean(-1, keepdims=True)
        var = ((v - mu) ** 2).mean(-1, keepdims=True)
        return (v - mu) / jnp.sqrt(var + EPS) * w + b

    B, L, W = x.shape
    Dh = W // HEADS
    for l in range(LAYERS):
        xn = ln(x, params["ln1_w"][l], params["ln1_b"][l])
        qkv = xn @ params["w_in"][l].T + params["b_in"][l]
        q, k, v = jnp.split(qkv, 3, axis=-1)
        q = q.reshape(B, L, HEADS, Dh) * (Dh ** -0.5)
        k = k.reshape(B, L, HEADS, Dh)
        v = v.reshape(B, L, HEADS, Dh)
        s = jnp.einsum("bqhd,bkhd->bhqk", q, k) + mask
        p = jax.nn.softmax(s, axis=-1)
        ctx = jnp.einsum("bhqk,bkhd->bqhd", p, v).reshape(B, L, W)
        x = x + ctx @ params["w_out"][l].T + params["b_out"][l]
        xn = ln(x, params["ln2_w"][l], params["ln2_b"][l])
        h = xn @ params["w_fc"][l].T + params["b_fc"][l]
        h = h * jax.nn.sigmoid(1.702 * h)
        x = x + h @ params["w_cp"][l].T + params["b_cp"][l]
    x = ln(x, params["lnf_w"][0], params["lnf_b"][0])
    pooled = x[jnp.arange(B), jnp.argmax(tokens, axis=-1)]
    return pooled @ params["tp_w"].T + params["tp_b"][0]


if __name__ == "__main__":
    key = jax.random.PRNGKey(0)
    pkey, tkey = jax.random.split(key)
    params = build_params(pkey)
    kparams = prepare_kernel_params(params)          # one-time layout transform
    tokens = jax.random.randint(tkey, (BATCH, CONTEXT), 1, VOCAB, dtype=jnp.int32)

    out = text_transformer_forward(tokens, kparams)
    out = jax.block_until_ready(out)

    ref = reference_forward(tokens, params)
    assert out.shape == (BATCH, EMBED)
    max_err = float(jnp.max(jnp.abs(out - ref)))
    assert jnp.allclose(out, ref, atol=2e-3, rtol=2e-3), (
        f"mismatch vs JAX reference (max abs err {max_err:.3e})")
    print("KERNEL_OK")
</pallas_src>

<mosaic_0001>
module attributes {stable_mosaic.version = 11 : i64} {
  func.func @text_transformer_kernel(%arg0: i32, %arg1: memref<8x32xf32, #tpu.memory_space<vmem>>, %arg2: memref<8x32xf32, #tpu.memory_space<vmem>>, %arg3: memref<8x8xf32, #tpu.memory_space<vmem>>, %arg4: memref<8x8xf32, #tpu.memory_space<vmem>>, %arg5: memref<2x32xf32, #tpu.memory_space<vmem>>, %arg6: memref<2x32xf32, #tpu.memory_space<vmem>>, %arg7: memref<2x32x96xf32, #tpu.memory_space<vmem>>, %arg8: memref<2x96xf32, #tpu.memory_space<vmem>>, %arg9: memref<2x32x32xf32, #tpu.memory_space<vmem>>, %arg10: memref<2x32xf32, #tpu.memory_space<vmem>>, %arg11: memref<2x32xf32, #tpu.memory_space<vmem>>, %arg12: memref<2x32xf32, #tpu.memory_space<vmem>>, %arg13: memref<2x32x128xf32, #tpu.memory_space<vmem>>, %arg14: memref<2x128xf32, #tpu.memory_space<vmem>>, %arg15: memref<2x128x32xf32, #tpu.memory_space<vmem>>, %arg16: memref<2x32xf32, #tpu.memory_space<vmem>>, %arg17: memref<1x32xf32, #tpu.memory_space<vmem>>, %arg18: memref<1x32xf32, #tpu.memory_space<vmem>>, %arg19: memref<32x128xf32, #tpu.memory_space<vmem>>, %arg20: memref<1x128xf32, #tpu.memory_space<vmem>>, %arg21: memref<8x128xf32, #tpu.memory_space<vmem>>) attributes {dimension_semantics = [#tpu.dimension_semantics<parallel>], iteration_bounds = array<i64: 2>, scalar_prefetch = 0 : i64, scratch_operands = 0 : i64, tpu.core_type = #tpu.core_type<tc>, window_params = [{transform_indices = @transform_0, window_bounds = array<i64: 8, 32>}, {pipeline_mode = #tpu.pipeline_mode<synchronous>, transform_indices = @transform_1, window_bounds = array<i64: 8, 32>}, {pipeline_mode = #tpu.pipeline_mode<synchronous>, transform_indices = @transform_2, window_bounds = array<i64: 8, 8>}, {transform_indices = @transform_3, window_bounds = array<i64: 8, 8>}, {pipeline_mode = #tpu.pipeline_mode<synchronous>, transform_indices = @transform_4, window_bounds = array<i64: 2, 32>}, {pipeline_mode = #tpu.pipeline_mode<synchronous>, transform_indices = @transform_5, window_bounds = array<i64: 2, 32>}, {pipeline_mode = #tpu.pipeline_mode<synchronous>, transform_indices = @transform_6, window_bounds = array<i64: 2, 32, 96>}, {pipeline_mode = #tpu.pipeline_mode<synchronous>, transform_indices = @transform_7, window_bounds = array<i64: 2, 96>}, {pipeline_mode = #tpu.pipeline_mode<synchronous>, transform_indices = @transform_8, window_bounds = array<i64: 2, 32, 32>}, {pipeline_mode = #tpu.pipeline_mode<synchronous>, transform_indices = @transform_9, window_bounds = array<i64: 2, 32>}, {pipeline_mode = #tpu.pipeline_mode<synchronous>, transform_indices = @transform_10, window_bounds = array<i64: 2, 32>}, {pipeline_mode = #tpu.pipeline_mode<synchronous>, transform_indices = @transform_11, window_bounds = array<i64: 2, 32>}, {pipeline_mode = #tpu.pipeline_mode<synchronous>, transform_indices = @transform_12, window_bounds = array<i64: 2, 32, 128>}, {pipeline_mode = #tpu.pipeline_mode<synchronous>, transform_indices = @transform_13, window_bounds = array<i64: 2, 128>}, {pipeline_mode = #tpu.pipeline_mode<synchronous>, transform_indices = @transform_14, window_bounds = array<i64: 2, 128, 32>}, {pipeline_mode = #tpu.pipeline_mode<synchronous>, transform_indices = @transform_15, window_bounds = array<i64: 2, 32>}, {pipeline_mode = #tpu.pipeline_mode<synchronous>, transform_indices = @transform_16, window_bounds = array<i64: 1, 32>}, {pipeline_mode = #tpu.pipeline_mode<synchronous>, transform_indices = @transform_17, window_bounds = array<i64: 1, 32>}, {pipeline_mode = #tpu.pipeline_mode<synchronous>, transform_indices = @transform_18, window_bounds = array<i64: 32, 128>}, {pipeline_mode = #tpu.pipeline_mode<synchronous>, transform_indices = @transform_19, window_bounds = array<i64: 1, 128>}, {transform_indices = @transform_20, window_bounds = array<i64: 8, 128>}]} {
    %c0 = arith.constant 0 : index
    %c0_0 = arith.constant 0 : index
    %0 = vector.load %arg1[%c0, %c0_0] : memref<8x32xf32, #tpu.memory_space<vmem>>, vector<8x32xf32>
    %c0_1 = arith.constant 0 : index
    %c0_2 = arith.constant 0 : index
    %1 = vector.load %arg2[%c0_1, %c0_2] : memref<8x32xf32, #tpu.memory_space<vmem>>, vector<8x32xf32>
    %2 = arith.addf %0, %1 : vector<8x32xf32>
    %c0_3 = arith.constant 0 : index
    %c0_4 = arith.constant 0 : index
    %3 = vector.load %arg5[%c0_3, %c0_4] : memref<2x32xf32, #tpu.memory_space<vmem>>, vector<1x32xf32>
    %4 = vector.shape_cast %3 : vector<1x32xf32> to vector<32xf32>
    %c0_5 = arith.constant 0 : index
    %c0_6 = arith.constant 0 : index
    %5 = vector.load %arg6[%c0_5, %c0_6] : memref<2x32xf32, #tpu.memory_space<vmem>>, vector<1x32xf32>
    %6 = vector.shape_cast %5 : vector<1x32xf32> to vector<32xf32>
    %cst = arith.constant dense<0.000000e+00> : vector<8xf32>
    %7 = vector.multi_reduction <add>, %2, %cst [1] : vector<8x32xf32> to vector<8xf32>
    %8 = vector.shape_cast %7 : vector<8xf32> to vector<8x1xf32>
    %cst_7 = arith.constant 3.200000e+01 : f32
    %9 = vector.broadcast %cst_7 : f32 to vector<8x1xf32>
    %10 = arith.divf %8, %9 : vector<8x1xf32>
    %11 = vector.broadcast %10 : vector<8x1xf32> to vector<8x32xf32>
    %12 = arith.subf %2, %11 : vector<8x32xf32>
    %13 = arith.mulf %12, %12 : vector<8x32xf32>
    %cst_8 = arith.constant dense<0.000000e+00> : vector<8xf32>
    %14 = vector.multi_reduction <add>, %13, %cst_8 [1] : vector<8x32xf32> to vector<8xf32>
    %15 = vector.shape_cast %14 : vector<8xf32> to vector<8x1xf32>
    %cst_9 = arith.constant 3.200000e+01 : f32
    %16 = vector.broadcast %cst_9 : f32 to vector<8x1xf32>
    %17 = arith.divf %15, %16 : vector<8x1xf32>
    %18 = vector.broadcast %10 : vector<8x1xf32> to vector<8x32xf32>
    %19 = arith.subf %2, %18 : vector<8x32xf32>
    %cst_10 = arith.constant 9.99999974E-6 : f32
    %20 = vector.broadcast %cst_10 : f32 to vector<8x1xf32>
    %21 = arith.addf %17, %20 : vector<8x1xf32>
    %22 = math.rsqrt %21 : vector<8x1xf32>
    %23 = vector.broadcast %22 : vector<8x1xf32> to vector<8x32xf32>
    %24 = arith.mulf %19, %23 : vector<8x32xf32>
    %25 = vector.shape_cast %4 : vector<32xf32> to vector<1x32xf32>
    %26 = vector.broadcast %25 : vector<1x32xf32> to vector<8x32xf32>
    %27 = arith.mulf %24, %26 : vector<8x32xf32>
    %28 = vector.shape_cast %6 : vector<32xf32> to vector<1x32xf32>
    %29 = vector.broadcast %28 : vector<1x32xf32> to vector<8x32xf32>
    %30 = arith.addf %27, %29 : vector<8x32xf32>
    %c0_11 = arith.constant 0 : index
    %c0_12 = arith.constant 0 : index
    %c0_13 = arith.constant 0 : index
    %31 = vector.load %arg7[%c0_11, %c0_12, %c0_13] : memref<2x32x96xf32, #tpu.memory_space<vmem>>, vector<1x32x96xf32>
    %32 = vector.shape_cast %31 : vector<1x32x96xf32> to vector<32x96xf32>
    %cst_14 = arith.constant dense<0.000000e+00> : vector<8x96xf32>
    %33 = tpu.matmul %30, %32, %cst_14 {dimension_numbers = #tpu.dot_dimension_numbers<[1], [0], [0], [1], [0, 0, 1, 1], [], []>, precision = #tpu.contract_precision<fp32>} : vector<8x32xf32>, vector<32x96xf32>, vector<8x96xf32> -> vector<8x96xf32>
    %c0_15 = arith.constant 0 : index
    %c0_16 = arith.constant 0 : index
    %34 = vector.load %arg8[%c0_15, %c0_16] : memref<2x96xf32, #tpu.memory_space<vmem>>, vector<1x96xf32>
    %35 = vector.shape_cast %34 : vector<1x96xf32> to vector<96xf32>
    %36 = vector.shape_cast %35 : vector<96xf32> to vector<1x96xf32>
    %37 = vector.broadcast %36 : vector<1x96xf32> to vector<8x96xf32>
    %38 = arith.addf %33, %37 : vector<8x96xf32>
    %39 = vector.extract_strided_slice %38 {offsets = [0, 0], sizes = [8, 8], strides = [1, 1]} : vector<8x96xf32> to vector<8x8xf32>
    %40 = vector.extract_strided_slice %38 {offsets = [0, 32], sizes = [8, 8], strides = [1, 1]} : vector<8x96xf32> to vector<8x8xf32>
    %41 = vector.extract_strided_slice %38 {offsets = [0, 64], sizes = [8, 8], strides = [1, 1]} : vector<8x96xf32> to vector<8x8xf32>
    %cst_17 = arith.constant dense<0.000000e+00> : vector<8x8xf32>
    %42 = tpu.matmul %39, %40, %cst_17 {dimension_numbers = #tpu.dot_dimension_numbers<[1], [1], [0], [0], [0, 0, 1, 0], [], []>, precision = #tpu.contract_precision<fp32>} : vector<8x8xf32>, vector<8x8xf32>, vector<8x8xf32> -> vector<8x8xf32>
    %c0_18 = arith.constant 0 : index
    %c0_19 = arith.constant 0 : index
    %43 = vector.load %arg3[%c0_18, %c0_19] : memref<8x8xf32, #tpu.memory_space<vmem>>, vector<8x8xf32>
    %44 = arith.addf %42, %43 : vector<8x8xf32>
    %cst_20 = arith.constant dense<0xFF800000> : vector<8xf32>
    %45 = vector.multi_reduction <maximumf>, %44, %cst_20 [1] : vector<8x8xf32> to vector<8xf32>
    %46 = vector.shape_cast %45 : vector<8xf32> to vector<8x1xf32>
    %47 = vector.broadcast %46 : vector<8x1xf32> to vector<8x8xf32>
    %48 = arith.subf %44, %47 : vector<8x8xf32>
    %49 = math.exp %48 : vector<8x8xf32>
    %cst_21 = arith.constant dense<0.000000e+00> : vector<8xf32>
    %50 = vector.multi_reduction <add>, %49, %cst_21 [1] : vector<8x8xf32> to vector<8xf32>
    %51 = vector.shape_cast %50 : vector<8xf32> to vector<8x1xf32>
    %52 = vector.broadcast %51 : vector<8x1xf32> to vector<8x8xf32>
    %53 = arith.divf %49, %52 : vector<8x8xf32>
    %cst_22 = arith.constant dense<0.000000e+00> : vector<8x8xf32>
    %54 = tpu.matmul %53, %41, %cst_22 {dimension_numbers = #tpu.dot_dimension_numbers<[1], [0], [0], [1], [0, 0, 1, 1], [], []>, precision = #tpu.contract_precision<fp32>} : vector<8x8xf32>, vector<8x8xf32>, vector<8x8xf32> -> vector<8x8xf32>
    %55 = vector.extract_strided_slice %38 {offsets = [0, 8], sizes = [8, 8], strides = [1, 1]} : vector<8x96xf32> to vector<8x8xf32>
    %56 = vector.extract_strided_slice %38 {offsets = [0, 40], sizes = [8, 8], strides = [1, 1]} : vector<8x96xf32> to vector<8x8xf32>
    %57 = vector.extract_strided_slice %38 {offsets = [0, 72], sizes = [8, 8], strides = [1, 1]} : vector<8x96xf32> to vector<8x8xf32>
    %cst_23 = arith.constant dense<0.000000e+00> : vector<8x8xf32>
    %58 = tpu.matmul %55, %56, %cst_23 {dimension_numbers = #tpu.dot_dimension_numbers<[1], [1], [0], [0], [0, 0, 1, 0], [], []>, precision = #tpu.contract_precision<fp32>} : vector<8x8xf32>, vector<8x8xf32>, vector<8x8xf32> -> vector<8x8xf32>
    %c0_24 = arith.constant 0 : index
    %c0_25 = arith.constant 0 : index
    %59 = vector.load %arg3[%c0_24, %c0_25] : memref<8x8xf32, #tpu.memory_space<vmem>>, vector<8x8xf32>
    %60 = arith.addf %58, %59 : vector<8x8xf32>
    %cst_26 = arith.constant dense<0xFF800000> : vector<8xf32>
    %61 = vector.multi_reduction <maximumf>, %60, %cst_26 [1] : vector<8x8xf32> to vector<8xf32>
    %62 = vector.shape_cast %61 : vector<8xf32> to vector<8x1xf32>
    %63 = vector.broadcast %62 : vector<8x1xf32> to vector<8x8xf32>
    %64 = arith.subf %60, %63 : vector<8x8xf32>
    %65 = math.exp %64 : vector<8x8xf32>
    %cst_27 = arith.constant dense<0.000000e+00> : vector<8xf32>
    %66 = vector.multi_reduction <add>, %65, %cst_27 [1] : vector<8x8xf32> to vector<8xf32>
    %67 = vector.shape_cast %66 : vector<8xf32> to vector<8x1xf32>
    %68 = vector.broadcast %67 : vector<8x1xf32> to vector<8x8xf32>
    %69 = arith.divf %65, %68 : vector<8x8xf32>
    %cst_28 = arith.constant dense<0.000000e+00> : vector<8x8xf32>
    %70 = tpu.matmul %69, %57, %cst_28 {dimension_numbers = #tpu.dot_dimension_numbers<[1], [0], [0], [1], [0, 0, 1, 1], [], []>, precision = #tpu.contract_precision<fp32>} : vector<8x8xf32>, vector<8x8xf32>, vector<8x8xf32> -> vector<8x8xf32>
    %71 = vector.extract_strided_slice %38 {offsets = [0, 16], sizes = [8, 8], strides = [1, 1]} : vector<8x96xf32> to vector<8x8xf32>
    %72 = vector.extract_strided_slice %38 {offsets = [0, 48], sizes = [8, 8], strides = [1, 1]} : vector<8x96xf32> to vector<8x8xf32>
    %73 = vector.extract_strided_slice %38 {offsets = [0, 80], sizes = [8, 8], strides = [1, 1]} : vector<8x96xf32> to vector<8x8xf32>
    %cst_29 = arith.constant dense<0.000000e+00> : vector<8x8xf32>
    %74 = tpu.matmul %71, %72, %cst_29 {dimension_numbers = #tpu.dot_dimension_numbers<[1], [1], [0], [0], [0, 0, 1, 0], [], []>, precision = #tpu.contract_precision<fp32>} : vector<8x8xf32>, vector<8x8xf32>, vector<8x8xf32> -> vector<8x8xf32>
    %c0_30 = arith.constant 0 : index
    %c0_31 = arith.constant 0 : index
    %75 = vector.load %arg3[%c0_30, %c0_31] : memref<8x8xf32, #tpu.memory_space<vmem>>, vector<8x8xf32>
    %76 = arith.addf %74, %75 : vector<8x8xf32>
    %cst_32 = arith.constant dense<0xFF800000> : vector<8xf32>
    %77 = vector.multi_reduction <maximumf>, %76, %cst_32 [1] : vector<8x8xf32> to vector<8xf32>
    %78 = vector.shape_cast %77 : vector<8xf32> to vector<8x1xf32>
    %79 = vector.broadcast %78 : vector<8x1xf32> to vector<8x8xf32>
    %80 = arith.subf %76, %79 : vector<8x8xf32>
    %81 = math.exp %80 : vector<8x8xf32>
    %cst_33 = arith.constant dense<0.000000e+00> : vector<8xf32>
    %82 = vector.multi_reduction <add>, %81, %cst_33 [1] : vector<8x8xf32> to vector<8xf32>
    %83 = vector.shape_cast %82 : vector<8xf32> to vector<8x1xf32>
    %84 = vector.broadcast %83 : vector<8x1xf32> to vector<8x8xf32>
    %85 = arith.divf %81, %84 : vector<8x8xf32>
    %cst_34 = arith.constant dense<0.000000e+00> : vector<8x8xf32>
    %86 = tpu.matmul %85, %73, %cst_34 {dimension_numbers = #tpu.dot_dimension_numbers<[1], [0], [0], [1], [0, 0, 1, 1], [], []>, precision = #tpu.contract_precision<fp32>} : vector<8x8xf32>, vector<8x8xf32>, vector<8x8xf32> -> vector<8x8xf32>
    %87 = vector.extract_strided_slice %38 {offsets = [0, 24], sizes = [8, 8], strides = [1, 1]} : vector<8x96xf32> to vector<8x8xf32>
    %88 = vector.extract_strided_slice %38 {offsets = [0, 56], sizes = [8, 8], strides = [1, 1]} : vector<8x96xf32> to vector<8x8xf32>
    %89 = vector.extract_strided_slice %38 {offsets = [0, 88], sizes = [8, 8], strides = [1, 1]} : vector<8x96xf32> to vector<8x8xf32>
    %cst_35 = arith.constant dense<0.000000e+00> : vector<8x8xf32>
    %90 = tpu.matmul %87, %88, %cst_35 {dimension_numbers = #tpu.dot_dimension_numbers<[1], [1], [0], [0], [0, 0, 1, 0], [], []>, precision = #tpu.contract_precision<fp32>} : vector<8x8xf32>, vector<8x8xf32>, vector<8x8xf32> -> vector<8x8xf32>
    %c0_36 = arith.constant 0 : index
    %c0_37 = arith.constant 0 : index
    %91 = vector.load %arg3[%c0_36, %c0_37] : memref<8x8xf32, #tpu.memory_space<vmem>>, vector<8x8xf32>
    %92 = arith.addf %90, %91 : vector<8x8xf32>
    %cst_38 = arith.constant dense<0xFF800000> : vector<8xf32>
    %93 = vector.multi_reduction <maximumf>, %92, %cst_38 [1] : vector<8x8xf32> to vector<8xf32>
    %94 = vector.shape_cast %93 : vector<8xf32> to vector<8x1xf32>
    %95 = vector.broadcast %94 : vector<8x1xf32> to vector<8x8xf32>
    %96 = arith.subf %92, %95 : vector<8x8xf32>
    %97 = math.exp %96 : vector<8x8xf32>
    %cst_39 = arith.constant dense<0.000000e+00> : vector<8xf32>
    %98 = vector.multi_reduction <add>, %97, %cst_39 [1] : vector<8x8xf32> to vector<8xf32>
    %99 = vector.shape_cast %98 : vector<8xf32> to vector<8x1xf32>
    %100 = vector.broadcast %99 : vector<8x1xf32> to vector<8x8xf32>
    %101 = arith.divf %97, %100 : vector<8x8xf32>
    %cst_40 = arith.constant dense<0.000000e+00> : vector<8x8xf32>
    %102 = tpu.matmul %101, %89, %cst_40 {dimension_numbers = #tpu.dot_dimension_numbers<[1], [0], [0], [1], [0, 0, 1, 1], [], []>, precision = #tpu.contract_precision<fp32>} : vector<8x8xf32>, vector<8x8xf32>, vector<8x8xf32> -> vector<8x8xf32>
    %103 = tpu.concatenate %54, %70, %86, %102 in 1 : vector<8x8xf32>, vector<8x8xf32>, vector<8x8xf32>, vector<8x8xf32> -> vector<8x32xf32>
    %c0_41 = arith.constant 0 : index
    %c0_42 = arith.constant 0 : index
    %c0_43 = arith.constant 0 : index
    %104 = vector.load %arg9[%c0_41, %c0_42, %c0_43] : memref<2x32x32xf32, #tpu.memory_space<vmem>>, vector<1x32x32xf32>
    %105 = vector.shape_cast %104 : vector<1x32x32xf32> to vector<32x32xf32>
    %cst_44 = arith.constant dense<0.000000e+00> : vector<8x32xf32>
    %106 = tpu.matmul %103, %105, %cst_44 {dimension_numbers = #tpu.dot_dimension_numbers<[1], [0], [0], [1], [0, 0, 1, 1], [], []>, precision = #tpu.contract_precision<fp32>} : vector<8x32xf32>, vector<32x32xf32>, vector<8x32xf32> -> vector<8x32xf32>
    %107 = arith.addf %2, %106 : vector<8x32xf32>
    %c0_45 = arith.constant 0 : index
    %c0_46 = arith.constant 0 : index
    %108 = vector.load %arg10[%c0_45, %c0_46] : memref<2x32xf32, #tpu.memory_space<vmem>>, vector<1x32xf32>
    %109 = vector.shape_cast %108 : vector<1x32xf32> to vector<32xf32>
    %110 = vector.shape_cast %109 : vector<32xf32> to vector<1x32xf32>
    %111 = vector.broadcast %110 : vector<1x32xf32> to vector<8x32xf32>
    %112 = arith.addf %107, %111 : vector<8x32xf32>
    %c0_47 = arith.constant 0 : index
    %c0_48 = arith.constant 0 : index
    %113 = vector.load %arg11[%c0_47, %c0_48] : memref<2x32xf32, #tpu.memory_space<vmem>>, vector<1x32xf32>
    %114 = vector.shape_cast %113 : vector<1x32xf32> to vector<32xf32>
    %c0_49 = arith.constant 0 : index
    %c0_50 = arith.constant 0 : index
    %115 = vector.load %arg12[%c0_49, %c0_50] : memref<2x32xf32, #tpu.memory_space<vmem>>, vector<1x32xf32>
    %116 = vector.shape_cast %115 : vector<1x32xf32> to vector<32xf32>
    %cst_51 = arith.constant dense<0.000000e+00> : vector<8xf32>
    %117 = vector.multi_reduction <add>, %112, %cst_51 [1] : vector<8x32xf32> to vector<8xf32>
    %118 = vector.shape_cast %117 : vector<8xf32> to vector<8x1xf32>
    %cst_52 = arith.constant 3.200000e+01 : f32
    %119 = vector.broadcast %cst_52 : f32 to vector<8x1xf32>
    %120 = arith.divf %118, %119 : vector<8x1xf32>
    %121 = vector.broadcast %120 : vector<8x1xf32> to vector<8x32xf32>
    %122 = arith.subf %112, %121 : vector<8x32xf32>
    %123 = arith.mulf %122, %122 : vector<8x32xf32>
    %cst_53 = arith.constant dense<0.000000e+00> : vector<8xf32>
    %124 = vector.multi_reduction <add>, %123, %cst_53 [1] : vector<8x32xf32> to vector<8xf32>
    %125 = vector.shape_cast %124 : vector<8xf32> to vector<8x1xf32>
    %cst_54 = arith.constant 3.200000e+01 : f32
    %126 = vector.broadcast %cst_54 : f32 to vector<8x1xf32>
    %127 = arith.divf %125, %126 : vector<8x1xf32>
    %128 = vector.broadcast %120 : vector<8x1xf32> to vector<8x32xf32>
    %129 = arith.subf %112, %128 : vector<8x32xf32>
    %cst_55 = arith.constant 9.99999974E-6 : f32
    %130 = vector.broadcast %cst_55 : f32 to vector<8x1xf32>
    %131 = arith.addf %127, %130 : vector<8x1xf32>
    %132 = math.rsqrt %131 : vector<8x1xf32>
    %133 = vector.broadcast %132 : vector<8x1xf32> to vector<8x32xf32>
    %134 = arith.mulf %129, %133 : vector<8x32xf32>
    %135 = vector.shape_cast %114 : vector<32xf32> to vector<1x32xf32>
    %136 = vector.broadcast %135 : vector<1x32xf32> to vector<8x32xf32>
    %137 = arith.mulf %134, %136 : vector<8x32xf32>
    %138 = vector.shape_cast %116 : vector<32xf32> to vector<1x32xf32>
    %139 = vector.broadcast %138 : vector<1x32xf32> to vector<8x32xf32>
    %140 = arith.addf %137, %139 : vector<8x32xf32>
    %c0_56 = arith.constant 0 : index
    %c0_57 = arith.constant 0 : index
    %c0_58 = arith.constant 0 : index
    %141 = vector.load %arg13[%c0_56, %c0_57, %c0_58] : memref<2x32x128xf32, #tpu.memory_space<vmem>>, vector<1x32x128xf32>
    %142 = vector.shape_cast %141 : vector<1x32x128xf32> to vector<32x128xf32>
    %cst_59 = arith.constant dense<0.000000e+00> : vector<8x128xf32>
    %143 = tpu.matmul %140, %142, %cst_59 {dimension_numbers = #tpu.dot_dimension_numbers<[1], [0], [0], [1], [0, 0, 1, 1], [], []>, precision = #tpu.contract_precision<fp32>} : vector<8x32xf32>, vector<32x128xf32>, vector<8x128xf32> -> vector<8x128xf32>
    %c0_60 = arith.constant 0 : index
    %c0_61 = arith.constant 0 : index
    %144 = vector.load %arg14[%c0_60, %c0_61] : memref<2x128xf32, #tpu.memory_space<vmem>>, vector<1x128xf32>
    %145 = vector.shape_cast %144 : vector<1x128xf32> to vector<128xf32>
    %146 = vector.shape_cast %145 : vector<128xf32> to vector<1x128xf32>
    %147 = vector.broadcast %146 : vector<1x128xf32> to vector<8x128xf32>
    %148 = arith.addf %143, %147 : vector<8x128xf32>
    %cst_62 = arith.constant 1.702000e+00 : f32
    %149 = vector.broadcast %cst_62 : f32 to vector<8x128xf32>
    %150 = arith.mulf %149, %148 : vector<8x128xf32>
    %151 = arith.negf %150 : vector<8x128xf32>
    %152 = math.exp %151 : vector<8x128xf32>
    %cst_63 = arith.constant 1.000000e+00 : f32
    %153 = vector.broadcast %cst_63 : f32 to vector<8x128xf32>
    %154 = arith.addf %153, %152 : vector<8x128xf32>
    %155 = arith.divf %153, %154 : vector<8x128xf32>
    %156 = arith.mulf %148, %155 : vector<8x128xf32>
    %c0_64 = arith.constant 0 : index
    %c0_65 = arith.constant 0 : index
    %c0_66 = arith.constant 0 : index
    %157 = vector.load %arg15[%c0_64, %c0_65, %c0_66] : memref<2x128x32xf32, #tpu.memory_space<vmem>>, vector<1x128x32xf32>
    %158 = vector.shape_cast %157 : vector<1x128x32xf32> to vector<128x32xf32>
    %cst_67 = arith.constant dense<0.000000e+00> : vector<8x32xf32>
    %159 = tpu.matmul %156, %158, %cst_67 {dimension_numbers = #tpu.dot_dimension_numbers<[1], [0], [0], [1], [0, 0, 1, 1], [], []>, precision = #tpu.contract_precision<fp32>} : vector<8x128xf32>, vector<128x32xf32>, vector<8x32xf32> -> vector<8x32xf32>
    %160 = arith.addf %112, %159 : vector<8x32xf32>
    %c0_68 = arith.constant 0 : index
    %c0_69 = arith.constant 0 : index
    %161 = vector.load %arg16[%c0_68, %c0_69] : memref<2x32xf32, #tpu.memory_space<vmem>>, vector<1x32xf32>
    %162 = vector.shape_cast %161 : vector<1x32xf32> to vector<32xf32>
    %163 = vector.shape_cast %162 : vector<32xf32> to vector<1x32xf32>
    %164 = vector.broadcast %163 : vector<1x32xf32> to vector<8x32xf32>
    %165 = arith.addf %160, %164 : vector<8x32xf32>
    %c1 = arith.constant 1 : index
    %c0_70 = arith.constant 0 : index
    %166 = vector.load %arg5[%c1, %c0_70] : memref<2x32xf32, #tpu.memory_space<vmem>>, vector<1x32xf32>
    %167 = vector.shape_cast %166 : vector<1x32xf32> to vector<32xf32>
    %c1_71 = arith.constant 1 : index
    %c0_72 = arith.constant 0 : index
    %168 = vector.load %arg6[%c1_71, %c0_72] : memref<2x32xf32, #tpu.memory_space<vmem>>, vector<1x32xf32>
    %169 = vector.shape_cast %168 : vector<1x32xf32> to vector<32xf32>
    %cst_73 = arith.constant dense<0.000000e+00> : vector<8xf32>
    %170 = vector.multi_reduction <add>, %165, %cst_73 [1] : vector<8x32xf32> to vector<8xf32>
    %171 = vector.shape_cast %170 : vector<8xf32> to vector<8x1xf32>
    %cst_74 = arith.constant 3.200000e+01 : f32
    %172 = vector.broadcast %cst_74 : f32 to vector<8x1xf32>
    %173 = arith.divf %171, %172 : vector<8x1xf32>
    %174 = vector.broadcast %173 : vector<8x1xf32> to vector<8x32xf32>
    %175 = arith.subf %165, %174 : vector<8x32xf32>
    %176 = arith.mulf %175, %175 : vector<8x32xf32>
    %cst_75 = arith.constant dense<0.000000e+00> : vector<8xf32>
    %177 = vector.multi_reduction <add>, %176, %cst_75 [1] : vector<8x32xf32> to vector<8xf32>
    %178 = vector.shape_cast %177 : vector<8xf32> to vector<8x1xf32>
    %cst_76 = arith.constant 3.200000e+01 : f32
    %179 = vector.broadcast %cst_76 : f32 to vector<8x1xf32>
    %180 = arith.divf %178, %179 : vector<8x1xf32>
    %181 = vector.broadcast %173 : vector<8x1xf32> to vector<8x32xf32>
    %182 = arith.subf %165, %181 : vector<8x32xf32>
    %cst_77 = arith.constant 9.99999974E-6 : f32
    %183 = vector.broadcast %cst_77 : f32 to vector<8x1xf32>
    %184 = arith.addf %180, %183 : vector<8x1xf32>
    %185 = math.rsqrt %184 : vector<8x1xf32>
    %186 = vector.broadcast %185 : vector<8x1xf32> to vector<8x32xf32>
    %187 = arith.mulf %182, %186 : vector<8x32xf32>
    %188 = vector.shape_cast %167 : vector<32xf32> to vector<1x32xf32>
    %189 = vector.broadcast %188 : vector<1x32xf32> to vector<8x32xf32>
    %190 = arith.mulf %187, %189 : vector<8x32xf32>
    %191 = vector.shape_cast %169 : vector<32xf32> to vector<1x32xf32>
    %192 = vector.broadcast %191 : vector<1x32xf32> to vector<8x32xf32>
    %193 = arith.addf %190, %192 : vector<8x32xf32>
    %c1_78 = arith.constant 1 : index
    %c0_79 = arith.constant 0 : index
    %c0_80 = arith.constant 0 : index
    %194 = vector.load %arg7[%c1_78, %c0_79, %c0_80] : memref<2x32x96xf32, #tpu.memory_space<vmem>>, vector<1x32x96xf32>
    %195 = vector.shape_cast %194 : vector<1x32x96xf32> to vector<32x96xf32>
    %cst_81 = arith.constant dense<0.000000e+00> : vector<8x96xf32>
    %196 = tpu.matmul %193, %195, %cst_81 {dimension_numbers = #tpu.dot_dimension_numbers<[1], [0], [0], [1], [0, 0, 1, 1], [], []>, precision = #tpu.contract_precision<fp32>} : vector<8x32xf32>, vector<32x96xf32>, vector<8x96xf32> -> vector<8x96xf32>
    %c1_82 = arith.constant 1 : index
    %c0_83 = arith.constant 0 : index
    %197 = vector.load %arg8[%c1_82, %c0_83] : memref<2x96xf32, #tpu.memory_space<vmem>>, vector<1x96xf32>
    %198 = vector.shape_cast %197 : vector<1x96xf32> to vector<96xf32>
    %199 = vector.shape_cast %198 : vector<96xf32> to vector<1x96xf32>
    %200 = vector.broadcast %199 : vector<1x96xf32> to vector<8x96xf32>
    %201 = arith.addf %196, %200 : vector<8x96xf32>
    %202 = vector.extract_strided_slice %201 {offsets = [0, 0], sizes = [8, 8], strides = [1, 1]} : vector<8x96xf32> to vector<8x8xf32>
    %203 = vector.extract_strided_slice %201 {offsets = [0, 32], sizes = [8, 8], strides = [1, 1]} : vector<8x96xf32> to vector<8x8xf32>
    %204 = vector.extract_strided_slice %201 {offsets = [0, 64], sizes = [8, 8], strides = [1, 1]} : vector<8x96xf32> to vector<8x8xf32>
    %cst_84 = arith.constant dense<0.000000e+00> : vector<8x8xf32>
    %205 = tpu.matmul %202, %203, %cst_84 {dimension_numbers = #tpu.dot_dimension_numbers<[1], [1], [0], [0], [0, 0, 1, 0], [], []>, precision = #tpu.contract_precision<fp32>} : vector<8x8xf32>, vector<8x8xf32>, vector<8x8xf32> -> vector<8x8xf32>
    %c0_85 = arith.constant 0 : index
    %c0_86 = arith.constant 0 : index
    %206 = vector.load %arg3[%c0_85, %c0_86] : memref<8x8xf32, #tpu.memory_space<vmem>>, vector<8x8xf32>
    %207 = arith.addf %205, %206 : vector<8x8xf32>
    %cst_87 = arith.constant dense<0xFF800000> : vector<8xf32>
    %208 = vector.multi_reduction <maximumf>, %207, %cst_87 [1] : vector<8x8xf32> to vector<8xf32>
    %209 = vector.shape_cast %208 : vector<8xf32> to vector<8x1xf32>
    %210 = vector.broadcast %209 : vector<8x1xf32> to vector<8x8xf32>
    %211 = arith.subf %207, %210 : vector<8x8xf32>
    %212 = math.exp %211 : vector<8x8xf32>
    %cst_88 = arith.constant dense<0.000000e+00> : vector<8xf32>
    %213 = vector.multi_reduction <add>, %212, %cst_88 [1] : vector<8x8xf32> to vector<8xf32>
    %214 = vector.shape_cast %213 : vector<8xf32> to vector<8x1xf32>
    %215 = vector.broadcast %214 : vector<8x1xf32> to vector<8x8xf32>
    %216 = arith.divf %212, %215 : vector<8x8xf32>
    %cst_89 = arith.constant dense<0.000000e+00> : vector<8x8xf32>
    %217 = tpu.matmul %216, %204, %cst_89 {dimension_numbers = #tpu.dot_dimension_numbers<[1], [0], [0], [1], [0, 0, 1, 1], [], []>, precision = #tpu.contract_precision<fp32>} : vector<8x8xf32>, vector<8x8xf32>, vector<8x8xf32> -> vector<8x8xf32>
    %218 = vector.extract_strided_slice %201 {offsets = [0, 8], sizes = [8, 8], strides = [1, 1]} : vector<8x96xf32> to vector<8x8xf32>
    %219 = vector.extract_strided_slice %201 {offsets = [0, 40], sizes = [8, 8], strides = [1, 1]} : vector<8x96xf32> to vector<8x8xf32>
    %220 = vector.extract_strided_slice %201 {offsets = [0, 72], sizes = [8, 8], strides = [1, 1]} : vector<8x96xf32> to vector<8x8xf32>
    %cst_90 = arith.constant dense<0.000000e+00> : vector<8x8xf32>
    %221 = tpu.matmul %218, %219, %cst_90 {dimension_numbers = #tpu.dot_dimension_numbers<[1], [1], [0], [0], [0, 0, 1, 0], [], []>, precision = #tpu.contract_precision<fp32>} : vector<8x8xf32>, vector<8x8xf32>, vector<8x8xf32> -> vector<8x8xf32>
    %c0_91 = arith.constant 0 : index
    %c0_92 = arith.constant 0 : index
    %222 = vector.load %arg3[%c0_91, %c0_92] : memref<8x8xf32, #tpu.memory_space<vmem>>, vector<8x8xf32>
    %223 = arith.addf %221, %222 : vector<8x8xf32>
    %cst_93 = arith.constant dense<0xFF800000> : vector<8xf32>
    %224 = vector.multi_reduction <maximumf>, %223, %cst_93 [1] : vector<8x8xf32> to vector<8xf32>
    %225 = vector.shape_cast %224 : vector<8xf32> to vector<8x1xf32>
    %226 = vector.broadcast %225 : vector<8x1xf32> to vector<8x8xf32>
    %227 = arith.subf %223, %226 : vector<8x8xf32>
    %228 = math.exp %227 : vector<8x8xf32>
    %cst_94 = arith.constant dense<0.000000e+00> : vector<8xf32>
    %229 = vector.multi_reduction <add>, %228, %cst_94 [1] : vector<8x8xf32> to vector<8xf32>
    %230 = vector.shape_cast %229 : vector<8xf32> to vector<8x1xf32>
    %231 = vector.broadcast %230 : vector<8x1xf32> to vector<8x8xf32>
    %232 = arith.divf %228, %231 : vector<8x8xf32>
    %cst_95 = arith.constant dense<0.000000e+00> : vector<8x8xf32>
    %233 = tpu.matmul %232, %220, %cst_95 {dimension_numbers = #tpu.dot_dimension_numbers<[1], [0], [0], [1], [0, 0, 1, 1], [], []>, precision = #tpu.contract_precision<fp32>} : vector<8x8xf32>, vector<8x8xf32>, vector<8x8xf32> -> vector<8x8xf32>
    %234 = vector.extract_strided_slice %201 {offsets = [0, 16], sizes = [8, 8], strides = [1, 1]} : vector<8x96xf32> to vector<8x8xf32>
    %235 = vector.extract_strided_slice %201 {offsets = [0, 48], sizes = [8, 8], strides = [1, 1]} : vector<8x96xf32> to vector<8x8xf32>
    %236 = vector.extract_strided_slice %201 {offsets = [0, 80], sizes = [8, 8], strides = [1, 1]} : vector<8x96xf32> to vector<8x8xf32>
    %cst_96 = arith.constant dense<0.000000e+00> : vector<8x8xf32>
    %237 = tpu.matmul %234, %235, %cst_96 {dimension_numbers = #tpu.dot_dimension_numbers<[1], [1], [0], [0], [0, 0, 1, 0], [], []>, precision = #tpu.contract_precision<fp32>} : vector<8x8xf32>, vector<8x8xf32>, vector<8x8xf32> -> vector<8x8xf32>
    %c0_97 = arith.constant 0 : index
    %c0_98 = arith.constant 0 : index
    %238 = vector.load %arg3[%c0_97, %c0_98] : memref<8x8xf32, #tpu.memory_space<vmem>>, vector<8x8xf32>
    %239 = arith.addf %237, %238 : vector<8x8xf32>
    %cst_99 = arith.constant dense<0xFF800000> : vector<8xf32>
    %240 = vector.multi_reduction <maximumf>, %239, %cst_99 [1] : vector<8x8xf32> to vector<8xf32>
    %241 = vector.shape_cast %240 : vector<8xf32> to vector<8x1xf32>
    %242 = vector.broadcast %241 : vector<8x1xf32> to vector<8x8xf32>
    %243 = arith.subf %239, %242 : vector<8x8xf32>
    %244 = math.exp %243 : vector<8x8xf32>
    %cst_100 = arith.constant dense<0.000000e+00> : vector<8xf32>
    %245 = vector.multi_reduction <add>, %244, %cst_100 [1] : vector<8x8xf32> to vector<8xf32>
    %246 = vector.shape_cast %245 : vector<8xf32> to vector<8x1xf32>
    %247 = vector.broadcast %246 : vector<8x1xf32> to vector<8x8xf32>
    %248 = arith.divf %244, %247 : vector<8x8xf32>
    %cst_101 = arith.constant dense<0.000000e+00> : vector<8x8xf32>
    %249 = tpu.matmul %248, %236, %cst_101 {dimension_numbers = #tpu.dot_dimension_numbers<[1], [0], [0], [1], [0, 0, 1, 1], [], []>, precision = #tpu.contract_precision<fp32>} : vector<8x8xf32>, vector<8x8xf32>, vector<8x8xf32> -> vector<8x8xf32>
    %250 = vector.extract_strided_slice %201 {offsets = [0, 24], sizes = [8, 8], strides = [1, 1]} : vector<8x96xf32> to vector<8x8xf32>
    %251 = vector.extract_strided_slice %201 {offsets = [0, 56], sizes = [8, 8], strides = [1, 1]} : vector<8x96xf32> to vector<8x8xf32>
    %252 = vector.extract_strided_slice %201 {offsets = [0, 88], sizes = [8, 8], strides = [1, 1]} : vector<8x96xf32> to vector<8x8xf32>
    %cst_102 = arith.constant dense<0.000000e+00> : vector<8x8xf32>
    %253 = tpu.matmul %250, %251, %cst_102 {dimension_numbers = #tpu.dot_dimension_numbers<[1], [1], [0], [0], [0, 0, 1, 0], [], []>, precision = #tpu.contract_precision<fp32>} : vector<8x8xf32>, vector<8x8xf32>, vector<8x8xf32> -> vector<8x8xf32>
    %c0_103 = arith.constant 0 : index
    %c0_104 = arith.constant 0 : index
    %254 = vector.load %arg3[%c0_103, %c0_104] : memref<8x8xf32, #tpu.memory_space<vmem>>, vector<8x8xf32>
    %255 = arith.addf %253, %254 : vector<8x8xf32>
    %cst_105 = arith.constant dense<0xFF800000> : vector<8xf32>
    %256 = vector.multi_reduction <maximumf>, %255, %cst_105 [1] : vector<8x8xf32> to vector<8xf32>
    %257 = vector.shape_cast %256 : vector<8xf32> to vector<8x1xf32>
    %258 = vector.broadcast %257 : vector<8x1xf32> to vector<8x8xf32>
    %259 = arith.subf %255, %258 : vector<8x8xf32>
    %260 = math.exp %259 : vector<8x8xf32>
    %cst_106 = arith.constant dense<0.000000e+00> : vector<8xf32>
    %261 = vector.multi_reduction <add>, %260, %cst_106 [1] : vector<8x8xf32> to vector<8xf32>
    %262 = vector.shape_cast %261 : vector<8xf32> to vector<8x1xf32>
    %263 = vector.broadcast %262 : vector<8x1xf32> to vector<8x8xf32>
    %264 = arith.divf %260, %263 : vector<8x8xf32>
    %cst_107 = arith.constant dense<0.000000e+00> : vector<8x8xf32>
    %265 = tpu.matmul %264, %252, %cst_107 {dimension_numbers = #tpu.dot_dimension_numbers<[1], [0], [0], [1], [0, 0, 1, 1], [], []>, precision = #tpu.contract_precision<fp32>} : vector<8x8xf32>, vector<8x8xf32>, vector<8x8xf32> -> vector<8x8xf32>
    %266 = tpu.concatenate %217, %233, %249, %265 in 1 : vector<8x8xf32>, vector<8x8xf32>, vector<8x8xf32>, vector<8x8xf32> -> vector<8x32xf32>
    %c1_108 = arith.constant 1 : index
    %c0_109 = arith.constant 0 : index
    %c0_110 = arith.constant 0 : index
    %267 = vector.load %arg9[%c1_108, %c0_109, %c0_110] : memref<2x32x32xf32, #tpu.memory_space<vmem>>, vector<1x32x32xf32>
    %268 = vector.shape_cast %267 : vector<1x32x32xf32> to vector<32x32xf32>
    %cst_111 = arith.constant dense<0.000000e+00> : vector<8x32xf32>
    %269 = tpu.matmul %266, %268, %cst_111 {dimension_numbers = #tpu.dot_dimension_numbers<[1], [0], [0], [1], [0, 0, 1, 1], [], []>, precision = #tpu.contract_precision<fp32>} : vector<8x32xf32>, vector<32x32xf32>, vector<8x32xf32> -> vector<8x32xf32>
    %270 = arith.addf %165, %269 : vector<8x32xf32>
    %c1_112 = arith.constant 1 : index
    %c0_113 = arith.constant 0 : index
    %271 = vector.load %arg10[%c1_112, %c0_113] : memref<2x32xf32, #tpu.memory_space<vmem>>, vector<1x32xf32>
    %272 = vector.shape_cast %271 : vector<1x32xf32> to vector<32xf32>
    %273 = vector.shape_cast %272 : vector<32xf32> to vector<1x32xf32>
    %274 = vector.broadcast %273 : vector<1x32xf32> to vector<8x32xf32>
    %275 = arith.addf %270, %274 : vector<8x32xf32>
    %c1_114 = arith.constant 1 : index
    %c0_115 = arith.constant 0 : index
    %276 = vector.load %arg11[%c1_114, %c0_115] : memref<2x32xf32, #tpu.memory_space<vmem>>, vector<1x32xf32>
    %277 = vector.shape_cast %276 : vector<1x32xf32> to vector<32xf32>
    %c1_116 = arith.constant 1 : index
    %c0_117 = arith.constant 0 : index
    %278 = vector.load %arg12[%c1_116, %c0_117] : memref<2x32xf32, #tpu.memory_space<vmem>>, vector<1x32xf32>
    %279 = vector.shape_cast %278 : vector<1x32xf32> to vector<32xf32>
    %cst_118 = arith.constant dense<0.000000e+00> : vector<8xf32>
    %280 = vector.multi_reduction <add>, %275, %cst_118 [1] : vector<8x32xf32> to vector<8xf32>
    %281 = vector.shape_cast %280 : vector<8xf32> to vector<8x1xf32>
    %cst_119 = arith.constant 3.200000e+01 : f32
    %282 = vector.broadcast %cst_119 : f32 to vector<8x1xf32>
    %283 = arith.divf %281, %282 : vector<8x1xf32>
    %284 = vector.broadcast %283 : vector<8x1xf32> to vector<8x32xf32>
    %285 = arith.subf %275, %284 : vector<8x32xf32>
    %286 = arith.mulf %285, %285 : vector<8x32xf32>
    %cst_120 = arith.constant dense<0.000000e+00> : vector<8xf32>
    %287 = vector.multi_reduction <add>, %286, %cst_120 [1] : vector<8x32xf32> to vector<8xf32>
    %288 = vector.shape_cast %287 : vector<8xf32> to vector<8x1xf32>
    %cst_121 = arith.constant 3.200000e+01 : f32
    %289 = vector.broadcast %cst_121 : f32 to vector<8x1xf32>
    %290 = arith.divf %288, %289 : vector<8x1xf32>
    %291 = vector.broadcast %283 : vector<8x1xf32> to vector<8x32xf32>
    %292 = arith.subf %275, %291 : vector<8x32xf32>
    %cst_122 = arith.constant 9.99999974E-6 : f32
    %293 = vector.broadcast %cst_122 : f32 to vector<8x1xf32>
    %294 = arith.addf %290, %293 : vector<8x1xf32>
    %295 = math.rsqrt %294 : vector<8x1xf32>
    %296 = vector.broadcast %295 : vector<8x1xf32> to vector<8x32xf32>
    %297 = arith.mulf %292, %296 : vector<8x32xf32>
    %298 = vector.shape_cast %277 : vector<32xf32> to vector<1x32xf32>
    %299 = vector.broadcast %298 : vector<1x32xf32> to vector<8x32xf32>
    %300 = arith.mulf %297, %299 : vector<8x32xf32>
    %301 = vector.shape_cast %279 : vector<32xf32> to vector<1x32xf32>
    %302 = vector.broadcast %301 : vector<1x32xf32> to vector<8x32xf32>
    %303 = arith.addf %300, %302 : vector<8x32xf32>
    %c1_123 = arith.constant 1 : index
    %c0_124 = arith.constant 0 : index
    %c0_125 = arith.constant 0 : index
    %304 = vector.load %arg13[%c1_123, %c0_124, %c0_125] : memref<2x32x128xf32, #tpu.memory_space<vmem>>, vector<1x32x128xf32>
    %305 = vector.shape_cast %304 : vector<1x32x128xf32> to vector<32x128xf32>
    %cst_126 = arith.constant dense<0.000000e+00> : vector<8x128xf32>
    %306 = tpu.matmul %303, %305, %cst_126 {dimension_numbers = #tpu.dot_dimension_numbers<[1], [0], [0], [1], [0, 0, 1, 1], [], []>, precision = #tpu.contract_precision<fp32>} : vector<8x32xf32>, vector<32x128xf32>, vector<8x128xf32> -> vector<8x128xf32>
    %c1_127 = arith.constant 1 : index
    %c0_128 = arith.constant 0 : index
    %307 = vector.load %arg14[%c1_127, %c0_128] : memref<2x128xf32, #tpu.memory_space<vmem>>, vector<1x128xf32>
    %308 = vector.shape_cast %307 : vector<1x128xf32> to vector<128xf32>
    %309 = vector.shape_cast %308 : vector<128xf32> to vector<1x128xf32>
    %310 = vector.broadcast %309 : vector<1x128xf32> to vector<8x128xf32>
    %311 = arith.addf %306, %310 : vector<8x128xf32>
    %cst_129 = arith.constant 1.702000e+00 : f32
    %312 = vector.broadcast %cst_129 : f32 to vector<8x128xf32>
    %313 = arith.mulf %312, %311 : vector<8x128xf32>
    %314 = arith.negf %313 : vector<8x128xf32>
    %315 = math.exp %314 : vector<8x128xf32>
    %cst_130 = arith.constant 1.000000e+00 : f32
    %316 = vector.broadcast %cst_130 : f32 to vector<8x128xf32>
    %317 = arith.addf %316, %315 : vector<8x128xf32>
    %318 = arith.divf %316, %317 : vector<8x128xf32>
    %319 = arith.mulf %311, %318 : vector<8x128xf32>
    %c1_131 = arith.constant 1 : index
    %c0_132 = arith.constant 0 : index
    %c0_133 = arith.constant 0 : index
    %320 = vector.load %arg15[%c1_131, %c0_132, %c0_133] : memref<2x128x32xf32, #tpu.memory_space<vmem>>, vector<1x128x32xf32>
    %321 = vector.shape_cast %320 : vector<1x128x32xf32> to vector<128x32xf32>
    %cst_134 = arith.constant dense<0.000000e+00> : vector<8x32xf32>
    %322 = tpu.matmul %319, %321, %cst_134 {dimension_numbers = #tpu.dot_dimension_numbers<[1], [0], [0], [1], [0, 0, 1, 1], [], []>, precision = #tpu.contract_precision<fp32>} : vector<8x128xf32>, vector<128x32xf32>, vector<8x32xf32> -> vector<8x32xf32>
    %323 = arith.addf %275, %322 : vector<8x32xf32>
    %c1_135 = arith.constant 1 : index
    %c0_136 = arith.constant 0 : index
    %324 = vector.load %arg16[%c1_135, %c0_136] : memref<2x32xf32, #tpu.memory_space<vmem>>, vector<1x32xf32>
    %325 = vector.shape_cast %324 : vector<1x32xf32> to vector<32xf32>
    %326 = vector.shape_cast %325 : vector<32xf32> to vector<1x32xf32>
    %327 = vector.broadcast %326 : vector<1x32xf32> to vector<8x32xf32>
    %328 = arith.addf %323, %327 : vector<8x32xf32>
    %c0_137 = arith.constant 0 : index
    %c0_138 = arith.constant 0 : index
    %329 = vector.load %arg17[%c0_137, %c0_138] : memref<1x32xf32, #tpu.memory_space<vmem>>, vector<1x32xf32>
    %330 = vector.shape_cast %329 : vector<1x32xf32> to vector<32xf32>
    %c0_139 = arith.constant 0 : index
    %c0_140 = arith.constant 0 : index
    %331 = vector.load %arg18[%c0_139, %c0_140] : memref<1x32xf32, #tpu.memory_space<vmem>>, vector<1x32xf32>
    %332 = vector.shape_cast %331 : vector<1x32xf32> to vector<32xf32>
    %cst_141 = arith.constant dense<0.000000e+00> : vector<8xf32>
    %333 = vector.multi_reduction <add>, %328, %cst_141 [1] : vector<8x32xf32> to vector<8xf32>
    %334 = vector.shape_cast %333 : vector<8xf32> to vector<8x1xf32>
    %cst_142 = arith.constant 3.200000e+01 : f32
    %335 = vector.broadcast %cst_142 : f32 to vector<8x1xf32>
    %336 = arith.divf %334, %335 : vector<8x1xf32>
    %337 = vector.broadcast %336 : vector<8x1xf32> to vector<8x32xf32>
    %338 = arith.subf %328, %337 : vector<8x32xf32>
    %339 = arith.mulf %338, %338 : vector<8x32xf32>
    %cst_143 = arith.constant dense<0.000000e+00> : vector<8xf32>
    %340 = vector.multi_reduction <add>, %339, %cst_143 [1] : vector<8x32xf32> to vector<8xf32>
    %341 = vector.shape_cast %340 : vector<8xf32> to vector<8x1xf32>
    %cst_144 = arith.constant 3.200000e+01 : f32
    %342 = vector.broadcast %cst_144 : f32 to vector<8x1xf32>
    %343 = arith.divf %341, %342 : vector<8x1xf32>
    %344 = vector.broadcast %336 : vector<8x1xf32> to vector<8x32xf32>
    %345 = arith.subf %328, %344 : vector<8x32xf32>
    %cst_145 = arith.constant 9.99999974E-6 : f32
    %346 = vector.broadcast %cst_145 : f32 to vector<8x1xf32>
    %347 = arith.addf %343, %346 : vector<8x1xf32>
    %348 = math.rsqrt %347 : vector<8x1xf32>
    %349 = vector.broadcast %348 : vector<8x1xf32> to vector<8x32xf32>
    %350 = arith.mulf %345, %349 : vector<8x32xf32>
    %351 = vector.shape_cast %330 : vector<32xf32> to vector<1x32xf32>
    %352 = vector.broadcast %351 : vector<1x32xf32> to vector<8x32xf32>
    %353 = arith.mulf %350, %352 : vector<8x32xf32>
    %354 = vector.shape_cast %332 : vector<32xf32> to vector<1x32xf32>
    %355 = vector.broadcast %354 : vector<1x32xf32> to vector<8x32xf32>
    %356 = arith.addf %353, %355 : vector<8x32xf32>
    %c0_146 = arith.constant 0 : index
    %c0_147 = arith.constant 0 : index
    %357 = vector.load %arg4[%c0_146, %c0_147] : memref<8x8xf32, #tpu.memory_space<vmem>>, vector<8x8xf32>
    %cst_148 = arith.constant dense<0.000000e+00> : vector<8x32xf32>
    %358 = tpu.matmul %357, %356, %cst_148 {dimension_numbers = #tpu.dot_dimension_numbers<[1], [0], [0], [1], [0, 0, 1, 1], [], []>, precision = #tpu.contract_precision<fp32>} : vector<8x8xf32>, vector<8x32xf32>, vector<8x32xf32> -> vector<8x32xf32>
    %c0_149 = arith.constant 0 : index
    %c0_150 = arith.constant 0 : index
    %359 = vector.load %arg19[%c0_149, %c0_150] : memref<32x128xf32, #tpu.memory_space<vmem>>, vector<32x128xf32>
    %cst_151 = arith.constant dense<0.000000e+00> : vector<8x128xf32>
    %360 = tpu.matmul %358, %359, %cst_151 {dimension_numbers = #tpu.dot_dimension_numbers<[1], [0], [0], [1], [0, 0, 1, 1], [], []>, precision = #tpu.contract_precision<fp32>} : vector<8x32xf32>, vector<32x128xf32>, vector<8x128xf32> -> vector<8x128xf32>
    %c0_152 = arith.constant 0 : index
    %c0_153 = arith.constant 0 : index
    %361 = vector.load %arg20[%c0_152, %c0_153] : memref<1x128xf32, #tpu.memory_space<vmem>>, vector<1x128xf32>
    %362 = vector.shape_cast %361 : vector<1x128xf32> to vector<128xf32>
    %363 = vector.shape_cast %362 : vector<128xf32> to vector<1x128xf32>
    %364 = vector.broadcast %363 : vector<1x128xf32> to vector<8x128xf32>
    %365 = arith.addf %360, %364 : vector<8x128xf32>
    %c0_154 = arith.constant 0 : index
    %c0_155 = arith.constant 0 : index
    %366 = vector.load %arg21[%c0_154, %c0_155] : memref<8x128xf32, #tpu.memory_space<vmem>>, vector<8x128xf32>
    tpu.vector_store %arg21[%c0_154, %c0_155], %365 {strides = array<i32>} : memref<8x128xf32, #tpu.memory_space<vmem>>, vector<8x128xf32>,
    return
  }
  func.func @transform_0(%arg0: i32) -> (i32, i32) {
    %c0_i32 = arith.constant 0 : i32
    %c0_i32_0 = arith.constant 0 : i32
    return %arg0, %c0_i32 : i32, i32
  }
  func.func @transform_1(%arg0: i32) -> (i32, i32) {
    %c0_i32 = arith.constant 0 : i32
    %c0_i32_0 = arith.constant 0 : i32
    %c0_i32_1 = arith.constant 0 : i32
    return %c0_i32, %c0_i32_0 : i32, i32
  }
  func.func @transform_2(%arg0: i32) -> (i32, i32) {
    %c0_i32 = arith.constant 0 : i32
    %c0_i32_0 = arith.constant 0 : i32
    %c0_i32_1 = arith.constant 0 : i32
    return %c0_i32, %c0_i32_0 : i32, i32
  }
  func.func @transform_3(%arg0: i32) -> (i32, i32) {
    %c0_i32 = arith.constant 0 : i32
    %c0_i32_0 = arith.constant 0 : i32
    return %arg0, %c0_i32 : i32, i32
  }
  func.func @transform_4(%arg0: i32) -> (i32, i32) {
    %c0_i32 = arith.constant 0 : i32
    %c0_i32_0 = arith.constant 0 : i32
    %c0_i32_1 = arith.constant 0 : i32
    return %c0_i32, %c0_i32_0 : i32, i32
  }
  func.func @transform_5(%arg0: i32) -> (i32, i32) {
    %c0_i32 = arith.constant 0 : i32
    %c0_i32_0 = arith.constant 0 : i32
    %c0_i32_1 = arith.constant 0 : i32
    return %c0_i32, %c0_i32_0 : i32, i32
  }
  func.func @transform_6(%arg0: i32) -> (i32, i32, i32) {
    %c0_i32 = arith.constant 0 : i32
    %c0_i32_0 = arith.constant 0 : i32
    %c0_i32_1 = arith.constant 0 : i32
    %c0_i32_2 = arith.constant 0 : i32
    return %c0_i32, %c0_i32_0, %c0_i32_1 : i32, i32, i32
  }
  func.func @transform_7(%arg0: i32) -> (i32, i32) {
    %c0_i32 = arith.constant 0 : i32
    %c0_i32_0 = arith.constant 0 : i32
    %c0_i32_1 = arith.constant 0 : i32
    return %c0_i32, %c0_i32_0 : i32, i32
  }
  func.func @transform_8(%arg0: i32) -> (i32, i32, i32) {
    %c0_i32 = arith.constant 0 : i32
    %c0_i32_0 = arith.constant 0 : i32
    %c0_i32_1 = arith.constant 0 : i32
    %c0_i32_2 = arith.constant 0 : i32
    return %c0_i32, %c0_i32_0, %c0_i32_1 : i32, i32, i32
  }
  func.func @transform_9(%arg0: i32) -> (i32, i32) {
    %c0_i32 = arith.constant 0 : i32
    %c0_i32_0 = arith.constant 0 : i32
    %c0_i32_1 = arith.constant 0 : i32
    return %c0_i32, %c0_i32_0 : i32, i32
  }
  func.func @transform_10(%arg0: i32) -> (i32, i32) {
    %c0_i32 = arith.constant 0 : i32
    %c0_i32_0 = arith.constant 0 : i32
    %c0_i32_1 = arith.constant 0 : i32
    return %c0_i32, %c0_i32_0 : i32, i32
  }
  func.func @transform_11(%arg0: i32) -> (i32, i32) {
    %c0_i32 = arith.constant 0 : i32
    %c0_i32_0 = arith.constant 0 : i32
    %c0_i32_1 = arith.constant 0 : i32
    return %c0_i32, %c0_i32_0 : i32, i32
  }
  func.func @transform_12(%arg0: i32) -> (i32, i32, i32) {
    %c0_i32 = arith.constant 0 : i32
    %c0_i32_0 = arith.constant 0 : i32
    %c0_i32_1 = arith.constant 0 : i32
    %c0_i32_2 = arith.constant 0 : i32
    return %c0_i32, %c0_i32_0, %c0_i32_1 : i32, i32, i32
  }
  func.func @transform_13(%arg0: i32) -> (i32, i32) {
    %c0_i32 = arith.constant 0 : i32
    %c0_i32_0 = arith.constant 0 : i32
    %c0_i32_1 = arith.constant 0 : i32
    return %c0_i32, %c0_i32_0 : i32, i32
  }
  func.func @transform_14(%arg0: i32) -> (i32, i32, i32) {
    %c0_i32 = arith.constant 0 : i32
    %c0_i32_0 = arith.constant 0 : i32
    %c0_i32_1 = arith.constant 0 : i32
    %c0_i32_2 = arith.constant 0 : i32
    return %c0_i32, %c0_i32_0, %c0_i32_1 : i32, i32, i32
  }
  func.func @transform_15(%arg0: i32) -> (i32, i32) {
    %c0_i32 = arith.constant 0 : i32
    %c0_i32_0 = arith.constant 0 : i32
    %c0_i32_1 = arith.constant 0 : i32
    return %c0_i32, %c0_i32_0 : i32, i32
  }
  func.func @transform_16(%arg0: i32) -> (i32, i32) {
    %c0_i32 = arith.constant 0 : i32
    %c0_i32_0 = arith.constant 0 : i32
    %c0_i32_1 = arith.constant 0 : i32
    return %c0_i32, %c0_i32_0 : i32, i32
  }
  func.func @transform_17(%arg0: i32) -> (i32, i32) {
    %c0_i32 = arith.constant 0 : i32
    %c0_i32_0 = arith.constant 0 : i32
    %c0_i32_1 = arith.constant 0 : i32
    return %c0_i32, %c0_i32_0 : i32, i32
  }
  func.func @transform_18(%arg0: i32) -> (i32, i32) {
    %c0_i32 = arith.constant 0 : i32
    %c0_i32_0 = arith.constant 0 : i32
    %c0_i32_1 = arith.constant 0 : i32
    return %c0_i32, %c0_i32_0 : i32, i32
  }
  func.func @transform_19(%arg0: i32) -> (i32, i32) {
    %c0_i32 = arith.constant 0 : i32
    %c0_i32_0 = arith.constant 0 : i32
    %c0_i32_1 = arith.constant 0 : i32
    return %c0_i32, %c0_i32_0 : i32, i32
  }
  func.func @transform_20(%arg0: i32) -> (i32, i32) {
    %c0_i32 = arith.constant 0 : i32
    %c0_i32_0 = arith.constant 0 : i32
    return %arg0, %c0_i32 : i32, i32
  }
}

</mosaic_0001>

<bundles_post_ra>
// kernel: text_transformer_forward.1
= control target key start
LH: loop header
LB: loop body
LE: loop exit
PB: predicated region body
PF: predicated region fallthrough
CT: control target
= control target key end

     0   :  { %s17969_s0 = inlined_call_operand.vmem [shape: f32[16,32], index: 0, kind: input, shape index: {}]   ;;  %s17970_s1 = inlined_call_operand.vmem [shape: f32[8,32], index: 1, kind: input, shape index: {}]   ;;  %s17971_s2 = inlined_call_operand.vmem [shape: f32[8,8], index: 2, kind: input, shape index: {}]   ;;  %s17972_s3 = inlined_call_operand.vmem [shape: f32[16,8], index: 3, kind: input, shape index: {}]   ;;  %s17973_s4 = inlined_call_operand.vmem [shape: f32[2,32], index: 4, kind: input, shape index: {}]   ;;  %s17974_s5 = inlined_call_operand.vmem [shape: f32[2,32], index: 5, kind: input, shape index: {}]   ;;  %s17975_s6 = inlined_call_operand.vmem [shape: f32[2,32,96], index: 6, kind: input, shape index: {}]   ;;  %s17976_s7 = inlined_call_operand.vmem [shape: f32[2,96], index: 7, kind: input, shape index: {}]   ;;  %s17977_s8 = inlined_call_operand.vmem [shape: f32[2,32,32], index: 8, kind: input, shape index: {}]   ;;  %s17978_s9 = inlined_call_operand.vmem [shape: f32[2,32], index: 9, kind: input, shape index: {}]   ;;  %s17979_s10 = inlined_call_operand.vmem [shape: f32[2,32], index: 10, kind: input, shape index: {}]   ;;  %s17980_s11 = inlined_call_operand.vmem [shape: f32[2,32], index: 11, kind: input, shape index: {}]   ;;  %s17981_s12 = inlined_call_operand.vmem [shape: f32[2,32,128], index: 12, kind: input, shape index: {}]   ;;  %s17982_s13 = inlined_call_operand.vmem [shape: f32[2,128], index: 13, kind: input, shape index: {}]   ;;  %s17983_s14 = inlined_call_operand.vmem [shape: f32[2,128,32], index: 14, kind: input, shape index: {}]   ;;  %s17984_s15 = inlined_call_operand.vmem [shape: f32[2,32], index: 15, kind: input, shape index: {}]   ;;  %s17985_s16 = inlined_call_operand.vmem [shape: f32[1,32], index: 16, kind: input, shape index: {}]   ;;  %s17986_s17 = inlined_call_operand.vmem [shape: f32[1,32], index: 17, kind: input, shape index: {}]   ;;  %s17987_s18 = inlined_call_operand.vmem [shape: f32[32,128], index: 18, kind: input, shape index: {}]   ;;  %s17988_s19 = inlined_call_operand.vmem [shape: f32[1,128], index: 19, kind: input, shape index: {}]   ;;  %s17989_s20 = inlined_call_operand.vmem [shape: f32[16,128], index: 20, kind: output, shape index: {}]  }
   0x1   :  { %18003 = sst [smem:[#allocation2_spill]] %s17969_s0 }
   0x2   :  { %18004 = sst [smem:[#allocation3_spill]] %s17970_s1  ;;  %s16540_s1 = smov 0  }
   0x3   :  { %18005 = sst [smem:[#allocation4_spill]] %s17971_s2 }
   0x4   :  { %18006 = sst [smem:[#allocation5_spill]] %s17972_s3 }
   0x5   :  { %18007 = sst [smem:[#allocation6_spill]] %s17973_s4 }
   0x6 LB: > { %s13493_s22 = sadd.s32 4294967295, %s16416_s1   ;;  %p13497_p0 = scmp.ge.s32.totalorder %s16416_s1, 1  ;;  %s16416_s1 = sphi %s16540_s1, %s30_s1  }
   0x7   : > { %p570_p1 = scmp.lt.s32.totalorder %s16416_s1, 3 }
   0x9   : > { %p571_p2 = pnand %p13497_p0, %p570_p1 }
   0xa   : > { %p630_p3 = scmp.lt.s32.totalorder (!%p571_p2), %s13493_s22, 1  ;;  %s18008_s25 = sld [smem:[#allocation3_spill]] (!%p571_p2)  ;;  %vm647_vm0 = vcmask (!%p571_p2), 261120   ;;  %v672_v9 = vld [vmem:[%s17975_s6] sm:$0xff] (!%p571_p2)  ;;  %v673_v10 = vld [vmem:[%s17975_s6 + $0x8] sm:$0xff] (!%p571_p2)  ;;  %v674_v11 = vld [vmem:[%s17975_s6 + $0x10] sm:$0xff] (!%p571_p2) }
   0xb   : > { %574 = sbr.rel (%p571_p2) target bundleno = 6909 (0x1afd), region = 100  ;;  %s18009_s27 = sld [smem:[#allocation2_spill]] (!%p571_p2)  ;;  %v16418_v12 = vmov (!%p571_p2), 0.0|0.0   ;;  %v685_v13 = vand.u32 (!%p571_p2), 4294901760, %v672_v9  ;;  %v688_v14 = vand.u32 (!%p571_p2), 4294901760, %v673_v10  ;;  %v675_v15 = vld [vmem:[%s17975_s6 + $0x18] sm:$0xff] (!%p571_p2) }
   0xc   : > { %15562 = vmatprep.subr.bf16.mxu0 (!%p571_p2), %v16418_v12  ;;  %v691_v16 = vand.u32 (!%p571_p2), 4294901760, %v674_v11  ;;  %vm16419_vm1 = vmmov (!%p571_p2), 0   ;;  %v16420_v17 = vmov (!%p571_p2), 0.0   ;;  %v694_v18 = vand.u32 (!%p571_p2), 4294901760, %v675_v15  ;;  %s18010_s26 = sld [smem:[#allocation6_spill]] (!%p571_p2)  ;;  %s16421_s30 = smov (!%p571_p2), 88  }
   0xd   : > { %14178 = vmatprep.mubr.msk.f32.mxu0 (!%p571_p2), %vm16419_vm1, %v16420_v17  ;;  %14241 = vmatprep.subr.mxu1 (!%p571_p2), %v16420_v17  ;;  %v16581_v19 = vpack.c.bf16 (!%p571_p2), %v688_v14, %v685_v13  ;;  %v765_v20 = vsub.f32 (!%p571_p2), %v672_v9, %v685_v13  ;;  %v772_v21 = vsub.f32 (!%p571_p2), %v673_v10, %v688_v14  ;;  %v13502_v49 = vld [vmem:[%s17974_s5] ss:$0 sm:$0xff] (!%p571_p2)  ;;  %s16422_s0 = smov (!%p571_p2), 96   ;;  %s16423_s21 = smov (!%p571_p2), 120   ;;  %vm1173_vm2 = vcmask (!%p571_p2), 64512  }
   0xe   : > { %14243 = vmatprep.mubr.msk.f32.mxu1 (!%p571_p2), %vm16419_vm1, %v16420_v17  ;;  %v779_v22 = vsub.f32 (!%p571_p2), %v674_v11, %v691_v16  ;;  %v786_v23 = vsub.f32 (!%p571_p2), %v675_v15, %v694_v18  ;;  %v16584_v24 = vpack.c.bf16 (!%p571_p2), %v694_v18, %v691_v16  ;;  %v13503_v58 = vld [vmem:[%s17976_s7] ss:$0 sm:$0xff] (!%p571_p2)  ;;  %s18001_s24 = smov (!%p571_p2), 80   ;;  %s18000_s2 = smov (!%p571_p2), 104   ;;  %vm4851_vm3 = vcmask (!%p571_p2), 130048  }
   0xf   : > { %15564 = vmatpush3.bf16.msra.mxu0 (!%p571_p2), %v16581_v19  ;;  %v766_v25 = vand.u32 (!%p571_p2), 4294901760, %v765_v20  ;;  %v773_v26 = vand.u32 (!%p571_p2), 4294901760, %v772_v21  ;;  %v15575_v39 = vpack.c.bf16 (!%p571_p2), %v772_v21, %v765_v20  ;;  %s17995_s4 = smov (!%p571_p2), 64   ;;  %s17994_s29 = smov (!%p571_p2), 56   ;;  %vm4853_vm4 = vcmask (!%p571_p2), 195584  }
  0x10   : > { %v643_v0 = vld [vmem:[%s18008_s25] sm:$0xff] (!%p571_p2)  ;;  %15565 = vmatprep.subr.bf16.mxu0 (!%p571_p2), %v16418_v12  ;;  %v780_v31 = vand.u32 (!%p571_p2), 4294901760, %v779_v22  ;;  %v787_v32 = vand.u32 (!%p571_p2), 4294901760, %v786_v23  ;;  %v15578_v40 = vpack.c.bf16 (!%p571_p2), %v786_v23, %v779_v22  ;;  %s17996_s25 = smov (!%p571_p2), 72   ;;  %s17993_s3 = smov (!%p571_p2), 48  }
  0x11   : > { %v767_v27 = vsub.f32 (!%p571_p2), %v765_v20, %v766_v25  ;;  %v774_v28 = vsub.f32 (!%p571_p2), %v772_v21, %v773_v26  ;;  %v15587_v41 = vpack.c.bf16 (!%p571_p2), %v773_v26, %v766_v25 }
  0x12   : > { %s18025_s22 = smov (!%p630_p3, %s13493_s22), 1  ;;  %v781_v34 = vsub.f32 %v779_v22, %v780_v31  ;;  %v788_v35 = vsub.f32 %v786_v23, %v787_v32  ;;  %v15590_v42 = vpack.c.bf16 %v787_v32, %v780_v31  ;;  %v13501_v47 = vld [vmem:[%s18010_s26] ss:$0 sm:$0xff] }
  0x13   : > { %s16548_s23 = sshll.u32 %s18025_s22, 3  ;;  %15567 = vmatpush3.bf16.msra.mxu0 %v16584_v24  ;;  %v768_v29 = vand.u32 4294901760, %v767_v27  ;;  %v775_v30 = vand.u32 4294901760, %v774_v28  ;;  %s18002_s22 = smov 112  }
  0x14   : > { %s633_s28 = scalar_lea.vmem %s18009_s27, %s16548_s23  ;;  %15568 = vmatprep.subr.bf16.mxu0 %v16418_v12  ;;  %v782_v36 = vand.u32 4294901760, %v781_v34  ;;  %v789_v37 = vand.u32 4294901760, %v788_v35  ;;  %s17992_s27 = smov 40  }
  0x15   : > { %v642_v1 = vld [vmem:[%s633_s28] sm:$0xff]  ;;  %v15569_v33 = vpack.c.bf16 %v775_v30, %v768_v29  ;;  %s18011_s28 = sld [smem:[#allocation4_spill]] }
  0x16   : > { %v16557_v2 = vadd.f32 %v643_v0, %v642_v1  ;;  %v15572_v38 = vpack.c.bf16 %v789_v37, %v782_v36 }
  0x18   : > { %v648_v3 = vsel %vm647_vm0, %v16557_v2, 0.0 }
  0x19   : > { %649 = vadd.xlane.f32.xlu0 %v648_v3 }
  0xa6   : > { %v650_v4 = vpop.xlane.xlu0 %649 }
  0xa7   : > { %v652_v5 = vmul.f32 0.03125, %v650_v4 }
  0xa9   : > { %v653_v6 = vsub.f32 %v16557_v2, %v652_v5 }
  0xab   : > { %v654_v7 = vmul.f32 %v653_v6, %v653_v6 }
  0xad   : > { %v655_v8 = vsel %vm647_vm0, %v654_v7, 0.0 }
  0xae   : > { %656 = vadd.xlane.f32.xlu0 %v655_v8 }
 0x13b   : > { %v657_v43 = vpop.xlane.xlu0 %656 }
 0x13c   : > { %v658_v44 = vmul.f32 0.03125, %v657_v43 }
 0x13e   : > { %v659_v45 = vadd.f32 1e-05, %v658_v44 }
 0x140   : > { %16359 = vrsqrt.f32 %v659_v45 }
 0x14a   : > { %v16360_v46 = vpop.eup %16359 }
 0x14b   : > { %v661_v48 = vmul.f32 %v16360_v46, %v653_v6 }
 0x14d   : > { %v666_v50 = vmul.f32 %v13501_v47, %v661_v48 }
 0x14f   : > { %v671_v51 = vadd.f32 %v13502_v49, %v666_v50 }
 0x151   : > { %v682_v52 = vsel %vm647_vm0, %v671_v51, 0 }
 0x152   : > { %v753_v53 = vand.u32 4294901760, %v682_v52 }
 0x154   : > { %v754_v54 = vsub.f32 %v682_v52, %v753_v53 }
 0x156   : > { %v755_v55 = vand.u32 4294901760, %v754_v54 }
 0x158   : > { %v756_v56 = vsub.f32 %v754_v54, %v755_v55 }
 0x15a   : > { %v757_v57 = vand.u32 4294901760, %v756_v56 }
 0x15c   : > { %14179 = vmatmul.mubr.f32.vlgmr.msra.gmra.mrb[0].mxu0 %v757_v57 }
 0x15d   : > { %15570 = vmatpush3.bf16.msra.mxu0 %v15569_v33  ;;  %14189 = vmatprep.mubr.msk.f32.mxu0 %vm16419_vm1, %v16420_v17 }
 0x15e   : > { %15571 = vmatprep.subr.bf16.mxu0 %v16418_v12 }
 0x161   : > { %15573 = vmatpush3.bf16.msra.mxu0 %v15572_v38 }
 0x162   : > { %15574 = vmatprep.subr.bf16.mxu0 %v16418_v12 }
 0x164   : > { %14190 = vmatmul.mubr.f32.vlgmr.msra.gmra.mrb[0].mxu0 %v753_v53 }
 0x165   : > { %15576 = vmatpush3.bf16.msra.mxu0 %v15575_v39  ;;  %14200 = vmatprep.mubr.msk.f32.mxu0 %vm16419_vm1, %v16420_v17 }
 0x166   : > { %15577 = vmatprep.subr.bf16.mxu0 %v16418_v12 }
 0x169   : > { %15579 = vmatpush3.bf16.msra.mxu0 %v15578_v40 }
 0x16a   : > { %15580 = vmatprep.subr.bf16.mxu0 %v16418_v12 }
 0x16c   : > { %14201 = vmatmul.mubr.f32.vlgmr.msra.gmra.mrb[0].mxu0 %v754_v54 }
 0x16d   : > { %15582 = vmatpush3.bf16.msra.mxu0 %v16581_v19  ;;  %14211 = vmatprep.mubr.msk.f32.mxu0 %vm16419_vm1, %v16420_v17 }
 0x16e   : > { %15583 = vmatprep.subr.bf16.mxu0 %v16418_v12 }
 0x171   : > { %15585 = vmatpush3.bf16.msra.mxu0 %v16584_v24 }
 0x172   : > { %15586 = vmatprep.subr.bf16.mxu0 %v16418_v12 }
 0x174   : > { %14212 = vmatmul.mubr.f32.vlgmr.msra.gmra.mrb[0].mxu0 %v755_v55 }
 0x175   : > { %15588 = vmatpush3.bf16.msra.mxu0 %v15587_v41  ;;  %14222 = vmatprep.mubr.msk.f32.mxu0 %vm16419_vm1, %v16420_v17 }
 0x176   : > { %15589 = vmatprep.subr.bf16.mxu0 %v16418_v12 }
 0x179   : > { %15591 = vmatpush3.bf16.msra.mxu0 %v15590_v42 }
 0x17a   : > { %15592 = vmatprep.subr.bf16.mxu0 %v16418_v12 }
 0x17c   : > { %14223 = vmatmul.mubr.f32.vlgmr.msra.gmra.mrb[0].mxu0 %v753_v53 }
 0x17d   : > { %15594 = vmatpush3.bf16.msra.mxu0 %v16581_v19  ;;  %14233 = vmatprep.mubr.msk.f32.mxu0 %vm16419_vm1, %v16420_v17 }
 0x17e   : > { %15595 = vmatprep.subr.bf16.mxu0 %v16418_v12 }
 0x181   : > { %15597 = vmatpush3.bf16.msra.mxu0 %v16584_v24 }
 0x182   : > { %14236 = vmatprep.subr.mxu0 %v16420_v17 }
 0x184   : > { %14234 = vmatmul.mubr.f32.vlgmr.msra.gmra.mrb[0].mxu0 %v753_v53 }
 0x185   : > { %14238 = vmatprep.mubr.msk.f32.mxu0 %vm16419_vm1, %v16420_v17 }
 0x257   : > { %v1165_v59 = vpop.f32.mrb[0].mxu0 }
 0x258   : > { %v16625_v60 = vadd.f32 %v13503_v58, %v1165_v59  ;;  %v14235_v61 = vpop.f32.mrb[1].mxu0  ;;  %v1169_v58 = vld [vmem:[%s18011_s28] sm:$0xff] }
 0x25a   : > { %2089 = vrot.lane.b32.xlu0 %v16625_v60, %s16421_s30  ;;  %1171 = vrot.lane.b32.xlu1 %v16625_v60, %s16422_s0  ;;  %v1174_v62 = vsel %vm1173_vm2, %v16625_v60, 0 }
 0x25b   : > { %v16643_v63 = vand.u32 4294901760, %v1174_v62 }
 0x25d   : > { %v1245_v0 = vsub.f32 %v1174_v62, %v16643_v63 }
 0x25e   : > { %2087 = vrot.lane.b32.xlu1 %v16625_v60, %s16423_s21 }
 0x25f   : > { %v1246_v1 = vand.u32 4294901760, %v1245_v0 }
 0x261   : > { %v1247_v7 = vsub.f32 %v1245_v0, %v1246_v1 }
 0x262   : > { %3004 = vrot.lane.b32.xlu1 %v16625_v60, %s18002_s22  ;;  %s18014_s22 = smov 104  }
 0x263   : > { %v1248_v15 = vand.u32 4294901760, %v1247_v7 }
 0x266   : > { %3006 = vrot.lane.b32.xlu1 %v16625_v60, %s18001_s24  ;;  %s18015_s24 = smov 72  }
 0x26a   : > { %3921 = vrot.lane.b32.xlu1 %v16625_v60, %s18000_s2  ;;  %s18017_s2 = smov 56  }
 0x26e   : > { %3923 = vrot.lane.b32.xlu1 %v16625_v60, %s17996_s25  ;;  %s18012_s25 = smov 112  }
 0x2cc   : > { %v2090_v3 = vpop.permute.xlu0 %2089  ;;  %v1172_v4 = vpop.permute.xlu1 %1171 }
 0x2cd   : > { %v2093_v5 = vsel %vm1173_vm2, %v2090_v3, 0  ;;  %v1176_v6 = vsel %vm1173_vm2, %v1172_v4, 0 }
 0x2ce   : > { %v16648_v8 = vand.u32 4294901760, %v2093_v5  ;;  %v1179_v9 = vand.u32 4294901760, %v1176_v6 }
 0x2d0   : > { %v2173_v10 = vsub.f32 %v2093_v5, %v16648_v8  ;;  %v1256_v11 = vsub.f32 %v1176_v6, %v1179_v9  ;;  %14237 = vmatpush3.xpose.msra.mxu0 %v1179_v9  ;;  %v2088_v13 = vpop.permute.xlu1 %2087 }
 0x2d1   : > { %v2091_v14 = vsel %vm1173_vm2, %v2088_v13, 0  ;;  %14296 = vmatprep.subr.mxu0 %v16420_v17 }
 0x2d2   : > { %v16653_v16 = vand.u32 4294901760, %v2091_v14  ;;  %v1257_v18 = vand.u32 4294901760, %v1256_v11  ;;  %v2174_v19 = vand.u32 4294901760, %v2173_v10 }
 0x2d3   : > { %14239 = vmatmul.mubr.f32.vlgmr.msra.gmra.mrb[2].mxu0 %v1248_v15 }
 0x2d4   : > { %v2162_v20 = vsub.f32 %v2091_v14, %v16653_v16  ;;  %14297 = vmatpush3.xpose.msra.mxu0 %v16648_v8  ;;  %v1258_v21 = vsub.f32 %v1256_v11, %v1257_v18  ;;  %14298 = vmatprep.mubr.msk.f32.mxu0 %vm16419_vm1, %v16420_v17  ;;  %v2175_v24 = vsub.f32 %v2173_v10, %v2174_v19  ;;  %v3005_v28 = vpop.permute.xlu1 %3004 }
 0x2d5   : > { %14301 = vmatprep.subr.mxu0 %v16420_v17  ;;  %v3008_v30 = vsel %vm1173_vm2, %v3005_v28, 0 }
 0x2d6   : > { %v2163_v22 = vand.u32 4294901760, %v2162_v20  ;;  %v1259_v23 = vand.u32 4294901760, %v1258_v21  ;;  %v2176_v27 = vand.u32 4294901760, %v2175_v24  ;;  %v3078_v32 = vand.u32 4294901760, %v3008_v30 }
 0x2d8   : > { %v2164_v25 = vsub.f32 %v2162_v20, %v2163_v22  ;;  %14242 = vmatpush3.xpose.msra.mxu1 %v1259_v23  ;;  %v3007_v29 = vpop.permute.xlu1 %3006  ;;  %v3079_v34 = vsub.f32 %v3008_v30, %v3078_v32 }
 0x2d9   : > { %14246 = vmatprep.subr.mxu1 %v16420_v17  ;;  %v3010_v31 = vsel %vm1173_vm2, %v3007_v29, 0 }
 0x2da   : > { %v2165_v26 = vand.u32 4294901760, %v2164_v25  ;;  %v3013_v33 = vand.u32 4294901760, %v3010_v31  ;;  %v3080_v36 = vand.u32 4294901760, %v3079_v34 }
 0x2db   : > { %14244 = vmatmul.mubr.f32.vlgmr.msra.gmra.mrb[0].mxu1 %v16643_v63 }
 0x2dc   : > { %14247 = vmatpush3.xpose.msra.mxu1 %v1256_v11  ;;  %14299 = vmatmul.mubr.f32.vlgmr.msra.gmra.mrb[4].mxu0 %v2165_v26  ;;  %v3090_v35 = vsub.f32 %v3010_v31, %v3013_v33  ;;  %v3081_v38 = vsub.f32 %v3079_v34, %v3080_v36  ;;  %v3922_v42 = vpop.permute.xlu1 %3921 }
 0x2dd   : > { %14302 = vmatpush3.xpose.msra.mxu0 %v2176_v27  ;;  %14248 = vmatprep.mubr.msk.f32.mxu1 %vm16419_vm1, %v16420_v17  ;;  %v3925_v44 = vsel %vm1173_vm2, %v3922_v42, 0 }
 0x2de   : > { %14251 = vmatprep.subr.mxu1 %v16420_v17  ;;  %14303 = vmatprep.mubr.msk.f32.mxu0 %vm16419_vm1, %v16420_v17  ;;  %v3091_v37 = vand.u32 4294901760, %v3090_v35  ;;  %v3082_v40 = vand.u32 4294901760, %v3081_v38  ;;  %v3995_v46 = vand.u32 4294901760, %v3925_v44 }
 0x2df   : > { %14306 = vmatprep.subr.mxu0 %v16420_v17 }
 0x2e0   : > { %v3092_v39 = vsub.f32 %v3090_v35, %v3091_v37  ;;  %v3924_v43 = vpop.permute.xlu1 %3923  ;;  %v3996_v48 = vsub.f32 %v3925_v44, %v3995_v46 }
 0x2e1   : > { %v3927_v45 = vsel %vm1173_vm2, %v3924_v43, 0 }
 0x2e2   : > { %v3093_v41 = vand.u32 4294901760, %v3092_v39  ;;  %v3930_v47 = vand.u32 4294901760, %v3927_v45  ;;  %v3997_v50 = vand.u32 4294901760, %v3996_v48 }
 0x2e3   : > { %14249 = vmatmul.mubr.f32.vlgmr.msra.gmra.mrb[0].mxu1 %v1245_v0 }
 0x2e4   : > { %14252 = vmatpush3.xpose.msra.mxu1 %v1179_v9  ;;  %14304 = vmatmul.mubr.f32.vlgmr.msra.gmra.mrb[4].mxu0 %v16653_v16  ;;  %v4007_v49 = vsub.f32 %v3927_v45, %v3930_v47  ;;  %v3998_v52 = vsub.f32 %v3996_v48, %v3997_v50 }
 0x2e5   : > { %14307 = vmatpush3.xpose.msra.mxu0 %v2173_v10  ;;  %14253 = vmatprep.mubr.msk.f32.mxu1 %vm16419_vm1, %v16420_v17 }
 0x2e6   : > { %14256 = vmatprep.subr.mxu1 %v16420_v17  ;;  %14308 = vmatprep.mubr.msk.f32.mxu0 %vm16419_vm1, %v16420_v17  ;;  %v4008_v51 = vand.u32 4294901760, %v4007_v49  ;;  %v3999_v54 = vand.u32 4294901760, %v3998_v52 }
 0x2e7   : > { %14311 = vmatprep.subr.mxu0 %v16420_v17 }
 0x2e8   : > { %v4009_v53 = vsub.f32 %v4007_v49, %v4008_v51 }
 0x2ea   : > { %v4010_v55 = vand.u32 4294901760, %v4009_v53 }
 0x2eb   : > { %14254 = vmatmul.mubr.f32.vlgmr.msra.gmra.mrb[0].mxu1 %v1246_v1 }
 0x2ec   : > { %14257 = vmatpush3.xpose.msra.mxu1 %v1257_v18  ;;  %14309 = vmatmul.mubr.f32.vlgmr.msra.gmra.mrb[4].mxu0 %v2162_v20 }
 0x2ed   : > { %14312 = vmatpush3.xpose.msra.mxu0 %v16648_v8  ;;  %14258 = vmatprep.mubr.msk.f32.mxu1 %vm16419_vm1, %v16420_v17 }
 0x2ee   : > { %14261 = vmatprep.subr.mxu1 %v16420_v17  ;;  %14313 = vmatprep.mubr.msk.f32.mxu0 %vm16419_vm1, %v16420_v17 }
 0x2ef   : > { %14316 = vmatprep.subr.mxu0 %v16420_v17 }
 0x2f3   : > { %14259 = vmatmul.mubr.f32.vlgmr.msra.gmra.mrb[0].mxu1 %v16643_v63 }
 0x2f4   : > { %14262 = vmatpush3.xpose.msra.mxu1 %v1179_v9  ;;  %14314 = vmatmul.mubr.f32.vlgmr.msra.gmra.mrb[4].mxu0 %v2163_v22 }
 0x2f5   : > { %14317 = vmatpush3.xpose.msra.mxu0 %v2174_v19  ;;  %14263 = vmatprep.mubr.msk.f32.mxu1 %vm16419_vm1, %v16420_v17 }
 0x2f6   : > { %14318 = vmatprep.mubr.msk.f32.mxu0 %vm16419_vm1, %v16420_v17  ;;  %14321 = vmatprep.subr.mxu0 %v16420_v17 }
 0x2f7   : > { %14266 = vmatprep.subr.mxu1 %v16420_v17 }
 0x2fb   : > { %14264 = vmatmul.mubr.f32.vlgmr.msra.gmra.mrb[0].mxu1 %v16643_v63 }
 0x2fc   : > { %14319 = vmatmul.mubr.f32.vlgmr.msra.gmra.mrb[4].mxu0 %v16653_v16  ;;  %14268 = vmatprep.mubr.msk.f32.mxu1 %vm16419_vm1, %v16420_v17 }
 0x2fd   : > { %14322 = vmatpush3.xpose.msra.mxu0 %v16648_v8  ;;  %14323 = vmatprep.mubr.msk.f32.mxu0 %vm16419_vm1, %v16420_v17 }
 0x2fe   : > { %14356 = vmatprep.subr.mxu0 %v16420_v17 }
 0x304   : > { %14324 = vmatmul.mubr.f32.vlgmr.msra.gmra.mrb[4].mxu0 %v16653_v16 }
 0x305   : > { %14357 = vmatpush3.xpose.msra.mxu0 %v3013_v33  ;;  %14358 = vmatprep.mubr.msk.f32.mxu0 %vm16419_vm1, %v16420_v17 }
 0x306   : > { %14361 = vmatprep.subr.mxu0 %v16420_v17 }
 0x308   : > { %14359 = vmatmul.mubr.f32.vlgmr.msra.gmra.mrb[6].mxu0 %v3082_v40 }
 0x309   : > { %14362 = vmatpush3.xpose.msra.mxu0 %v3093_v41  ;;  %14363 = vmatprep.mubr.msk.f32.mxu0 %vm16419_vm1, %v16420_v17 }
 0x30a   : > { %14366 = vmatprep.subr.mxu0 %v16420_v17 }
 0x310   : > { %14364 = vmatmul.mubr.f32.vlgmr.msra.gmra.mrb[6].mxu0 %v3078_v32 }
 0x311   : > { %14367 = vmatpush3.xpose.msra.mxu0 %v3090_v35  ;;  %14368 = vmatprep.mubr.msk.f32.mxu0 %vm16419_vm1, %v16420_v17 }
 0x312   : > { %14371 = vmatprep.subr.mxu0 %v16420_v17 }
 0x318   : > { %14369 = vmatmul.mubr.f32.vlgmr.msra.gmra.mrb[6].mxu0 %v3079_v34 }
 0x319   : > { %14372 = vmatpush3.xpose.msra.mxu0 %v3013_v33  ;;  %14373 = vmatprep.mubr.msk.f32.mxu0 %vm16419_vm1, %v16420_v17 }
 0x31a   : > { %14376 = vmatprep.subr.mxu0 %v16420_v17 }
 0x320   : > { %14374 = vmatmul.mubr.f32.vlgmr.msra.gmra.mrb[6].mxu0 %v3080_v36 }
 0x321   : > { %14377 = vmatpush3.xpose.msra.mxu0 %v3091_v37  ;;  %14378 = vmatprep.mubr.msk.f32.mxu0 %vm16419_vm1, %v16420_v17 }
 0x322   : > { %14381 = vmatprep.subr.mxu0 %v16420_v17 }
 0x328   : > { %14379 = vmatmul.mubr.f32.vlgmr.msra.gmra.mrb[6].mxu0 %v3078_v32 }
 0x329   : > { %14382 = vmatpush3.xpose.msra.mxu0 %v3013_v33  ;;  %14383 = vmatprep.mubr.msk.f32.mxu0 %vm16419_vm1, %v16420_v17 }
 0x32a   : > { %14416 = vmatprep.subr.mxu0 %v16420_v17 }
 0x330   : > { %14384 = vmatmul.mubr.f32.vlgmr.msra.gmra.mrb[6].mxu0 %v3078_v32 }
 0x331   : > { %14417 = vmatpush3.xpose.msra.mxu0 %v3930_v47  ;;  %14418 = vmatprep.mubr.msk.f32.mxu0 %vm16419_vm1, %v16420_v17 }
 0x332   : > { %14421 = vmatprep.subr.mxu0 %v16420_v17 }
 0x334   : > { %14419 = vmatmul.mubr.f32.vlgmr.msra.gmra.mrb[8].mxu0 %v3999_v54 }
 0x335   : > { %14422 = vmatpush3.xpose.msra.mxu0 %v4010_v55  ;;  %14423 = vmatprep.mubr.msk.f32.mxu0 %vm16419_vm1, %v16420_v17 }
 0x336   : > { %14426 = vmatprep.subr.mxu0 %v16420_v17 }
 0x33c   : > { %14424 = vmatmul.mubr.f32.vlgmr.msra.gmra.mrb[8].mxu0 %v3995_v46 }
 0x33d   : > { %14427 = vmatpush3.xpose.msra.mxu0 %v4007_v49  ;;  %14428 = vmatprep.mubr.msk.f32.mxu0 %vm16419_vm1, %v16420_v17 }
 0x33e   : > { %14431 = vmatprep.subr.mxu0 %v16420_v17 }
 0x344   : > { %14429 = vmatmul.mubr.f32.vlgmr.msra.gmra.mrb[8].mxu0 %v3996_v48 }
 0x345   : > { %14432 = vmatpush3.xpose.msra.mxu0 %v3930_v47  ;;  %14433 = vmatprep.mubr.msk.f32.mxu0 %vm16419_vm1, %v16420_v17 }
 0x346   : > { %14436 = vmatprep.subr.mxu0 %v16420_v17 }
 0x34c   : > { %14434 = vmatmul.mubr.f32.vlgmr.msra.gmra.mrb[8].mxu0 %v3997_v50 }
 0x34d   : > { %14437 = vmatpush3.xpose.msra.mxu0 %v4008_v51  ;;  %14438 = vmatprep.mubr.msk.f32.mxu0 %vm16419_vm1, %v16420_v17 }
 0x34e   : > { %14441 = vmatprep.subr.mxu0 %v16420_v17 }
 0x354   : > { %14439 = vmatmul.mubr.f32.vlgmr.msra.gmra.mrb[8].mxu0 %v3995_v46 }
 0x355   : > { %14442 = vmatpush3.xpose.msra.mxu0 %v3930_v47  ;;  %14443 = vmatprep.mubr.msk.f32.mxu0 %vm16419_vm1, %v16420_v17 }
 0x356   : > { %15598 = vmatprep.subr.bf16.mxu0 %v16418_v12 }
 0x35c   : > { %14444 = vmatmul.mubr.f32.vlgmr.msra.gmra.mrb[8].mxu0 %v3995_v46 }
 0x35d   : > { %14484 = vmatprep.mubr.msk.f32.mxu0 %vm16419_vm1, %v16420_v17 }
 0x3a6   : > { %v1250_v56 = vpop.f32.mrb[2].mxu0 }
 0x3a7   : > { %v14240_v57 = vpop.f32.mrb[3].mxu0  ;;  %v1251_v59 = vadd.f32 %v1250_v56, %v1169_v58 }
 0x3ce   : > { %v1620_v61 = vpop.f32.mrb[0].mxu1 }
 0x3cf   : > { %v16104_v62 = vadd.f32 %v1620_v61, %v1251_v59  ;;  %v14265_v63 = vpop.f32.mrb[1].mxu1 }
 0x3d1   : > { %v1624_v0 = vsel %vm1173_vm2, %v16104_v62, -inf }
 0x3d2   : > { %1625 = vmax.xlane.f32.xlu1 %v1624_v0 }
 0x3d7   : > { %v2537_v1 = vpop.f32.mrb[4].mxu0 }
 0x3d8   : > { %v16105_v3 = vadd.f32 %v2537_v1, %v1169_v58  ;;  %v14325_v4 = vpop.f32.mrb[5].mxu0 }
 0x3da   : > { %v2541_v5 = vsel %vm1173_vm2, %v16105_v3, -inf }
 0x3db   : > { %2542 = vmax.xlane.f32.xlu0 %v2541_v5 }
 0x403   : > { %v3454_v6 = vpop.f32.mrb[6].mxu0 }
 0x404   : > { %v16106_v7 = vadd.f32 %v3454_v6, %v1169_v58  ;;  %v14385_v8 = vpop.f32.mrb[7].mxu0 }
 0x406   : > { %v3458_v9 = vsel %vm1173_vm2, %v16106_v7, -inf }
 0x407   : > { %3459 = vmax.xlane.f32.xlu0 %v3458_v9 }
 0x42f   : > { %v4371_v10 = vpop.f32.mrb[8].mxu0 }
 0x430   : > { %v14445_v11 = vpop.f32.mrb[9].mxu0  ;;  %v16107_v23 = vadd.f32 %v4371_v10, %v1169_v58 }
 0x432   : > { %v4375_v25 = vsel %vm1173_vm2, %v16107_v23, -inf }
 0x45f   : > { %v1626_v13 = vpop.xlane.xlu1 %1625 }
 0x460   : > { %v1627_v14 = vsub.f32 %v16104_v62, %v1626_v13 }
 0x462   : > { %v1628_v15 = vmul.f32 1.442695, %v1627_v14 }
 0x464   : > { %16361 = vpow2.f32 %v1628_v15 }
 0x468   : > { %v2543_v16 = vpop.xlane.xlu0 %2542 }
 0x469   : > { %v2544_v18 = vsub.f32 %v16105_v3, %v2543_v16 }
 0x46b   : > { %v2545_v19 = vmul.f32 1.442695, %v2544_v18 }
 0x46d   : > { %16363 = vpow2.f32 %v2545_v19 }
 0x46e   : > { %v16362_v20 = vpop.eup %16361 }
 0x46f   : > { %v1630_v21 = vsel %vm1173_vm2, %v16362_v20, 0.0 }
 0x470   : > { %1631 = vadd.xlane.f32.xlu1 %v1630_v21 }
 0x477   : > { %v16364_v22 = vpop.eup %16363 }
 0x478   : > { %v2547_v24 = vsel %vm1173_vm2, %v16364_v22, 0.0 }
 0x479   : > { %2548 = vadd.xlane.f32.xlu0 %v2547_v24 }
 0x47d   : > { %4376 = vmax.xlane.f32.xlu0 %v4375_v25 }
 0x481   : > { %1635 = vrot.lane.b32.xlu1 %v16625_v60, %s17995_s4  ;;  %s18013_s4 = smov 80  }
 0x493   : > { %2552 = vrot.lane.b32.xlu0 %v16625_v60, %s17994_s29  ;;  %s17999_s29 = smov 16  }
 0x494   : > { %v3460_v26 = vpop.xlane.xlu0 %3459 }
 0x495   : > { %v3461_v27 = vsub.f32 %v16106_v7, %v3460_v26 }
 0x497   : > { %v3462_v28 = vmul.f32 1.442695, %v3461_v27  ;;  %3469 = vrot.lane.b32.xlu0 %v16625_v60, %s17993_s3  ;;  %s18020_s3 = smov 8  }
 0x499   : > { %16365 = vpow2.f32 %v3462_v28 }
 0x4a3   : > { %v16755_v29 = vpop.eup %16365 }
 0x4a4   : > { %v3464_v30 = vsel %vm1173_vm2, %v16755_v29, 0.0 }
 0x4a5   : > { %3465 = vadd.xlane.f32.xlu1 %v3464_v30 }
 0x4b6   : > { %4386 = vrot.lane.b32.xlu1 %v16625_v60, %s17992_s27  ;;  %s17997_s27 = smov 8  }
 0x4fd   : > { %v1632_v31 = vpop.xlane.xlu1 %1631 }
 0x4fe   : > { %16367 = vrcp.f32 %v1632_v31 }
 0x501   : > { %v1636_v32 = vpop.permute.xlu1 %1635 }
 0x502   : > { %v1642_v33 = vand.u32 4294901760, %v1636_v32 }
 0x504   : > { %14267 = vmatpush3.msra.mxu1 %v1642_v33  ;;  %v1719_v37 = vsub.f32 %v1636_v32, %v1642_v33 }
 0x505   : > { %14271 = vmatprep.subr.mxu1 %v16420_v17 }
 0x506   : > { %v2549_v34 = vpop.xlane.xlu0 %2548  ;;  %v1720_v42 = vand.u32 4294901760, %v1719_v37 }
 0x508   : > { %v16368_v35 = vpop.eup %16367  ;;  %v1721_v45 = vsub.f32 %v1719_v37, %v1720_v42 }
 0x509   : > { %v1634_v36 = vmul.f32 %v16368_v35, %v16362_v20 }
 0x50a   : > { %v4377_v38 = vpop.xlane.xlu0 %4376  ;;  %v1722_v48 = vand.u32 4294901760, %v1721_v45 }
 0x50b   : > { %v4378_v39 = vsub.f32 %v16107_v23, %v4377_v38  ;;  %v1639_v40 = vsel %vm1173_vm2, %v1634_v36, 0 }
 0x50c   : > { %v1707_v41 = vand.u32 4294901760, %v1639_v40 }
 0x50d   : > { %v4379_v43 = vmul.f32 1.442695, %v4378_v39  ;;  %v4855_v39 = vld [vmem:[%s17977_s8] sm:$0xff] }
 0x50e   : > { %v1708_v44 = vsub.f32 %v1639_v40, %v1707_v41  ;;  %v2553_v54 = vpop.permute.xlu0 %2552  ;;  %v4856_v40 = vld [vmem:[%s17977_s8 + $0x8] sm:$0xff] }
 0x50f   : > { %16369 = vpow2.f32 %v4379_v43  ;;  %v2559_v56 = vand.u32 4294901760, %v2553_v54 }
 0x510   : > { %v1709_v60 = vand.u32 4294901760, %v1708_v44  ;;  %16371 = vrcp.f32 %v2549_v34 }
 0x511   : > { %v2636_v58 = vsub.f32 %v2553_v54, %v2559_v56 }
 0x512   : > { %v1710_v46 = vsub.f32 %v1708_v44, %v1709_v60  ;;  %v3470_v7 = vpop.permute.xlu0 %3469 }
 0x513   : > { %v2637_v61 = vand.u32 4294901760, %v2636_v58  ;;  %v3476_v9 = vand.u32 4294901760, %v3470_v7 }
 0x514   : > { %v1711_v47 = vand.u32 4294901760, %v1710_v46 }
 0x515   : > { %v2638_v63 = vsub.f32 %v2636_v58, %v2637_v61  ;;  %v3553_v11 = vsub.f32 %v3470_v7, %v3476_v9 }
 0x516   : > { %14269 = vmatmul.mubr.f32.vlgmr.msra.gmra.mrb[2].mxu1 %v1711_v47  ;;  %v4857_v47 = vld [vmem:[%s17977_s8 + $0x10] sm:$0xff] }
 0x517   : > { %14272 = vmatpush3.msra.mxu1 %v1722_v48  ;;  %14273 = vmatprep.mubr.msk.f32.mxu1 %vm16419_vm1, %v16420_v17  ;;  %v2639_v1 = vand.u32 4294901760, %v2638_v63  ;;  %v3554_v14 = vand.u32 4294901760, %v3553_v11  ;;  %v4858_v48 = vld [vmem:[%s17977_s8 + $0x18] sm:$0xff] }
 0x518   : > { %14276 = vmatprep.subr.mxu1 %v16420_v17 }
 0x519   : > { %v16766_v49 = vpop.eup %16369  ;;  %v3555_v16 = vsub.f32 %v3553_v11, %v3554_v14 }
 0x51a   : > { %v4381_v50 = vsel %vm1173_vm2, %v16766_v49, 0.0  ;;  %v16372_v51 = vpop.eup %16371 }
 0x51b   : > { %4382 = vadd.xlane.f32.xlu0 %v4381_v50  ;;  %v2551_v52 = vmul.f32 %v16372_v51, %v16364_v22  ;;  %v3556_v19 = vand.u32 4294901760, %v3555_v16  ;;  %v4872_v50 = vand.u32 4294901760, %v4858_v48 }
 0x51d   : > { %v2556_v53 = vsel %vm1173_vm2, %v2551_v52, 0 }
 0x51e   : > { %14274 = vmatmul.mubr.f32.vlgmr.msra.gmra.mrb[2].mxu1 %v1707_v41  ;;  %v2624_v55 = vand.u32 4294901760, %v2556_v53 }
 0x51f   : > { %14277 = vmatpush3.msra.mxu1 %v1719_v37  ;;  %14278 = vmatprep.mubr.msk.f32.mxu1 %vm16419_vm1, %v16420_v17 }
 0x520   : > { %14281 = vmatprep.subr.mxu1 %v16420_v17  ;;  %v2625_v57 = vsub.f32 %v2556_v53, %v2624_v55 }
 0x522   : > { %v2626_v59 = vand.u32 4294901760, %v2625_v57 }
 0x524   : > { %v2627_v62 = vsub.f32 %v2625_v57, %v2626_v59 }
 0x526   : > { %14279 = vmatmul.mubr.f32.vlgmr.msra.gmra.mrb[2].mxu1 %v1708_v44  ;;  %v2628_v0 = vand.u32 4294901760, %v2627_v62 }
 0x527   : > { %14282 = vmatpush3.msra.mxu1 %v1642_v33  ;;  %14283 = vmatprep.mubr.msk.f32.mxu1 %vm16419_vm1, %v16420_v17 }
 0x528   : > { %14286 = vmatprep.subr.mxu1 %v16420_v17 }
 0x52e   : > { %14284 = vmatmul.mubr.f32.vlgmr.msra.gmra.mrb[2].mxu1 %v1709_v60 }
 0x52f   : > { %14287 = vmatpush3.msra.mxu1 %v1720_v42  ;;  %14288 = vmatprep.mubr.msk.f32.mxu1 %vm16419_vm1, %v16420_v17  ;;  %v4866_v42 = vand.u32 4294901760, %v4856_v40 }
 0x530   : > { %14291 = vmatprep.subr.mxu1 %v16420_v17 }
 0x531   : > { %v16854_v60 = vsub.f32 %v4856_v40, %v4866_v42 }
 0x532   : > { %v3466_v3 = vpop.xlane.xlu1 %3465 }
 0x533   : > { %16373 = vrcp.f32 %v3466_v3  ;;  %v4951_v53 = vand.u32 4294901760, %v16854_v60 }
 0x536   : > { %14289 = vmatmul.mubr.f32.vlgmr.msra.gmra.mrb[2].mxu1 %v1707_v41  ;;  %v4387_v20 = vpop.permute.xlu1 %4386 }
 0x537   : > { %14292 = vmatpush3.msra.mxu1 %v1642_v33  ;;  %14293 = vmatprep.mubr.msk.f32.mxu1 %vm16419_vm1, %v16420_v17  ;;  %v4393_v21 = vand.u32 4294901760, %v4387_v20 }
 0x538   : > { %14326 = vmatprep.subr.mxu1 %v16420_v17 }
 0x539   : > { %v4470_v24 = vsub.f32 %v4387_v20, %v4393_v21 }
 0x53b   : > { %v4471_v28 = vand.u32 4294901760, %v4470_v24 }
 0x53d   : > { %v16374_v4 = vpop.eup %16373  ;;  %v4472_v31 = vsub.f32 %v4470_v24, %v4471_v28 }
 0x53e   : > { %14294 = vmatmul.mubr.f32.vlgmr.msra.gmra.mrb[2].mxu1 %v1707_v41  ;;  %v3468_v5 = vmul.f32 %v16374_v4, %v16755_v29  ;;  %v4863_v41 = vand.u32 4294901760, %v4855_v39 }
 0x53f   : > { %14327 = vmatpush3.msra.mxu1 %v2559_v56  ;;  %14328 = vmatprep.mubr.msk.f32.mxu1 %vm16419_vm1, %v16420_v17  ;;  %v4473_v34 = vand.u32 4294901760, %v4472_v31 }
 0x540   : > { %14331 = vmatprep.subr.mxu1 %v16420_v17  ;;  %v3473_v6 = vsel %vm1173_vm2, %v3468_v5, 0  ;;  %v16850_v43 = vpack.c.bf16 %v4866_v42, %v4863_v41  ;;  %v16852_v44 = vsub.f32 %v4855_v39, %v4863_v41 }
 0x541   : > { %v3541_v8 = vand.u32 4294901760, %v3473_v6 }
 0x542   : > { %14329 = vmatmul.mubr.f32.vlgmr.msra.gmra.mrb[4].mxu1 %v2628_v0  ;;  %15600 = vmatpush3.bf16.msra.mxu0 %v16850_v43  ;;  %v4944_v52 = vand.u32 4294901760, %v16852_v44 }
 0x543   : > { %14332 = vmatpush3.msra.mxu1 %v2639_v1  ;;  %14333 = vmatprep.mubr.msk.f32.mxu1 %vm16419_vm1, %v16420_v17  ;;  %v3542_v10 = vsub.f32 %v3473_v6, %v3541_v8 }
 0x544   : > { %14336 = vmatprep.subr.mxu1 %v16420_v17  ;;  %15601 = vmatprep.subr.bf16.mxu0 %v16418_v12 }
 0x545   : > { %v3543_v13 = vand.u32 4294901760, %v3542_v10 }
 0x547   : > { %v3544_v15 = vsub.f32 %v3542_v10, %v3543_v13 }
 0x549   : > { %v3545_v18 = vand.u32 4294901760, %v3544_v15 }
 0x54a   : > { %14334 = vmatmul.mubr.f32.vlgmr.msra.gmra.mrb[4].mxu1 %v2624_v55 }
 0x54b   : > { %14337 = vmatpush3.msra.mxu1 %v2636_v58  ;;  %14338 = vmatprep.mubr.msk.f32.mxu1 %vm16419_vm1, %v16420_v17 }
 0x54c   : > { %14341 = vmatprep.subr.mxu1 %v16420_v17 }
 0x552   : > { %14339 = vmatmul.mubr.f32.vlgmr.msra.gmra.mrb[4].mxu1 %v2625_v57  ;;  %v4952_v57 = vsub.f32 %v16854_v60, %v4951_v53 }
 0x553   : > { %14342 = vmatpush3.msra.mxu1 %v2559_v56  ;;  %14343 = vmatprep.mubr.msk.f32.mxu1 %vm16419_vm1, %v16420_v17 }
 0x554   : > { %14346 = vmatprep.subr.mxu1 %v16420_v17 }
 0x55a   : > { %14344 = vmatmul.mubr.f32.vlgmr.msra.gmra.mrb[4].mxu1 %v2626_v59  ;;  %v4953_v59 = vand.u32 4294901760, %v4952_v57 }
 0x55b   : > { %14347 = vmatpush3.msra.mxu1 %v2637_v61  ;;  %14348 = vmatprep.mubr.msk.f32.mxu1 %vm16419_vm1, %v16420_v17 }
 0x55c   : > { %14351 = vmatprep.subr.mxu1 %v16420_v17 }
 0x562   : > { %14349 = vmatmul.mubr.f32.vlgmr.msra.gmra.mrb[4].mxu1 %v2624_v55 }
 0x563   : > { %14352 = vmatpush3.msra.mxu1 %v2559_v56  ;;  %14353 = vmatprep.mubr.msk.f32.mxu1 %vm16419_vm1, %v16420_v17  ;;  %v4945_v56 = vsub.f32 %v16852_v44, %v4944_v52 }
 0x564   : > { %14386 = vmatprep.subr.mxu1 %v16420_v17 }
 0x565   : > { %v4946_v58 = vand.u32 4294901760, %v4945_v56 }
 0x567   : > { %v15605_v63 = vpack.c.bf16 %v4953_v59, %v4946_v58 }
 0x56a   : > { %14354 = vmatmul.mubr.f32.vlgmr.msra.gmra.mrb[4].mxu1 %v2624_v55  ;;  %v4964_v55 = vsub.f32 %v4858_v48, %v4872_v50 }
 0x56b   : > { %14387 = vmatpush3.msra.mxu1 %v3476_v9  ;;  %14388 = vmatprep.mubr.msk.f32.mxu1 %vm16419_vm1, %v16420_v17 }
 0x56c   : > { %14391 = vmatprep.subr.mxu1 %v16420_v17  ;;  %v4965_v62 = vand.u32 4294901760, %v4964_v55 }
 0x56e   : > { %14389 = vmatmul.mubr.f32.vlgmr.msra.gmra.mrb[6].mxu1 %v3545_v18  ;;  %v4966_v1 = vsub.f32 %v4964_v55, %v4965_v62 }
 0x56f   : > { %14392 = vmatpush3.msra.mxu1 %v3556_v19  ;;  %14393 = vmatprep.mubr.msk.f32.mxu1 %vm16419_vm1, %v16420_v17 }
 0x570   : > { %14396 = vmatprep.subr.mxu1 %v16420_v17  ;;  %v4967_v6 = vand.u32 4294901760, %v4966_v1 }
 0x576   : > { %14394 = vmatmul.mubr.f32.vlgmr.msra.gmra.mrb[6].mxu1 %v3541_v8 }
 0x577   : > { %14397 = vmatpush3.msra.mxu1 %v3553_v11  ;;  %14398 = vmatprep.mubr.msk.f32.mxu1 %vm16419_vm1, %v16420_v17 }
 0x578   : > { %14401 = vmatprep.subr.mxu1 %v16420_v17 }
 0x57e   : > { %14399 = vmatmul.mubr.f32.vlgmr.msra.gmra.mrb[6].mxu1 %v3542_v10  ;;  %v15623_v10 = vpack.c.bf16 %v4951_v53, %v4944_v52  ;;  %v5381_v52 = vld [vmem:[%s17981_s12 + $0x10] sm:$0xff] }
 0x57f   : > { %14402 = vmatpush3.msra.mxu1 %v3476_v9  ;;  %14403 = vmatprep.mubr.msk.f32.mxu1 %vm16419_vm1, %v16420_v17  ;;  %v5398_v56 = vand.u32 4294901760, %v5381_v52 }
 0x580   : > { %14406 = vmatprep.subr.mxu1 %v16420_v17 }
 0x586   : > { %14404 = vmatmul.mubr.f32.vlgmr.msra.gmra.mrb[6].mxu1 %v3543_v13 }
 0x587   : > { %14407 = vmatpush3.msra.mxu1 %v3554_v14  ;;  %14408 = vmatprep.mubr.msk.f32.mxu1 %vm16419_vm1, %v16420_v17 }
 0x588   : > { %14411 = vmatprep.subr.mxu1 %v16420_v17 }
 0x58e   : > { %14409 = vmatmul.mubr.f32.vlgmr.msra.gmra.mrb[6].mxu1 %v3541_v8 }
 0x58f   : > { %14412 = vmatpush3.msra.mxu1 %v3476_v9  ;;  %14413 = vmatprep.mubr.msk.f32.mxu1 %vm16419_vm1, %v16420_v17 }
 0x590   : > { %14446 = vmatprep.subr.mxu1 %v16420_v17 }
 0x596   : > { %14414 = vmatmul.mubr.f32.vlgmr.msra.gmra.mrb[6].mxu1 %v3541_v8  ;;  %v15611_v8 = vpack.c.bf16 %v16854_v60, %v16852_v44 }
 0x597   : > { %14447 = vmatpush3.msra.mxu1 %v4393_v21  ;;  %14448 = vmatprep.mubr.msk.f32.mxu1 %vm16419_vm1, %v16420_v17 }
 0x598   : > { %14451 = vmatprep.subr.mxu1 %v16420_v17 }
 0x5a8   : > { %v4383_v22 = vpop.xlane.xlu0 %4382 }
 0x5a9   : > { %16375 = vrcp.f32 %v4383_v22 }
 0x5b3   : > { %v16376_v23 = vpop.eup %16375 }
 0x5b4   : > { %v4385_v25 = vmul.f32 %v16376_v23, %v16766_v49  ;;  %v4869_v49 = vand.u32 4294901760, %v4857_v47 }
 0x5b6   : > { %v4390_v26 = vsel %vm1173_vm2, %v4385_v25, 0  ;;  %v15602_v51 = vpack.c.bf16 %v4872_v50, %v4869_v49  ;;  %v4957_v54 = vsub.f32 %v4857_v47, %v4869_v49 }
 0x5b7   : > { %v4458_v27 = vand.u32 4294901760, %v4390_v26 }
 0x5b8   : > { %15603 = vmatpush3.bf16.msra.mxu0 %v15602_v51  ;;  %v4958_v61 = vand.u32 4294901760, %v4957_v54  ;;  %v15614_v9 = vpack.c.bf16 %v4964_v55, %v4957_v54  ;;  %v5382_v55 = vld [vmem:[%s17981_s12 + $0x18] sm:$0xff] }
 0x5b9   : > { %v4459_v29 = vsub.f32 %v4390_v26, %v4458_v27  ;;  %15604 = vmatprep.subr.bf16.mxu0 %v16418_v12  ;;  %v5401_v57 = vand.u32 4294901760, %v5382_v55 }
 0x5ba   : > { %v4959_v0 = vsub.f32 %v4957_v54, %v4958_v61  ;;  %v15626_v11 = vpack.c.bf16 %v4965_v62, %v4958_v61  ;;  %v5486_v62 = vsub.f32 %v5381_v52, %v5398_v56 }
 0x5bb   : > { %v4460_v30 = vand.u32 4294901760, %v4459_v29 }
 0x5bc   : > { %v4960_v5 = vand.u32 4294901760, %v4959_v0  ;;  %v16926_v0 = vpack.c.bf16 %v5401_v57, %v5398_v56 }
 0x5bd   : > { %v4461_v32 = vsub.f32 %v4459_v29, %v4460_v30 }
 0x5be   : > { %v15608_v7 = vpack.c.bf16 %v4967_v6, %v4960_v5 }
 0x5bf   : > { %v4462_v33 = vand.u32 4294901760, %v4461_v32 }
 0x5c1   : > { %14449 = vmatmul.mubr.f32.vlgmr.msra.gmra.mrb[8].mxu1 %v4462_v33 }
 0x5c2   : > { %14452 = vmatpush3.msra.mxu1 %v4473_v34  ;;  %14453 = vmatprep.mubr.msk.f32.mxu1 %vm16419_vm1, %v16420_v17 }
 0x5c3   : > { %14456 = vmatprep.subr.mxu1 %v16420_v17 }
 0x5c9   : > { %14454 = vmatmul.mubr.f32.vlgmr.msra.gmra.mrb[8].mxu1 %v4458_v27 }
 0x5ca   : > { %14457 = vmatpush3.msra.mxu1 %v4470_v24  ;;  %14458 = vmatprep.mubr.msk.f32.mxu1 %vm16419_vm1, %v16420_v17 }
 0x5cb   : > { %14461 = vmatprep.subr.mxu1 %v16420_v17 }
 0x5d1   : > { %14459 = vmatmul.mubr.f32.vlgmr.msra.gmra.mrb[8].mxu1 %v4459_v29 }
 0x5d2   : > { %14462 = vmatpush3.msra.mxu1 %v4393_v21  ;;  %14463 = vmatprep.mubr.msk.f32.mxu1 %vm16419_vm1, %v16420_v17 }
 0x5d3   : > { %14466 = vmatprep.subr.mxu1 %v16420_v17 }
 0x5d9   : > { %14464 = vmatmul.mubr.f32.vlgmr.msra.gmra.mrb[8].mxu1 %v4460_v30 }
 0x5da   : > { %14467 = vmatpush3.msra.mxu1 %v4471_v28  ;;  %14468 = vmatprep.mubr.msk.f32.mxu1 %vm16419_vm1, %v16420_v17 }
 0x5db   : > { %14471 = vmatprep.subr.mxu1 %v16420_v17 }
 0x5e1   : > { %14469 = vmatmul.mubr.f32.vlgmr.msra.gmra.mrb[8].mxu1 %v4458_v27 }
 0x5e2   : > { %14472 = vmatpush3.msra.mxu1 %v4393_v21  ;;  %14473 = vmatprep.mubr.msk.f32.mxu1 %vm16419_vm1, %v16420_v17 }
 0x5e3   : > { %15628 = vmatprep.subr.bf16.mxu1 %v16418_v12 }
 0x5e9   : > { %14474 = vmatmul.mubr.f32.vlgmr.msra.gmra.mrb[8].mxu1 %v4458_v27 }
 0x5ea   : > { %14539 = vmatprep.mubr.msk.f32.mxu1 %vm16419_vm1, %v16420_v17  ;;  %15630 = vmatpush3.bf16.msra.mxu1 %v16850_v43 }
 0x5eb   : > { %15631 = vmatprep.subr.bf16.mxu1 %v16418_v12 }
 0x5ee   : > { %15633 = vmatpush3.bf16.msra.mxu1 %v15602_v51 }
 0x5ef   : > { %15670 = vmatprep.subr.bf16.mxu1 %v16418_v12 }
 0x611   : > { %v2083_v35 = vpop.f32.mrb[2].mxu1 }
 0x612   : > { %v14295_v36 = vpop.f32.mrb[3].mxu1 }
 0x63d   : > { %v3000_v37 = vpop.f32.mrb[4].mxu1 }
 0x63e   : > { %4839 = vrot.lane.b32.xlu0 %v3000_v37, %s17997_s27  ;;  %v14355_v38 = vpop.f32.mrb[5].mxu1  ;;  %s17998_s27 = smov 24  }
 0x669   : > { %v3917_v45 = vpop.f32.mrb[6].mxu1 }
 0x66a   : > { %4843 = vrot.lane.b32.xlu1 %v3917_v45, %s17999_s29  ;;  %v14415_v46 = vpop.f32.mrb[7].mxu1  ;;  %s18018_s29 = smov 48  }
 0x6b0   : > { %v4840_v13 = vpop.permute.xlu0 %4839 }
 0x6b1   : > { %v4850_v15 = vsel %vm1173_vm2, %v2083_v35, %v4840_v13 }
 0x6bc   : > { %v4834_v3 = vpop.f32.mrb[8].mxu1 }
 0x6bd   : > { %4847 = vrot.lane.b32.xlu1 %v4834_v3, %s17998_s27  ;;  %v14475_v4 = vpop.f32.mrb[9].mxu1  ;;  %s18019_s27 = smov 40  }
 0x6dc   : > { %v4844_v14 = vpop.permute.xlu1 %4843 }
 0x6dd   : > { %v4852_v16 = vsel %vm4851_vm3, %v4850_v15, %v4844_v14 }
 0x72f   : > { %v4848_v18 = vpop.permute.xlu1 %4847 }
 0x730   : > { %v4854_v19 = vsel %vm4853_vm4, %v4852_v16, %v4848_v18 }
 0x731   : > { %v4860_v20 = vsel %vm647_vm0, %v4854_v19, 0 }
 0x732   : > { %v4931_v21 = vand.u32 4294901760, %v4860_v20 }
 0x734   : > { %v4932_v22 = vsub.f32 %v4860_v20, %v4931_v21  ;;  %14540 = vmatmul.mubr.f32.vlgmr.msra.gmra.mrb[10].mxu1 %v4931_v21 }
 0x735   : > { %14640 = vmatprep.mubr.msk.f32.mxu1 %vm16419_vm1, %v16420_v17 }
 0x736   : > { %v4933_v23 = vand.u32 4294901760, %v4932_v22 }
 0x738   : > { %v4934_v24 = vsub.f32 %v4932_v22, %v4933_v23 }
 0x73a   : > { %v4935_v25 = vand.u32 4294901760, %v4934_v24 }
 0x73c   : > { %14485 = vmatmul.mubr.f32.vlgmr.msra.gmra.mrb[10].mxu0 %v4935_v25 }
 0x73d   : > { %15606 = vmatpush3.bf16.msra.mxu0 %v15605_v63  ;;  %14495 = vmatprep.mubr.msk.f32.mxu0 %vm16419_vm1, %v16420_v17  ;;  %v5493_v63 = vsub.f32 %v5382_v55, %v5401_v57  ;;  %v5890_v57 = vld [vmem:[%s17983_s14 + $0x30] sm:$0xff] }
 0x73e   : > { %15607 = vmatprep.subr.bf16.mxu0 %v16418_v12 }
 0x73f   : > { %v15650_v19 = vpack.c.bf16 %v5493_v63, %v5486_v62 }
 0x741   : > { %15609 = vmatpush3.bf16.msra.mxu0 %v15608_v7 }
 0x742   : > { %15610 = vmatprep.subr.bf16.mxu0 %v16418_v12 }
 0x744   : > { %14496 = vmatmul.mubr.f32.vlgmr.msra.gmra.mrb[12].mxu0 %v4931_v21 }
 0x745   : > { %15612 = vmatpush3.bf16.msra.mxu0 %v15611_v8  ;;  %14506 = vmatprep.mubr.msk.f32.mxu0 %vm16419_vm1, %v16420_v17  ;;  %v5487_v8 = vand.u32 4294901760, %v5486_v62 }
 0x746   : > { %15613 = vmatprep.subr.bf16.mxu0 %v16418_v12 }
 0x749   : > { %15615 = vmatpush3.bf16.msra.mxu0 %v15614_v9  ;;  %v5494_v9 = vand.u32 4294901760, %v5493_v63 }
 0x74a   : > { %15616 = vmatprep.subr.bf16.mxu0 %v16418_v12 }
 0x74b   : > { %v5495_v13 = vsub.f32 %v5493_v63, %v5494_v9 }
 0x74c   : > { %14507 = vmatmul.mubr.f32.vlgmr.msra.gmra.mrb[14].mxu0 %v4932_v22 }
 0x74d   : > { %15618 = vmatpush3.bf16.msra.mxu0 %v16850_v43  ;;  %14517 = vmatprep.mubr.msk.f32.mxu0 %vm16419_vm1, %v16420_v17  ;;  %v13504_v43 = vld [vmem:[%s17978_s9] ss:$0 sm:$0xff]  ;;  %v5496_v15 = vand.u32 4294901760, %v5495_v13  ;;  %v5895_v13 = vld [vmem:[%s17983_s14 + $0x58] sm:$0xff] }
 0x74e   : > { %15619 = vmatprep.subr.bf16.mxu0 %v16418_v12 }
 0x751   : > { %15621 = vmatpush3.bf16.msra.mxu0 %v15602_v51  ;;  %v5379_v51 = vld [vmem:[%s17981_s12] sm:$0xff] }
 0x752   : > { %15622 = vmatprep.subr.bf16.mxu0 %v16418_v12  ;;  %v5392_v53 = vand.u32 4294901760, %v5379_v51 }
 0x754   : > { %14518 = vmatmul.mubr.f32.vlgmr.msra.gmra.mrb[16].mxu0 %v4933_v23  ;;  %v5472_v59 = vsub.f32 %v5379_v51, %v5392_v53  ;;  %v5889_v51 = vld [vmem:[%s17983_s14 + $0x28] sm:$0xff] }
 0x755   : > { %15624 = vmatpush3.bf16.msra.mxu0 %v15623_v10  ;;  %14528 = vmatprep.mubr.msk.f32.mxu0 %vm16419_vm1, %v16420_v17 }
 0x756   : > { %15625 = vmatprep.subr.bf16.mxu0 %v16418_v12  ;;  %v5473_v1 = vand.u32 4294901760, %v5472_v59 }
 0x758   : > { %v5474_v4 = vsub.f32 %v5472_v59, %v5473_v1 }
 0x759   : > { %15627 = vmatpush3.bf16.msra.mxu0 %v15626_v11  ;;  %v5488_v11 = vsub.f32 %v5486_v62, %v5487_v8 }
 0x75a   : > { %15634 = vmatprep.subr.bf16.mxu0 %v16418_v12  ;;  %v5475_v6 = vand.u32 4294901760, %v5474_v4  ;;  %v5893_v4 = vld [vmem:[%s17983_s14 + $0x48] sm:$0xff] }
 0x75b   : > { %v5489_v14 = vand.u32 4294901760, %v5488_v11  ;;  %v5894_v11 = vld [vmem:[%s17983_s14 + $0x50] sm:$0xff] }
 0x75c   : > { %14529 = vmatmul.mubr.f32.vlgmr.msra.gmra.mrb[18].mxu0 %v4931_v21  ;;  %v15662_v21 = vpack.c.bf16 %v5494_v9, %v5487_v8 }
 0x75d   : > { %14550 = vmatprep.mubr.msk.f32.mxu0 %vm16419_vm1, %v16420_v17  ;;  %v15644_v16 = vpack.c.bf16 %v5496_v15, %v5489_v14  ;;  %v5931_v15 = vand.u32 4294901760, %v5894_v11 }
 0x807   : > { %v5343_v26 = vpop.f32.mrb[10].mxu1 }
 0x808   : > { %v14541_v27 = vpop.f32.mrb[11].mxu1 }
 0x80f   : > { %v4937_v28 = vpop.f32.mrb[10].mxu0 }
 0x810   : > { %v14486_v29 = vpop.f32.mrb[11].mxu0 }
 0x817   : > { %v5028_v30 = vpop.f32.mrb[12].mxu0 }
 0x818   : > { %v5029_v31 = vadd.f32 %v5028_v30, %v4937_v28  ;;  %v14497_v32 = vpop.f32.mrb[13].mxu0  ;;  %v13506_v28 = vld [vmem:[%s17980_s11] ss:$0 sm:$0xff] }
 0x81f   : > { %v5108_v33 = vpop.f32.mrb[14].mxu0 }
 0x820   : > { %v5109_v34 = vadd.f32 %v5108_v33, %v5029_v31  ;;  %v14508_v35 = vpop.f32.mrb[15].mxu0 }
 0x827   : > { %v5185_v36 = vpop.f32.mrb[16].mxu0 }
 0x828   : > { %v5186_v37 = vadd.f32 %v5185_v36, %v5109_v34  ;;  %v14519_v38 = vpop.f32.mrb[17].mxu0 }
 0x829   : > { %v5885_v38 = vld [vmem:[%s17983_s14 + $0x8] sm:$0xff] }
 0x82f   : > { %v5268_v39 = vpop.f32.mrb[18].mxu0 }
 0x830   : > { %v5269_v40 = vadd.f32 %v5268_v39, %v5186_v37  ;;  %v14530_v41 = vpop.f32.mrb[19].mxu0  ;;  %v5884_v37 = vld [vmem:[%s17983_s14] sm:$0xff] }
 0x831   : > { %v5901_v39 = vand.u32 4294901760, %v5884_v37 }
 0x832   : > { %v5344_v42 = vadd.f32 %v5343_v26, %v5269_v40  ;;  %v13505_v26 = vld [vmem:[%s17979_s10] ss:$0 sm:$0xff]  ;;  %v5904_v40 = vand.u32 4294901760, %v5885_v38 }
 0x833   : > { %v16970_v41 = vsub.f32 %v5884_v37, %v5901_v39 }
 0x834   : > { %v5347_v44 = vadd.f32 %v5344_v42, %v16557_v2  ;;  %v5380_v2 = vld [vmem:[%s17981_s12 + $0x8] sm:$0xff]  ;;  %v16972_v42 = vsub.f32 %v5885_v38, %v5904_v40 }
 0x835   : > { %v5395_v54 = vand.u32 4294901760, %v5380_v2 }
 0x836   : > { %v16905_v60 = vadd.f32 %v13504_v43, %v5347_v44  ;;  %v5886_v43 = vld [vmem:[%s17983_s14 + $0x10] sm:$0xff]  ;;  %v5887_v44 = vld [vmem:[%s17983_s14 + $0x18] sm:$0xff] }
 0x837   : > { %v16923_v58 = vpack.c.bf16 %v5395_v54, %v5392_v53  ;;  %v5479_v61 = vsub.f32 %v5380_v2, %v5395_v54  ;;  %v5916_v53 = vand.u32 4294901760, %v5889_v51  ;;  %v16995_v54 = vpack.c.bf16 %v5904_v40, %v5901_v39 }
 0x838   : > { %v5356_v45 = vsel %vm647_vm0, %v16905_v60, 0.0  ;;  %v5994_v39 = vand.u32 4294901760, %v16970_v41  ;;  %v6001_v40 = vand.u32 4294901760, %v16972_v42 }
 0x839   : > { %5357 = vadd.xlane.f32.xlu1 %v5356_v45  ;;  %15636 = vmatpush3.bf16.msra.mxu0 %v16923_v58  ;;  %v5480_v3 = vand.u32 4294901760, %v5479_v61  ;;  %v15647_v18 = vpack.c.bf16 %v5479_v61, %v5472_v59  ;;  %v15719_v45 = vpack.c.bf16 %v16972_v42, %v16970_v41  ;;  %v16999_v56 = vsub.f32 %v5889_v51, %v5916_v53 }
 0x83a   : > { %15637 = vmatprep.subr.bf16.mxu0 %v16418_v12  ;;  %15672 = vmatpush3.bf16.msra.mxu1 %v16995_v54 }
 0x83b   : > { %v5481_v5 = vsub.f32 %v5479_v61, %v5480_v3  ;;  %v15659_v20 = vpack.c.bf16 %v5480_v3, %v5473_v1  ;;  %v5919_v61 = vand.u32 4294901760, %v5890_v57  ;;  %15673 = vmatprep.subr.bf16.mxu1 %v16418_v12  ;;  %v5892_v3 = vld [vmem:[%s17983_s14 + $0x40] sm:$0xff] }
 0x83d   : > { %15639 = vmatpush3.bf16.msra.mxu0 %v16926_v0  ;;  %v5482_v7 = vand.u32 4294901760, %v5481_v5 }
 0x83e   : > { %15640 = vmatprep.subr.bf16.mxu0 %v16418_v12 }
 0x83f   : > { %v15641_v10 = vpack.c.bf16 %v5482_v7, %v5475_v6  ;;  %v5925_v6 = vand.u32 4294901760, %v5892_v3  ;;  %v5928_v7 = vand.u32 4294901760, %v5893_v4 }
 0x841   : > { %v17031_v9 = vsub.f32 %v5892_v3, %v5925_v6 }
 0x8c6   : > { %v5358_v46 = vpop.xlane.xlu1 %5357 }
 0x8c7   : > { %v5359_v47 = vmul.f32 0.03125, %v5358_v46  ;;  %v5907_v46 = vand.u32 4294901760, %v5886_v43 }
 0x8c9   : > { %v5360_v48 = vsub.f32 %v16905_v60, %v5359_v47  ;;  %v5910_v47 = vand.u32 4294901760, %v5887_v44 }
 0x8cb   : > { %v5361_v49 = vmul.f32 %v5360_v48, %v5360_v48  ;;  %v17012_v63 = vpack.c.bf16 %v5910_v47, %v5907_v46 }
 0x8cd   : > { %v5362_v50 = vsel %vm647_vm0, %v5361_v49, 0.0  ;;  %v16984_v49 = vsub.f32 %v5887_v44, %v5910_v47  ;;  %15675 = vmatpush3.bf16.msra.mxu1 %v17012_v63  ;;  %v5995_v47 = vsub.f32 %v16970_v41, %v5994_v39 }
 0x8ce   : > { %5363 = vadd.xlane.f32.xlu0 %v5362_v50  ;;  %v5888_v50 = vld [vmem:[%s17983_s14 + $0x20] sm:$0xff]  ;;  %15676 = vmatprep.subr.bf16.mxu1 %v16418_v12 }
 0x8cf   : > { %v5913_v52 = vand.u32 4294901760, %v5888_v50 }
 0x8d1   : > { %v16997_v55 = vsub.f32 %v5888_v50, %v5913_v52  ;;  %v17029_v8 = vpack.c.bf16 %v5916_v53, %v5913_v52  ;;  %v6002_v50 = vsub.f32 %v16972_v42, %v6001_v40 }
 0x8d3   : > { %v15725_v59 = vpack.c.bf16 %v16999_v56, %v16997_v55  ;;  %15678 = vmatpush3.bf16.msra.mxu1 %v17029_v8  ;;  %v6003_v52 = vand.u32 4294901760, %v6002_v50  ;;  %v6022_v53 = vand.u32 4294901760, %v16997_v55 }
 0x8d4   : > { %15679 = vmatprep.subr.bf16.mxu1 %v16418_v12 }
 0x95b   : > { %v5364_v22 = vpop.xlane.xlu0 %5363 }
 0x95c   : > { %v5365_v23 = vmul.f32 0.03125, %v5364_v22  ;;  %v5897_v22 = vld [vmem:[%s17983_s14 + $0x68] sm:$0xff] }
 0x95e   : > { %v5366_v24 = vadd.f32 1e-05, %v5365_v23 }
 0x960   : > { %16377 = vrsqrt.f32 %v5366_v24 }
 0x96a   : > { %v16378_v25 = vpop.eup %16377 }
 0x96b   : > { %v5368_v27 = vmul.f32 %v16378_v25, %v5360_v48  ;;  %v16982_v48 = vsub.f32 %v5886_v43, %v5907_v46  ;;  %v5940_v25 = vand.u32 4294901760, %v5897_v22  ;;  %v17097_v43 = vpack.c.bf16 %v6001_v40, %v5994_v39 }
 0x96c   : > { %v6015_v46 = vand.u32 4294901760, %v16984_v49 }
 0x96d   : > { %v5373_v29 = vmul.f32 %v13505_v26, %v5368_v27  ;;  %v15722_v2 = vpack.c.bf16 %v16984_v49, %v16982_v48  ;;  %v17063_v26 = vpack.c.bf16 %v5928_v7, %v5925_v6  ;;  %v6023_v6 = vsub.f32 %v16997_v55, %v6022_v53 }
 0x96f   : > { %v5378_v30 = vadd.f32 %v13506_v28, %v5373_v29  ;;  %v17067_v28 = vsub.f32 %v5897_v22, %v5940_v25  ;;  %v5898_v29 = vld [vmem:[%s17983_s14 + $0x70] sm:$0xff] }
 0x971   : > { %v5389_v31 = vsel %vm647_vm0, %v5378_v30, 0  ;;  %v5899_v30 = vld [vmem:[%s17983_s14 + $0x78] sm:$0xff] }
 0x972   : > { %v5460_v32 = vand.u32 4294901760, %v5389_v31 }
 0x974   : > { %v5461_v33 = vsub.f32 %v5389_v31, %v5460_v32 }
 0x976   : > { %v5462_v34 = vand.u32 4294901760, %v5461_v33 }
 0x978   : > { %v5463_v35 = vsub.f32 %v5461_v33, %v5462_v34 }
 0x97a   : > { %v5464_v36 = vand.u32 4294901760, %v5463_v35 }
 0x97c   : > { %14551 = vmatmul.mubr.f32.vlgmr.msra.gmra.mrb[20].mxu0 %v5464_v36 }
 0x97d   : > { %15642 = vmatpush3.bf16.msra.mxu0 %v15641_v10  ;;  %14561 = vmatprep.mubr.msk.f32.mxu0 %vm16419_vm1, %v16420_v17  ;;  %v17033_v10 = vsub.f32 %v5893_v4, %v5928_v7 }
 0x97e   : > { %15643 = vmatprep.subr.bf16.mxu0 %v16418_v12 }
 0x97f   : > { %v15731_v14 = vpack.c.bf16 %v17033_v10, %v17031_v9 }
 0x981   : > { %15645 = vmatpush3.bf16.msra.mxu0 %v15644_v16  ;;  %v5934_v16 = vand.u32 4294901760, %v5895_v13 }
 0x982   : > { %15646 = vmatprep.subr.bf16.mxu0 %v16418_v12 }
 0x984   : > { %14562 = vmatmul.mubr.f32.vlgmr.msra.gmra.mrb[20].mxu0 %v5460_v32 }
 0x985   : > { %15648 = vmatpush3.bf16.msra.mxu0 %v15647_v18  ;;  %14572 = vmatprep.mubr.msk.f32.mxu0 %vm16419_vm1, %v16420_v17 }
 0x986   : > { %15649 = vmatprep.subr.bf16.mxu0 %v16418_v12 }
 0x989   : > { %15651 = vmatpush3.bf16.msra.mxu0 %v15650_v19  ;;  %v17048_v19 = vsub.f32 %v5894_v11, %v5931_v15 }
 0x98a   : > { %15652 = vmatprep.subr.bf16.mxu0 %v16418_v12 }
 0x98c   : > { %14573 = vmatmul.mubr.f32.vlgmr.msra.gmra.mrb[20].mxu0 %v5461_v33  ;;  %v5946_v33 = vand.u32 4294901760, %v5899_v30 }
 0x98d   : > { %15654 = vmatpush3.bf16.msra.mxu0 %v16923_v58  ;;  %14583 = vmatprep.mubr.msk.f32.mxu0 %vm16419_vm1, %v16420_v17 }
 0x98e   : > { %15655 = vmatprep.subr.bf16.mxu0 %v16418_v12  ;;  %v17084_v36 = vsub.f32 %v5899_v30, %v5946_v33 }
 0x991   : > { %15657 = vmatpush3.bf16.msra.mxu0 %v16926_v0 }
 0x992   : > { %15658 = vmatprep.subr.bf16.mxu0 %v16418_v12 }
 0x994   : > { %14584 = vmatmul.mubr.f32.vlgmr.msra.gmra.mrb[20].mxu0 %v5462_v34  ;;  %v17080_v34 = vpack.c.bf16 %v5934_v16, %v5931_v15 }
 0x995   : > { %15660 = vmatpush3.bf16.msra.mxu0 %v15659_v20  ;;  %14594 = vmatprep.mubr.msk.f32.mxu0 %vm16419_vm1, %v16420_v17  ;;  %v17050_v20 = vsub.f32 %v5895_v13, %v5934_v16  ;;  %v6050_v13 = vand.u32 4294901760, %v17031_v9 }
 0x996   : > { %15661 = vmatprep.subr.bf16.mxu0 %v16418_v12 }
 0x997   : > { %v15734_v23 = vpack.c.bf16 %v17050_v20, %v17048_v19 }
 0x999   : > { %15663 = vmatpush3.bf16.msra.mxu0 %v15662_v21  ;;  %v5896_v21 = vld [vmem:[%s17983_s14 + $0x60] sm:$0xff] }
 0x99a   : > { %15664 = vmatprep.subr.bf16.mxu0 %v16418_v12  ;;  %v5937_v24 = vand.u32 4294901760, %v5896_v21 }
 0x99c   : > { %14595 = vmatmul.mubr.f32.vlgmr.msra.gmra.mrb[20].mxu0 %v5460_v32  ;;  %v17065_v27 = vsub.f32 %v5896_v21, %v5937_v24  ;;  %v17091_v38 = vpack.c.bf16 %v5940_v25, %v5937_v24  ;;  %v6071_v25 = vand.u32 4294901760, %v17050_v20 }
 0x99d   : > { %15666 = vmatpush3.bf16.msra.mxu0 %v16923_v58  ;;  %14605 = vmatprep.mubr.msk.f32.mxu0 %vm16419_vm1, %v16420_v17  ;;  %v5891_v58 = vld [vmem:[%s17983_s14 + $0x38] sm:$0xff] }
 0x99e   : > { %15667 = vmatprep.subr.bf16.mxu0 %v16418_v12  ;;  %v5922_v62 = vand.u32 4294901760, %v5891_v58  ;;  %v15737_v31 = vpack.c.bf16 %v17067_v28, %v17065_v27  ;;  %v6072_v39 = vsub.f32 %v17050_v20, %v6071_v25 }
 0x9a0   : > { %v17016_v1 = vsub.f32 %v5891_v58, %v5922_v62  ;;  %v17046_v18 = vpack.c.bf16 %v5922_v62, %v5919_v61 }
 0x9a1   : > { %15669 = vmatpush3.bf16.msra.mxu0 %v16926_v0  ;;  %v17014_v0 = vsub.f32 %v5890_v57, %v5919_v61  ;;  %v6029_v57 = vand.u32 4294901760, %v16999_v56 }
 0x9a2   : > { %15718 = vmatprep.subr.bf16.mxu0 %v16418_v12  ;;  %15681 = vmatpush3.bf16.msra.mxu1 %v17046_v18 }
 0x9a3   : > { %v15728_v5 = vpack.c.bf16 %v17016_v1, %v17014_v0  ;;  %15682 = vmatprep.subr.bf16.mxu1 %v16418_v12  ;;  %v17116_v41 = vpack.c.bf16 %v6029_v57, %v6022_v53  ;;  %v6036_v4 = vand.u32 4294901760, %v17014_v0  ;;  %v6030_v7 = vsub.f32 %v16999_v56, %v6029_v57 }
 0x9a4   : > { %14606 = vmatmul.mubr.f32.vlgmr.msra.gmra.mrb[20].mxu0 %v5460_v32  ;;  %v5943_v32 = vand.u32 4294901760, %v5898_v29  ;;  %v6064_v56 = vand.u32 4294901760, %v17048_v19 }
 0x9a5   : > { %14710 = vmatprep.mubr.msk.f32.mxu0 %vm16419_vm1, %v16420_v17  ;;  %15720 = vmatpush3.bf16.msra.mxu0 %v15719_v45  ;;  %v6008_v45 = vand.u32 4294901760, %v16982_v48  ;;  %v6037_v15 = vsub.f32 %v17014_v0, %v6036_v4 }
 0x9a6   : > { %15721 = vmatprep.subr.bf16.mxu0 %v16418_v12  ;;  %15684 = vmatpush3.bf16.msra.mxu1 %v17063_v26  ;;  %v17082_v35 = vsub.f32 %v5898_v29, %v5943_v32  ;;  %v17100_v44 = vpack.c.bf16 %v5946_v33, %v5943_v32  ;;  %v6051_v29 = vsub.f32 %v17031_v9, %v6050_v13  ;;  %v6078_v32 = vand.u32 4294901760, %v17065_v27 }
 0x9a7   : > { %15685 = vmatprep.subr.bf16.mxu1 %v16418_v12  ;;  %v17107_v51 = vpack.c.bf16 %v6015_v46, %v6008_v45  ;;  %v6009_v58 = vsub.f32 %v16982_v48, %v6008_v45  ;;  %v6024_v48 = vand.u32 4294901760, %v6023_v6  ;;  %v6085_v33 = vand.u32 4294901760, %v17067_v28 }
 0x9a8   : > { %v15740_v37 = vpack.c.bf16 %v17084_v36, %v17082_v35  ;;  %v6052_v0 = vand.u32 4294901760, %v6051_v29  ;;  %v6092_v9 = vand.u32 4294901760, %v17082_v35 }
 0x9a9   : > { %15723 = vmatpush3.bf16.msra.mxu0 %v15722_v2  ;;  %v5996_v2 = vand.u32 4294901760, %v5995_v47  ;;  %v6010_v42 = vand.u32 4294901760, %v6009_v58  ;;  %v15785_v45 = vpack.c.bf16 %v6085_v33, %v6078_v32  ;;  %v6073_v47 = vand.u32 4294901760, %v6072_v39  ;;  %v13514_v39 = vld [vmem:[%s17975_s6 + $0x30] sm:$0xff] }
 0x9aa   : > { %15724 = vmatprep.subr.bf16.mxu0 %v16418_v12  ;;  %15687 = vmatpush3.bf16.msra.mxu1 %v17080_v34 }
 0x9ab   : > { %15688 = vmatprep.subr.bf16.mxu1 %v16418_v12  ;;  %v17114_v61 = vpack.c.bf16 %v6003_v52, %v5996_v2  ;;  %v6079_v2 = vsub.f32 %v17065_v27, %v6078_v32  ;;  %v6086_v52 = vsub.f32 %v17067_v28, %v6085_v33 }
 0x9ad   : > { %15726 = vmatpush3.bf16.msra.mxu0 %v15725_v59  ;;  %v6016_v59 = vsub.f32 %v16984_v49, %v6015_v46  ;;  %v6031_v49 = vand.u32 4294901760, %v6030_v7  ;;  %v6080_v57 = vand.u32 4294901760, %v6079_v2  ;;  %v6087_v58 = vand.u32 4294901760, %v6086_v52 }
 0x9ae   : > { %15727 = vmatprep.subr.bf16.mxu0 %v16418_v12  ;;  %15690 = vmatpush3.bf16.msra.mxu1 %v17091_v38 }
 0x9af   : > { %15691 = vmatprep.subr.bf16.mxu1 %v16418_v12  ;;  %v6017_v62 = vand.u32 4294901760, %v6016_v59  ;;  %v17130_v21 = vpack.c.bf16 %v6031_v49, %v6024_v48  ;;  %v15713_v59 = vpack.c.bf16 %v6087_v58, %v6080_v57 }
 0x9b1   : > { %15729 = vmatpush3.bf16.msra.mxu0 %v15728_v5  ;;  %v17118_v3 = vpack.c.bf16 %v6017_v62, %v6010_v42  ;;  %v6043_v5 = vand.u32 4294901760, %v17016_v1 }
 0x9b2   : > { %15730 = vmatprep.subr.bf16.mxu0 %v16418_v12  ;;  %15693 = vmatpush3.bf16.msra.mxu1 %v17100_v44 }
 0x9b3   : > { %15694 = vmatprep.subr.bf16.mxu1 %v16418_v12  ;;  %v17124_v11 = vpack.c.bf16 %v6043_v5, %v6036_v4  ;;  %v6044_v16 = vsub.f32 %v17016_v1, %v6043_v5  ;;  %v13507_v5 = vld [vmem:[%s17982_s13] ss:$0 sm:$0xff] }
 0x9b5   : > { %15732 = vmatpush3.bf16.msra.mxu0 %v15731_v14  ;;  %v6057_v14 = vand.u32 4294901760, %v17033_v10  ;;  %v6045_v55 = vand.u32 4294901760, %v6044_v16 }
 0x9b6   : > { %15733 = vmatprep.subr.bf16.mxu0 %v16418_v12 }
 0x9b7   : > { %v17132_v22 = vpack.c.bf16 %v6057_v14, %v6050_v13  ;;  %v6058_v30 = vsub.f32 %v17033_v10, %v6057_v14  ;;  %v6099_v10 = vand.u32 4294901760, %v17084_v36 }
 0x9b9   : > { %15735 = vmatpush3.bf16.msra.mxu0 %v15734_v23  ;;  %v6038_v23 = vand.u32 4294901760, %v6037_v15  ;;  %v6059_v1 = vand.u32 4294901760, %v6058_v30  ;;  %v15788_v53 = vpack.c.bf16 %v6099_v10, %v6092_v9  ;;  %v6100_v20 = vsub.f32 %v17084_v36, %v6099_v10 }
 0x9ba   : > { %15736 = vmatprep.subr.bf16.mxu0 %v16418_v12 }
 0x9bb   : > { %v17134_v24 = vpack.c.bf16 %v6045_v55, %v6038_v23  ;;  %v15707_v40 = vpack.c.bf16 %v6059_v1, %v6052_v0  ;;  %v6101_v62 = vand.u32 4294901760, %v6100_v20 }
 0x9bd   : > { %15738 = vmatpush3.bf16.msra.mxu0 %v15737_v31  ;;  %v17140_v31 = vpack.c.bf16 %v6071_v25, %v6064_v56 }
 0x9be   : > { %15739 = vmatprep.subr.bf16.mxu0 %v16418_v12 }
 0x9c1   : > { %15741 = vmatpush3.bf16.msra.mxu0 %v15740_v37  ;;  %v6065_v37 = vsub.f32 %v17048_v19, %v6064_v56  ;;  %v6093_v19 = vsub.f32 %v17082_v35, %v6092_v9  ;;  %v13509_v56 = vld [vmem:[%s17984_s15] ss:$0 sm:$0xff] }
 0x9c2   : > { %15766 = vmatprep.subr.bf16.mxu0 %v16418_v12 }
 0x9c3   : > { %v6066_v46 = vand.u32 4294901760, %v6065_v37  ;;  %v6094_v42 = vand.u32 4294901760, %v6093_v19  ;;  %v13512_v37 = vld [vmem:[%s17975_s6 + $0x20] sm:$0xff] }
 0x9c5   : > { %v15710_v50 = vpack.c.bf16 %v6073_v47, %v6066_v46  ;;  %v15716_v4 = vpack.c.bf16 %v6101_v62, %v6094_v42  ;;  %v13515_v46 = vld [vmem:[%s17975_s6 + $0x38] sm:$0xff]  ;;  %v6593_v47 = vand.u32 4294901760, %v13514_v39 }
 0x9c7   : > { %v6681_v52 = vsub.f32 %v13514_v39, %v6593_v47 }
 0xa77   : > { %v5872_v6 = vpop.f32.mrb[20].mxu0 }
 0xa78   : > { %v16108_v7 = vadd.f32 %v13507_v5, %v5872_v6  ;;  %v14607_v27 = vpop.f32.mrb[21].mxu0 }
 0xa7a   : > { %v13508_v48 = vmul.f32 -1.702, %v16108_v7 }
 0xa7c   : > { %v5878_v28 = vmul.f32 1.442695, %v13508_v48 }
 0xa7e   : > { %16379 = vpow2.f32 %v5878_v28 }
 0xa88   : > { %v16380_v49 = vpop.eup %16379 }
 0xa89   : > { %v5880_v13 = vadd.f32 1.0, %v16380_v49 }
 0xa8b   : > { %16381 = vrcp.f32 %v5880_v13 }
 0xa95   : > { %v16382_v35 = vpop.eup %16381 }
 0xa96   : > { %v5883_v14 = vmul.f32 %v16382_v35, %v16108_v7 }
 0xa98   : > { %v17155_v36 = vand.u32 4294901760, %v5883_v14 }
 0xa9a   : > { %v5982_v15 = vsub.f32 %v5883_v14, %v17155_v36 }
 0xa9c   : > { %v5983_v16 = vand.u32 4294901760, %v5982_v15  ;;  %14711 = vmatmul.mubr.f32.vlgmr.msra.gmra.mrb[22].mxu0 %v5982_v15 }
 0xa9d   : > { %15768 = vmatpush3.bf16.msra.mxu0 %v17097_v43  ;;  %14780 = vmatprep.mubr.msk.f32.mxu0 %vm16419_vm1, %v16420_v17 }
 0xa9e   : > { %15769 = vmatprep.subr.bf16.mxu0 %v16418_v12  ;;  %v5984_v23 = vsub.f32 %v5982_v15, %v5983_v16 }
 0xaa0   : > { %v5985_v55 = vand.u32 4294901760, %v5984_v23 }
 0xaa1   : > { %15771 = vmatpush3.bf16.msra.mxu0 %v17107_v51 }
 0xaa2   : > { %14641 = vmatmul.mubr.f32.vlgmr.msra.gmra.mrb[12].mxu1 %v5985_v55  ;;  %15772 = vmatprep.subr.bf16.mxu0 %v16418_v12 }
 0xaa3   : > { %15696 = vmatpush3.bf16.msra.mxu1 %v17114_v61  ;;  %14675 = vmatprep.mubr.msk.f32.mxu1 %vm16419_vm1, %v16420_v17 }
 0xaa4   : > { %15697 = vmatprep.subr.bf16.mxu1 %v16418_v12 }
 0xaa5   : > { %15774 = vmatpush3.bf16.msra.mxu0 %v17116_v41 }
 0xaa6   : > { %15775 = vmatprep.subr.bf16.mxu0 %v16418_v12 }
 0xaa7   : > { %15699 = vmatpush3.bf16.msra.mxu1 %v17118_v3 }
 0xaa8   : > { %15700 = vmatprep.subr.bf16.mxu1 %v16418_v12 }
 0xaa9   : > { %15777 = vmatpush3.bf16.msra.mxu0 %v17124_v11 }
 0xaaa   : > { %15778 = vmatprep.subr.bf16.mxu0 %v16418_v12 }
 0xaab   : > { %15702 = vmatpush3.bf16.msra.mxu1 %v17130_v21 }
 0xaac   : > { %15703 = vmatprep.subr.bf16.mxu1 %v16418_v12 }
 0xaad   : > { %15780 = vmatpush3.bf16.msra.mxu0 %v17132_v22 }
 0xaae   : > { %15781 = vmatprep.subr.bf16.mxu0 %v16418_v12 }
 0xaaf   : > { %15705 = vmatpush3.bf16.msra.mxu1 %v17134_v24 }
 0xab0   : > { %15706 = vmatprep.subr.bf16.mxu1 %v16418_v12 }
 0xab1   : > { %15783 = vmatpush3.bf16.msra.mxu0 %v17140_v31 }
 0xab2   : > { %15784 = vmatprep.subr.bf16.mxu0 %v16418_v12 }
 0xab3   : > { %15708 = vmatpush3.bf16.msra.mxu1 %v15707_v40  ;;  %v6587_v40 = vand.u32 4294901760, %v13512_v37 }
 0xab4   : > { %15709 = vmatprep.subr.bf16.mxu1 %v16418_v12 }
 0xab5   : > { %15786 = vmatpush3.bf16.msra.mxu0 %v15785_v45  ;;  %v6667_v10 = vsub.f32 %v13512_v37, %v6587_v40 }
 0xab6   : > { %15787 = vmatprep.subr.bf16.mxu0 %v16418_v12 }
 0xab7   : > { %15711 = vmatpush3.bf16.msra.mxu1 %v15710_v50  ;;  %v6596_v50 = vand.u32 4294901760, %v13515_v46  ;;  %v6668_v58 = vand.u32 4294901760, %v6667_v10 }
 0xab8   : > { %15712 = vmatprep.subr.bf16.mxu1 %v16418_v12 }
 0xab9   : > { %15789 = vmatpush3.bf16.msra.mxu0 %v15788_v53  ;;  %v6688_v53 = vsub.f32 %v13515_v46, %v6596_v50  ;;  %v17256_v57 = vpack.c.bf16 %v6596_v50, %v6593_v47  ;;  %v6669_v20 = vsub.f32 %v6667_v10, %v6668_v58 }
 0xaba   : > { %15814 = vmatprep.subr.bf16.mxu0 %v16418_v12 }
 0xabb   : > { %15714 = vmatpush3.bf16.msra.mxu1 %v15713_v59  ;;  %v6670_v42 = vand.u32 4294901760, %v6669_v20  ;;  %v6689_v5 = vand.u32 4294901760, %v6688_v53  ;;  %v15830_v35 = vpack.c.bf16 %v6688_v53, %v6681_v52 }
 0xabc   : > { %14781 = vmatmul.mubr.f32.vlgmr.msra.gmra.mrb[24].mxu0 %v17155_v36  ;;  %15715 = vmatprep.subr.bf16.mxu1 %v16418_v12 }
 0xabd   : > { %14826 = vmatprep.mubr.msk.f32.mxu0 %vm16419_vm1, %v16420_v17  ;;  %v6690_v27 = vsub.f32 %v6688_v53, %v6689_v5 }
 0xabf   : > { %15717 = vmatpush3.bf16.msra.mxu1 %v15716_v4  ;;  %v6682_v4 = vand.u32 4294901760, %v6681_v52  ;;  %v6691_v28 = vand.u32 4294901760, %v6690_v27 }
 0xac0   : > { %15742 = vmatprep.subr.bf16.mxu1 %v16418_v12 }
 0xac1   : > { %v6683_v7 = vsub.f32 %v6681_v52, %v6682_v4 }
 0xac2   : > { %14676 = vmatmul.mubr.f32.vlgmr.msra.gmra.mrb[14].mxu1 %v17155_v36 }
 0xac3   : > { %15744 = vmatpush3.bf16.msra.mxu1 %v16995_v54  ;;  %14745 = vmatprep.mubr.msk.f32.mxu1 %vm16419_vm1, %v16420_v17  ;;  %v6684_v48 = vand.u32 4294901760, %v6683_v7 }
 0xac4   : > { %15745 = vmatprep.subr.bf16.mxu1 %v16418_v12 }
 0xac5   : > { %v15824_v49 = vpack.c.bf16 %v6691_v28, %v6684_v48 }
 0xac7   : > { %15747 = vmatpush3.bf16.msra.mxu1 %v17012_v63 }
 0xac8   : > { %15748 = vmatprep.subr.bf16.mxu1 %v16418_v12 }
 0xacb   : > { %15750 = vmatpush3.bf16.msra.mxu1 %v17029_v8 }
 0xacc   : > { %15751 = vmatprep.subr.bf16.mxu1 %v16418_v12 }
 0xacf   : > { %15753 = vmatpush3.bf16.msra.mxu1 %v17046_v18 }
 0xad0   : > { %15754 = vmatprep.subr.bf16.mxu1 %v16418_v12 }
 0xad3   : > { %15756 = vmatpush3.bf16.msra.mxu1 %v17063_v26 }
 0xad4   : > { %15757 = vmatprep.subr.bf16.mxu1 %v16418_v12 }
 0xad7   : > { %15759 = vmatpush3.bf16.msra.mxu1 %v17080_v34 }
 0xad8   : > { %15760 = vmatprep.subr.bf16.mxu1 %v16418_v12 }
 0xadb   : > { %15762 = vmatpush3.bf16.msra.mxu1 %v17091_v38 }
 0xadc   : > { %15763 = vmatprep.subr.bf16.mxu1 %v16418_v12 }
 0xadf   : > { %15765 = vmatpush3.bf16.msra.mxu1 %v17100_v44 }
 0xae0   : > { %15790 = vmatprep.subr.bf16.mxu1 %v16418_v12 }
 0xae2   : > { %14746 = vmatmul.mubr.f32.vlgmr.msra.gmra.mrb[16].mxu1 %v5983_v16 }
 0xae3   : > { %15792 = vmatpush3.bf16.msra.mxu1 %v16995_v54  ;;  %14815 = vmatprep.mubr.msk.f32.mxu1 %vm16419_vm1, %v16420_v17 }
 0xae4   : > { %15793 = vmatprep.subr.bf16.mxu1 %v16418_v12 }
 0xae7   : > { %15795 = vmatpush3.bf16.msra.mxu1 %v17012_v63 }
 0xae8   : > { %15796 = vmatprep.subr.bf16.mxu1 %v16418_v12 }
 0xaeb   : > { %15798 = vmatpush3.bf16.msra.mxu1 %v17029_v8 }
 0xaec   : > { %15799 = vmatprep.subr.bf16.mxu1 %v16418_v12 }
 0xaef   : > { %15801 = vmatpush3.bf16.msra.mxu1 %v17046_v18 }
 0xaf0   : > { %15802 = vmatprep.subr.bf16.mxu1 %v16418_v12 }
 0xaf3   : > { %15804 = vmatpush3.bf16.msra.mxu1 %v17063_v26 }
 0xaf4   : > { %15805 = vmatprep.subr.bf16.mxu1 %v16418_v12 }
 0xaf7   : > { %15807 = vmatpush3.bf16.msra.mxu1 %v17080_v34 }
 0xaf8   : > { %15808 = vmatprep.subr.bf16.mxu1 %v16418_v12 }
 0xafb   : > { %15810 = vmatpush3.bf16.msra.mxu1 %v17091_v38 }
 0xafc   : > { %15811 = vmatprep.subr.bf16.mxu1 %v16418_v12 }
 0xaff   : > { %15813 = vmatpush3.bf16.msra.mxu1 %v17100_v44 }
 0xb00   : > { %14884 = vmatprep.subr.mxu1 %v16420_v17 }
 0xb02   : > { %14816 = vmatmul.mubr.f32.vlgmr.msra.gmra.mrb[18].mxu1 %v17155_v36  ;;  %v15842_v36 = vpack.c.bf16 %v6689_v5, %v6682_v4 }
 0xb03   : > { %14886 = vmatprep.mubr.msk.f32.mxu1 %vm16419_vm1, %v16420_v17 }
 0xb6f   : > { %v6242_v54 = vpop.f32.mrb[22].mxu0 }
 0xb70   : > { %v14712_v63 = vpop.f32.mrb[23].mxu0 }
 0xb75   : > { %v5987_v8 = vpop.f32.mrb[12].mxu1 }
 0xb76   : > { %v14642_v18 = vpop.f32.mrb[13].mxu1 }
 0xb8f   : > { %v6450_v26 = vpop.f32.mrb[24].mxu0 }
 0xb90   : > { %v14782_v34 = vpop.f32.mrb[25].mxu0 }
 0xb95   : > { %v6138_v43 = vpop.f32.mrb[14].mxu1 }
 0xb96   : > { %v6139_v51 = vadd.f32 %v6138_v43, %v5987_v8  ;;  %v14677_v38 = vpop.f32.mrb[15].mxu1  ;;  %v13511_v8 = vld [vmem:[%s17974_s5 + $0x1] ss:$0 sm:$0xff] }
 0xb98   : > { %v6243_v61 = vadd.f32 %v6242_v54, %v6139_v51  ;;  %v13510_v54 = vld [vmem:[%s18010_s26 + $0x1] ss:$0 sm:$0xff] }
 0xbb5   : > { %v6331_v41 = vpop.f32.mrb[16].mxu1 }
 0xbb6   : > { %v6332_v3 = vadd.f32 %v6331_v41, %v6243_v61  ;;  %v14747_v44 = vpop.f32.mrb[17].mxu1 }
 0xbb8   : > { %v6451_v11 = vadd.f32 %v6450_v26, %v6332_v3  ;;  %v13516_v3 = vld [vmem:[%s17976_s7 + $0x1] ss:$0 sm:$0xff] }
 0xbd5   : > { %v6537_v21 = vpop.f32.mrb[18].mxu1 }
 0xbd6   : > { %v6538_v22 = vadd.f32 %v6537_v21, %v6451_v11  ;;  %v14817_v24 = vpop.f32.mrb[19].mxu1 }
 0xbd8   : > { %v6541_v25 = vadd.f32 %v6538_v22, %v16905_v60  ;;  %v13513_v60 = vld [vmem:[%s17975_s6 + $0x28] sm:$0xff] }
 0xbd9   : > { %v6590_v45 = vand.u32 4294901760, %v13513_v60 }
 0xbda   : > { %v17235_v29 = vadd.f32 %v13509_v56, %v6541_v25 }
 0xbdb   : > { %v17253_v9 = vpack.c.bf16 %v6590_v45, %v6587_v40  ;;  %v6674_v2 = vsub.f32 %v13513_v60, %v6590_v45 }
 0xbdc   : > { %v6550_v30 = vsel %vm647_vm0, %v17235_v29, 0.0 }
 0xbdd   : > { %6551 = vadd.xlane.f32.xlu1 %v6550_v30  ;;  %15816 = vmatpush3.bf16.msra.mxu0 %v17253_v9  ;;  %v6675_v19 = vand.u32 4294901760, %v6674_v2  ;;  %v15827_v13 = vpack.c.bf16 %v6674_v2, %v6667_v10 }
 0xbde   : > { %15817 = vmatprep.subr.bf16.mxu0 %v16418_v12 }
 0xbdf   : > { %v6676_v59 = vsub.f32 %v6674_v2, %v6675_v19  ;;  %v15839_v14 = vpack.c.bf16 %v6675_v19, %v6668_v58 }
 0xbe1   : > { %15819 = vmatpush3.bf16.msra.mxu0 %v17256_v57  ;;  %v6677_v62 = vand.u32 4294901760, %v6676_v59 }
 0xbe2   : > { %15820 = vmatprep.subr.bf16.mxu0 %v16418_v12 }
 0xbe3   : > { %v15821_v6 = vpack.c.bf16 %v6677_v62, %v6670_v42 }
 0xc6a   : > { %v6552_v31 = vpop.xlane.xlu1 %6551 }
 0xc6b   : > { %v6553_v0 = vmul.f32 0.03125, %v6552_v31 }
 0xc6d   : > { %v6554_v1 = vsub.f32 %v17235_v29, %v6553_v0 }
 0xc6f   : > { %v6555_v32 = vmul.f32 %v6554_v1, %v6554_v1 }
 0xc71   : > { %v6556_v33 = vsel %vm647_vm0, %v6555_v32, 0.0 }
 0xc72   : > { %6557 = vadd.xlane.f32.xlu1 %v6556_v33 }
 0xcff   : > { %v6558_v15 = vpop.xlane.xlu1 %6557 }
 0xd00   : > { %v6559_v16 = vmul.f32 0.03125, %v6558_v15 }
 0xd02   : > { %v6560_v23 = vadd.f32 1e-05, %v6559_v16 }
 0xd04   : > { %16383 = vrsqrt.f32 %v6560_v23 }
 0xd0e   : > { %v16384_v55 = vpop.eup %16383 }
 0xd0f   : > { %v6562_v63 = vmul.f32 %v16384_v55, %v6554_v1 }
 0xd11   : > { %v6567_v18 = vmul.f32 %v13510_v54, %v6562_v63 }
 0xd13   : > { %v6572_v26 = vadd.f32 %v13511_v8, %v6567_v18 }
 0xd15   : > { %v6584_v34 = vsel %vm647_vm0, %v6572_v26, 0 }
 0xd16   : > { %v6655_v43 = vand.u32 4294901760, %v6584_v34 }
 0xd18   : > { %v6656_v51 = vsub.f32 %v6584_v34, %v6655_v43 }
 0xd1a   : > { %v6657_v38 = vand.u32 4294901760, %v6656_v51 }
 0xd1c   : > { %v6658_v61 = vsub.f32 %v6656_v51, %v6657_v38 }
 0xd1e   : > { %v6659_v41 = vand.u32 4294901760, %v6658_v61 }
 0xd20   : > { %14827 = vmatmul.mubr.f32.vlgmr.msra.gmra.mrb[26].mxu0 %v6659_v41  ;;  %v16409_v41 = vld [vmem:[%s18011_s28] sm:$0xff] }
 0xd21   : > { %15822 = vmatpush3.bf16.msra.mxu0 %v15821_v6  ;;  %14837 = vmatprep.mubr.msk.f32.mxu0 %vm16419_vm1, %v16420_v17 }
 0xd22   : > { %15823 = vmatprep.subr.bf16.mxu0 %v16418_v12 }
 0xd25   : > { %15825 = vmatpush3.bf16.msra.mxu0 %v15824_v49 }
 0xd26   : > { %15826 = vmatprep.subr.bf16.mxu0 %v16418_v12 }
 0xd28   : > { %14838 = vmatmul.mubr.f32.vlgmr.msra.gmra.mrb[26].mxu0 %v6655_v43 }
 0xd29   : > { %15828 = vmatpush3.bf16.msra.mxu0 %v15827_v13  ;;  %14848 = vmatprep.mubr.msk.f32.mxu0 %vm16419_vm1, %v16420_v17 }
 0xd2a   : > { %15829 = vmatprep.subr.bf16.mxu0 %v16418_v12 }
 0xd2d   : > { %15831 = vmatpush3.bf16.msra.mxu0 %v15830_v35 }
 0xd2e   : > { %15832 = vmatprep.subr.bf16.mxu0 %v16418_v12 }
 0xd30   : > { %14849 = vmatmul.mubr.f32.vlgmr.msra.gmra.mrb[26].mxu0 %v6656_v51 }
 0xd31   : > { %15834 = vmatpush3.bf16.msra.mxu0 %v17253_v9  ;;  %14859 = vmatprep.mubr.msk.f32.mxu0 %vm16419_vm1, %v16420_v17 }
 0xd32   : > { %15835 = vmatprep.subr.bf16.mxu0 %v16418_v12 }
 0xd35   : > { %15837 = vmatpush3.bf16.msra.mxu0 %v17256_v57 }
 0xd36   : > { %15838 = vmatprep.subr.bf16.mxu0 %v16418_v12 }
 0xd38   : > { %14860 = vmatmul.mubr.f32.vlgmr.msra.gmra.mrb[26].mxu0 %v6657_v38 }
 0xd39   : > { %15840 = vmatpush3.bf16.msra.mxu0 %v15839_v14  ;;  %14870 = vmatprep.mubr.msk.f32.mxu0 %vm16419_vm1, %v16420_v17 }
 0xd3a   : > { %15841 = vmatprep.subr.bf16.mxu0 %v16418_v12 }
 0xd3d   : > { %15843 = vmatpush3.bf16.msra.mxu0 %v15842_v36 }
 0xd3e   : > { %15844 = vmatprep.subr.bf16.mxu0 %v16418_v12 }
 0xd40   : > { %14871 = vmatmul.mubr.f32.vlgmr.msra.gmra.mrb[26].mxu0 %v6655_v43 }
 0xd41   : > { %15846 = vmatpush3.bf16.msra.mxu0 %v17253_v9  ;;  %14881 = vmatprep.mubr.msk.f32.mxu0 %vm16419_vm1, %v16420_v17 }
 0xd42   : > { %15847 = vmatprep.subr.bf16.mxu0 %v16418_v12 }
 0xd45   : > { %15849 = vmatpush3.bf16.msra.mxu0 %v17256_v57 }
 0xd46   : > { %14944 = vmatprep.subr.mxu0 %v16420_v17 }
 0xd48   : > { %14882 = vmatmul.mubr.f32.vlgmr.msra.gmra.mrb[26].mxu0 %v6655_v43 }
 0xd49   : > { %14946 = vmatprep.mubr.msk.f32.mxu0 %vm16419_vm1, %v16420_v17 }
 0xe1b   : > { %v7067_v44 = vpop.f32.mrb[26].mxu0 }
 0xe1c   : > { %v17297_v11 = vadd.f32 %v13516_v3, %v7067_v44  ;;  %v14883_v21 = vpop.f32.mrb[27].mxu0 }
 0xe1e   : > { %7987 = vrot.lane.b32.xlu1 %v17297_v11, %s16423_s21  ;;  %7072 = vrot.lane.b32.xlu0 %v17297_v11, %s16422_s0  ;;  %v7074_v22 = vsel %vm1173_vm2, %v17297_v11, 0  ;;  %s18016_s21 = smov 64  }
 0xe1f   : > { %v17315_v24 = vand.u32 4294901760, %v7074_v22 }
 0xe21   : > { %v7145_v56 = vsub.f32 %v7074_v22, %v17315_v24 }
 0xe22   : > { %7989 = vrot.lane.b32.xlu1 %v17297_v11, %s16421_s30  ;;  %8904 = vrot.lane.b32.xlu0 %v17297_v11, %s18012_s25  ;;  %s18021_s25 = smov 16  }
 0xe23   : > { %v7146_v25 = vand.u32 4294901760, %v7145_v56 }
 0xe25   : > { %v7147_v32 = vsub.f32 %v7145_v56, %v7146_v25 }
 0xe26   : > { %8906 = vrot.lane.b32.xlu1 %v17297_v11, %s18013_s4  ;;  %9821 = vrot.lane.b32.xlu0 %v17297_v11, %s18014_s22 }
 0xe27   : > { %v7148_v46 = vand.u32 4294901760, %v7147_v32 }
 0xe2a   : > { %9823 = vrot.lane.b32.xlu1 %v17297_v11, %s18015_s24  ;;  %s641_s24 = scalar_lea.vmem %s17989_s20, %s16548_s23 }
 0xe90   : > { %v7988_v30 = vpop.permute.xlu1 %7987  ;;  %v7073_v31 = vpop.permute.xlu0 %7072 }
 0xe91   : > { %v7991_v0 = vsel %vm1173_vm2, %v7988_v30, 0  ;;  %v7076_v1 = vsel %vm1173_vm2, %v7073_v31, 0 }
 0xe92   : > { %v17320_v33 = vand.u32 4294901760, %v7991_v0  ;;  %v7079_v37 = vand.u32 4294901760, %v7076_v1 }
 0xe94   : > { %v8062_v60 = vsub.f32 %v7991_v0, %v17320_v33  ;;  %v7156_v39 = vsub.f32 %v7076_v1, %v7079_v37  ;;  %v7990_v40 = vpop.permute.xlu1 %7989  ;;  %14885 = vmatpush3.xpose.msra.mxu1 %v7079_v37  ;;  %v8905_v59 = vpop.permute.xlu0 %8904 }
 0xe95   : > { %v7993_v45 = vsel %vm1173_vm2, %v7990_v40, 0  ;;  %14889 = vmatprep.subr.mxu1 %v16420_v17  ;;  %v8908_v62 = vsel %vm1173_vm2, %v8905_v59, 0 }
 0xe96   : > { %v8063_v47 = vand.u32 4294901760, %v8062_v60  ;;  %v7157_v50 = vand.u32 4294901760, %v7156_v39  ;;  %v7996_v9 = vand.u32 4294901760, %v7993_v45  ;;  %v8978_v5 = vand.u32 4294901760, %v8908_v62 }
 0xe97   : > { %14887 = vmatmul.mubr.f32.vlgmr.msra.gmra.mrb[20].mxu1 %v7148_v46 }
 0xe98   : > { %v8064_v10 = vsub.f32 %v8062_v60, %v8063_v47  ;;  %v7158_v2 = vsub.f32 %v7156_v39, %v7157_v50  ;;  %v8073_v52 = vsub.f32 %v7993_v45, %v7996_v9  ;;  %14945 = vmatpush3.xpose.msra.mxu0 %v7996_v9  ;;  %14891 = vmatprep.mubr.msk.f32.mxu1 %vm16419_vm1, %v16420_v17  ;;  %v8907_v42 = vpop.permute.xlu1 %8906  ;;  %v9822_v36 = vpop.permute.xlu0 %9821 }
 0xe99   : > { %14949 = vmatprep.subr.mxu0 %v16420_v17  ;;  %v8910_v4 = vsel %vm1173_vm2, %v8907_v42, 0  ;;  %v8979_v7 = vsub.f32 %v8908_v62, %v8978_v5  ;;  %v9825_v16 = vsel %vm1173_vm2, %v9822_v36, 0 }
 0xe9a   : > { %v8065_v53 = vand.u32 4294901760, %v8064_v10  ;;  %v7159_v57 = vand.u32 4294901760, %v7158_v2  ;;  %v8074_v58 = vand.u32 4294901760, %v8073_v52  ;;  %v8913_v6 = vand.u32 4294901760, %v8910_v4 }
 0xe9b   : > { %v8980_v48 = vand.u32 4294901760, %v8979_v7  ;;  %v9895_v55 = vand.u32 4294901760, %v9825_v16 }
 0xe9c   : > { %v8075_v19 = vsub.f32 %v8073_v52, %v8074_v58  ;;  %14947 = vmatmul.mubr.f32.vlgmr.msra.gmra.mrb[28].mxu0 %v8065_v53  ;;  %14890 = vmatpush3.xpose.msra.mxu1 %v7159_v57  ;;  %v8990_v27 = vsub.f32 %v8910_v4, %v8913_v6  ;;  %v9824_v15 = vpop.permute.xlu1 %9823 }
 0xe9d   : > { %14894 = vmatprep.subr.mxu1 %v16420_v17  ;;  %14951 = vmatprep.mubr.msk.f32.mxu0 %vm16419_vm1, %v16420_v17  ;;  %v8981_v49 = vsub.f32 %v8979_v7, %v8980_v48  ;;  %v9827_v23 = vsel %vm1173_vm2, %v9824_v15, 0  ;;  %v9896_v63 = vsub.f32 %v9825_v16, %v9895_v55 }
 0xe9e   : > { %v8076_v20 = vand.u32 4294901760, %v8075_v19  ;;  %v8991_v28 = vand.u32 4294901760, %v8990_v27  ;;  %v9830_v54 = vand.u32 4294901760, %v9827_v23 }
 0xe9f   : > { %14892 = vmatmul.mubr.f32.vlgmr.msra.gmra.mrb[20].mxu1 %v17315_v24  ;;  %v8982_v35 = vand.u32 4294901760, %v8981_v49  ;;  %v9897_v18 = vand.u32 4294901760, %v9896_v63 }
 0xea0   : > { %14895 = vmatpush3.xpose.msra.mxu1 %v7156_v39  ;;  %14950 = vmatpush3.xpose.msra.mxu0 %v8076_v20  ;;  %v8992_v13 = vsub.f32 %v8990_v27, %v8991_v28  ;;  %v9907_v8 = vsub.f32 %v9827_v23, %v9830_v54 }
 0xea1   : > { %14954 = vmatprep.subr.mxu0 %v16420_v17  ;;  %14896 = vmatprep.mubr.msk.f32.mxu1 %vm16419_vm1, %v16420_v17  ;;  %v9898_v34 = vsub.f32 %v9896_v63, %v9897_v18 }
 0xea2   : > { %14899 = vmatprep.subr.mxu1 %v16420_v17  ;;  %v8993_v14 = vand.u32 4294901760, %v8992_v13  ;;  %v9908_v26 = vand.u32 4294901760, %v9907_v8 }
 0xea3   : > { %v9899_v51 = vand.u32 4294901760, %v9898_v34 }
 0xea4   : > { %14952 = vmatmul.mubr.f32.vlgmr.msra.gmra.mrb[28].mxu0 %v17320_v33  ;;  %v9909_v43 = vsub.f32 %v9907_v8, %v9908_v26 }
 0xea5   : > { %14955 = vmatpush3.xpose.msra.mxu0 %v8073_v52  ;;  %14956 = vmatprep.mubr.msk.f32.mxu0 %vm16419_vm1, %v16420_v17 }
 0xea6   : > { %14959 = vmatprep.subr.mxu0 %v16420_v17  ;;  %v9910_v38 = vand.u32 4294901760, %v9909_v43 }
 0xea7   : > { %14897 = vmatmul.mubr.f32.vlgmr.msra.gmra.mrb[20].mxu1 %v7145_v56 }
 0xea8   : > { %14900 = vmatpush3.xpose.msra.mxu1 %v7079_v37  ;;  %14901 = vmatprep.mubr.msk.f32.mxu1 %vm16419_vm1, %v16420_v17 }
 0xea9   : > { %14904 = vmatprep.subr.mxu1 %v16420_v17 }
 0xeac   : > { %14957 = vmatmul.mubr.f32.vlgmr.msra.gmra.mrb[28].mxu0 %v8062_v60 }
 0xead   : > { %14960 = vmatpush3.xpose.msra.mxu0 %v7996_v9  ;;  %14961 = vmatprep.mubr.msk.f32.mxu0 %vm16419_vm1, %v16420_v17 }
 0xeae   : > { %14964 = vmatprep.subr.mxu0 %v16420_v17 }
 0xeaf   : > { %14902 = vmatmul.mubr.f32.vlgmr.msra.gmra.mrb[20].mxu1 %v7146_v25 }
 0xeb0   : > { %14905 = vmatpush3.xpose.msra.mxu1 %v7157_v50  ;;  %14906 = vmatprep.mubr.msk.f32.mxu1 %vm16419_vm1, %v16420_v17 }
 0xeb1   : > { %14909 = vmatprep.subr.mxu1 %v16420_v17 }
 0xeb4   : > { %14962 = vmatmul.mubr.f32.vlgmr.msra.gmra.mrb[28].mxu0 %v8063_v47 }
 0xeb5   : > { %14965 = vmatpush3.xpose.msra.mxu0 %v8074_v58  ;;  %14966 = vmatprep.mubr.msk.f32.mxu0 %vm16419_vm1, %v16420_v17 }
 0xeb6   : > { %14969 = vmatprep.subr.mxu0 %v16420_v17 }
 0xeb7   : > { %14907 = vmatmul.mubr.f32.vlgmr.msra.gmra.mrb[20].mxu1 %v17315_v24 }
 0xeb8   : > { %14910 = vmatpush3.xpose.msra.mxu1 %v7079_v37  ;;  %14911 = vmatprep.mubr.msk.f32.mxu1 %vm16419_vm1, %v16420_v17 }
 0xeb9   : > { %14914 = vmatprep.subr.mxu1 %v16420_v17 }
 0xebc   : > { %14967 = vmatmul.mubr.f32.vlgmr.msra.gmra.mrb[28].mxu0 %v17320_v33 }
 0xebd   : > { %14970 = vmatpush3.xpose.msra.mxu0 %v7996_v9  ;;  %14971 = vmatprep.mubr.msk.f32.mxu0 %vm16419_vm1, %v16420_v17 }
 0xebe   : > { %15004 = vmatprep.subr.mxu0 %v16420_v17 }
 0xebf   : > { %14912 = vmatmul.mubr.f32.vlgmr.msra.gmra.mrb[20].mxu1 %v17315_v24 }
 0xec0   : > { %14916 = vmatprep.mubr.msk.f32.mxu1 %vm16419_vm1, %v16420_v17 }
 0xec4   : > { %14972 = vmatmul.mubr.f32.vlgmr.msra.gmra.mrb[28].mxu0 %v17320_v33 }
 0xec5   : > { %15005 = vmatpush3.xpose.msra.mxu0 %v8913_v6  ;;  %15006 = vmatprep.mubr.msk.f32.mxu0 %vm16419_vm1, %v16420_v17 }
 0xec6   : > { %15009 = vmatprep.subr.mxu0 %v16420_v17 }
 0xec8   : > { %15007 = vmatmul.mubr.f32.vlgmr.msra.gmra.mrb[30].mxu0 %v8982_v35 }
 0xec9   : > { %15010 = vmatpush3.xpose.msra.mxu0 %v8993_v14  ;;  %15011 = vmatprep.mubr.msk.f32.mxu0 %vm16419_vm1, %v16420_v17 }
 0xeca   : > { %15014 = vmatprep.subr.mxu0 %v16420_v17 }
 0xed0   : > { %15012 = vmatmul.mubr.f32.vlgmr.msra.gmra.mrb[30].mxu0 %v8978_v5 }
 0xed1   : > { %15015 = vmatpush3.xpose.msra.mxu0 %v8990_v27  ;;  %15016 = vmatprep.mubr.msk.f32.mxu0 %vm16419_vm1, %v16420_v17 }
 0xed2   : > { %15019 = vmatprep.subr.mxu0 %v16420_v17 }
 0xed8   : > { %15017 = vmatmul.mubr.f32.vlgmr.msra.gmra.mrb[30].mxu0 %v8979_v7 }
 0xed9   : > { %15020 = vmatpush3.xpose.msra.mxu0 %v8913_v6  ;;  %15021 = vmatprep.mubr.msk.f32.mxu0 %vm16419_vm1, %v16420_v17 }
 0xeda   : > { %15024 = vmatprep.subr.mxu0 %v16420_v17 }
 0xee0   : > { %15022 = vmatmul.mubr.f32.vlgmr.msra.gmra.mrb[30].mxu0 %v8980_v48 }
 0xee1   : > { %15025 = vmatpush3.xpose.msra.mxu0 %v8991_v28  ;;  %15026 = vmatprep.mubr.msk.f32.mxu0 %vm16419_vm1, %v16420_v17 }
 0xee2   : > { %15029 = vmatprep.subr.mxu0 %v16420_v17 }
 0xee8   : > { %15027 = vmatmul.mubr.f32.vlgmr.msra.gmra.mrb[30].mxu0 %v8978_v5 }
 0xee9   : > { %15030 = vmatpush3.xpose.msra.mxu0 %v8913_v6  ;;  %15031 = vmatprep.mubr.msk.f32.mxu0 %vm16419_vm1, %v16420_v17 }
 0xeea   : > { %15064 = vmatprep.subr.mxu0 %v16420_v17 }
 0xef0   : > { %15032 = vmatmul.mubr.f32.vlgmr.msra.gmra.mrb[30].mxu0 %v8978_v5 }
 0xef1   : > { %15065 = vmatpush3.xpose.msra.mxu0 %v9830_v54  ;;  %15066 = vmatprep.mubr.msk.f32.mxu0 %vm16419_vm1, %v16420_v17 }
 0xef2   : > { %15069 = vmatprep.subr.mxu0 %v16420_v17 }
 0xef4   : > { %15067 = vmatmul.mubr.f32.vlgmr.msra.gmra.mrb[32].mxu0 %v9899_v51 }
 0xef5   : > { %15070 = vmatpush3.xpose.msra.mxu0 %v9910_v38  ;;  %15071 = vmatprep.mubr.msk.f32.mxu0 %vm16419_vm1, %v16420_v17 }
 0xef6   : > { %15074 = vmatprep.subr.mxu0 %v16420_v17 }
 0xefc   : > { %15072 = vmatmul.mubr.f32.vlgmr.msra.gmra.mrb[32].mxu0 %v9895_v55 }
 0xefd   : > { %15075 = vmatpush3.xpose.msra.mxu0 %v9907_v8  ;;  %15076 = vmatprep.mubr.msk.f32.mxu0 %vm16419_vm1, %v16420_v17 }
 0xefe   : > { %15079 = vmatprep.subr.mxu0 %v16420_v17 }
 0xf04   : > { %15077 = vmatmul.mubr.f32.vlgmr.msra.gmra.mrb[32].mxu0 %v9896_v63 }
 0xf05   : > { %15080 = vmatpush3.xpose.msra.mxu0 %v9830_v54  ;;  %15081 = vmatprep.mubr.msk.f32.mxu0 %vm16419_vm1, %v16420_v17 }
 0xf06   : > { %15084 = vmatprep.subr.mxu0 %v16420_v17 }
 0xf0c   : > { %15082 = vmatmul.mubr.f32.vlgmr.msra.gmra.mrb[32].mxu0 %v9897_v18 }
 0xf0d   : > { %15085 = vmatpush3.xpose.msra.mxu0 %v9908_v26  ;;  %15086 = vmatprep.mubr.msk.f32.mxu0 %vm16419_vm1, %v16420_v17 }
 0xf0e   : > { %15089 = vmatprep.subr.mxu0 %v16420_v17 }
 0xf14   : > { %15087 = vmatmul.mubr.f32.vlgmr.msra.gmra.mrb[32].mxu0 %v9895_v55 }
 0xf15   : > { %15090 = vmatpush3.xpose.msra.mxu0 %v9830_v54  ;;  %15091 = vmatprep.mubr.msk.f32.mxu0 %vm16419_vm1, %v16420_v17 }
 0xf16   : > { %15850 = vmatprep.subr.bf16.mxu0 %v16418_v12 }
 0xf1c   : > { %15092 = vmatmul.mubr.f32.vlgmr.msra.gmra.mrb[32].mxu0 %v9895_v55 }
 0xf1d   : > { %15132 = vmatprep.mubr.msk.f32.mxu0 %vm16419_vm1, %v16420_v17 }
 0xf92   : > { %v7520_v61 = vpop.f32.mrb[20].mxu1 }
 0xf93   : > { %v16110_v3 = vadd.f32 %v16409_v41, %v7520_v61  ;;  %v14913_v44 = vpop.f32.mrb[21].mxu1 }
 0xf95   : > { %v7524_v21 = vsel %vm1173_vm2, %v16110_v3, -inf }
 0xf96   : > { %7525 = vmax.xlane.f32.xlu0 %v7524_v21 }
 0xf97   : > { %v8437_v22 = vpop.f32.mrb[28].mxu0 }
 0xf98   : > { %v16111_v24 = vadd.f32 %v16409_v41, %v8437_v22  ;;  %v14973_v56 = vpop.f32.mrb[29].mxu0 }
 0xf9a   : > { %v8441_v25 = vsel %vm1173_vm2, %v16111_v24, -inf }
 0xf9b   : > { %8442 = vmax.xlane.f32.xlu1 %v8441_v25 }
 0xfac   : > { %7535 = vrot.lane.b32.xlu1 %v17297_v11, %s18016_s21 }
 0xfc3   : > { %v9354_v30 = vpop.f32.mrb[30].mxu0 }
 0xfc4   : > { %v15033_v31 = vpop.f32.mrb[31].mxu0  ;;  %v16112_v50 = vadd.f32 %v16409_v41, %v9354_v30 }
 0xfc6   : > { %v9358_v10 = vsel %vm1173_vm2, %v16112_v50, -inf }
 0xfef   : > { %v10271_v0 = vpop.f32.mrb[32].mxu0 }
 0xff0   : > { %v15093_v1 = vpop.f32.mrb[33].mxu0  ;;  %v16113_v52 = vadd.f32 %v16409_v41, %v10271_v0 }
 0xff2   : > { %v10275_v57 = vsel %vm1173_vm2, %v16113_v52, -inf }
0x1023   : > { %v7526_v32 = vpop.xlane.xlu0 %7525 }
0x1024   : > { %v7527_v33 = vsub.f32 %v16110_v3, %v7526_v32 }
0x1026   : > { %v7528_v37 = vmul.f32 1.442695, %v7527_v33 }
0x1028   : > { %16385 = vpow2.f32 %v7528_v37  ;;  %v8443_v60 = vpop.xlane.xlu1 %8442 }
0x1029   : > { %v8444_v39 = vsub.f32 %v16111_v24, %v8443_v60 }
0x102b   : > { %v8445_v40 = vmul.f32 1.442695, %v8444_v39 }
0x102c   : > { %v7536_v45 = vpop.permute.xlu1 %7535 }
0x102d   : > { %v17413_v46 = vand.u32 4294901760, %v7536_v45  ;;  %16387 = vpow2.f32 %v8445_v40 }
0x102f   : > { %14915 = vmatpush3.msra.mxu1 %v17413_v46  ;;  %v7619_v4 = vsub.f32 %v7536_v45, %v17413_v46 }
0x1030   : > { %14919 = vmatprep.subr.mxu1 %v16420_v17 }
0x1031   : > { %v7620_v49 = vand.u32 4294901760, %v7619_v4 }
0x1032   : > { %v16386_v47 = vpop.eup %16385 }
0x1033   : > { %v7530_v9 = vsel %vm1173_vm2, %v16386_v47, 0.0  ;;  %v7621_v36 = vsub.f32 %v7619_v4, %v7620_v49 }
0x1034   : > { %7531 = vadd.xlane.f32.xlu0 %v7530_v9 }
0x1035   : > { %v7622_v55 = vand.u32 4294901760, %v7621_v36 }
0x1037   : > { %v16388_v2 = vpop.eup %16387 }
0x1038   : > { %9359 = vmax.xlane.f32.xlu0 %v9358_v10  ;;  %v8447_v53 = vsel %vm1173_vm2, %v16388_v2, 0.0 }
0x103c   : > { %8448 = vadd.xlane.f32.xlu0 %v8447_v53 }
0x1040   : > { %10276 = vmax.xlane.f32.xlu0 %v10275_v57 }
0x1056   : > { %8452 = vrot.lane.b32.xlu0 %v17297_v11, %s18017_s2  ;;  %s18023_s2 = sld [smem:[#allocation5_spill]] }
0x105a   : > { %9369 = vrot.lane.b32.xlu0 %v17297_v11, %s18018_s29 }
0x105c   : > { %s637_s29 = scalar_lea.vmem %s18023_s2, %s16548_s23 }
0x10c1   : > { %v7532_v58 = vpop.xlane.xlu0 %7531 }
0x10c2   : > { %16389 = vrcp.f32 %v7532_v58 }
0x10c5   : > { %v9360_v19 = vpop.xlane.xlu0 %9359 }
0x10c6   : > { %v9361_v20 = vsub.f32 %v16112_v50, %v9360_v19 }
0x10c8   : > { %v9362_v59 = vmul.f32 1.442695, %v9361_v20 }
0x10c9   : > { %v8449_v42 = vpop.xlane.xlu0 %8448 }
0x10ca   : > { %16391 = vpow2.f32 %v9362_v59 }
0x10cc   : > { %v16390_v62 = vpop.eup %16389 }
0x10cd   : > { %v7534_v5 = vmul.f32 %v16390_v62, %v16386_v47  ;;  %v10277_v6 = vpop.xlane.xlu0 %10276 }
0x10ce   : > { %v10278_v7 = vsub.f32 %v16113_v52, %v10277_v6 }
0x10cf   : > { %v7539_v27 = vsel %vm1173_vm2, %v7534_v5, 0 }
0x10d0   : > { %v10279_v48 = vmul.f32 1.442695, %v10278_v7  ;;  %v7607_v28 = vand.u32 4294901760, %v7539_v27 }
0x10d1   : > { %v8453_v34 = vpop.permute.xlu0 %8452 }
0x10d2   : > { %16393 = vpow2.f32 %v10279_v48  ;;  %v7608_v13 = vsub.f32 %v7539_v27, %v7607_v28  ;;  %v8459_v43 = vand.u32 4294901760, %v8453_v34 }
0x10d3   : > { %16395 = vrcp.f32 %v8449_v42 }
0x10d4   : > { %v17427_v35 = vpop.eup %16391  ;;  %v7609_v14 = vand.u32 4294901760, %v7608_v13  ;;  %v8536_v38 = vsub.f32 %v8453_v34, %v8459_v43 }
0x10d5   : > { %v9364_v15 = vsel %vm1173_vm2, %v17427_v35, 0.0  ;;  %v9370_v24 = vpop.permute.xlu0 %9369 }
0x10d6   : > { %9365 = vadd.xlane.f32.xlu1 %v9364_v15  ;;  %v7610_v16 = vsub.f32 %v7608_v13, %v7609_v14  ;;  %v8537_v41 = vand.u32 4294901760, %v8536_v38  ;;  %v9376_v56 = vand.u32 4294901760, %v9370_v24  ;;  %v13519_v15 = vld [vmem:[%s17977_s8 + $0x30] sm:$0xff] }
0x10d8   : > { %v7611_v23 = vand.u32 4294901760, %v7610_v16  ;;  %v8538_v44 = vsub.f32 %v8536_v38, %v8537_v41  ;;  %v9453_v31 = vsub.f32 %v9370_v24, %v9376_v56  ;;  %v13520_v16 = vld [vmem:[%s17977_s8 + $0x38] sm:$0xff] }
0x10da   : > { %14917 = vmatmul.mubr.f32.vlgmr.msra.gmra.mrb[22].mxu1 %v7611_v23  ;;  %v8539_v22 = vand.u32 4294901760, %v8538_v44  ;;  %v9454_v33 = vand.u32 4294901760, %v9453_v31  ;;  %v10768_v23 = vand.u32 4294901760, %v13519_v15 }
0x10db   : > { %14920 = vmatpush3.msra.mxu1 %v7622_v55  ;;  %14921 = vmatprep.mubr.msk.f32.mxu1 %vm16419_vm1, %v16420_v17  ;;  %v10771_v55 = vand.u32 4294901760, %v13520_v16 }
0x10dc   : > { %v17433_v54 = vpop.eup %16393  ;;  %14924 = vmatprep.subr.mxu1 %v16420_v17  ;;  %v9455_v39 = vsub.f32 %v9453_v31, %v9454_v33 }
0x10dd   : > { %v10281_v63 = vsel %vm1173_vm2, %v17433_v54, 0.0  ;;  %v16396_v8 = vpop.eup %16395 }
0x10de   : > { %10282 = vadd.xlane.f32.xlu0 %v10281_v63  ;;  %v8451_v18 = vmul.f32 %v16396_v8, %v16388_v2  ;;  %v15854_v8 = vpack.c.bf16 %v10771_v55, %v10768_v23 }
0x10e0   : > { %v8456_v26 = vsel %vm1173_vm2, %v8451_v18, 0  ;;  %v10856_v18 = vsub.f32 %v13519_v15, %v10768_v23 }
0x10e2   : > { %14922 = vmatmul.mubr.f32.vlgmr.msra.gmra.mrb[22].mxu1 %v7607_v28 }
0x10e3   : > { %14925 = vmatpush3.msra.mxu1 %v7619_v4  ;;  %14926 = vmatprep.mubr.msk.f32.mxu1 %vm16419_vm1, %v16420_v17 }
0x10e4   : > { %14929 = vmatprep.subr.mxu1 %v16420_v17 }
0x10e7   : > { %10286 = vrot.lane.b32.xlu1 %v17297_v11, %s18019_s27  ;;  %v8524_v11 = vand.u32 4294901760, %v8456_v26  ;;  %s18022_s27 = smov 24  }
0x10e9   : > { %v8525_v51 = vsub.f32 %v8456_v26, %v8524_v11  ;;  %v10863_v26 = vsub.f32 %v13520_v16, %v10771_v55 }
0x10ea   : > { %14927 = vmatmul.mubr.f32.vlgmr.msra.gmra.mrb[22].mxu1 %v7608_v13  ;;  %v13518_v13 = vld [vmem:[%s17977_s8 + $0x28] sm:$0xff] }
0x10eb   : > { %14930 = vmatpush3.msra.mxu1 %v17413_v46  ;;  %14931 = vmatprep.mubr.msk.f32.mxu1 %vm16419_vm1, %v16420_v17  ;;  %v8526_v61 = vand.u32 4294901760, %v8525_v51 }
0x10ec   : > { %14934 = vmatprep.subr.mxu1 %v16420_v17 }
0x10ed   : > { %v8527_v3 = vsub.f32 %v8525_v51, %v8526_v61 }
0x10ef   : > { %v8528_v21 = vand.u32 4294901760, %v8527_v3  ;;  %v10864_v3 = vand.u32 4294901760, %v10863_v26 }
0x10f2   : > { %14932 = vmatmul.mubr.f32.vlgmr.msra.gmra.mrb[22].mxu1 %v7609_v14  ;;  %v10765_v14 = vand.u32 4294901760, %v13518_v13 }
0x10f3   : > { %14935 = vmatpush3.msra.mxu1 %v7620_v49  ;;  %14936 = vmatprep.mubr.msk.f32.mxu1 %vm16419_vm1, %v16420_v17  ;;  %v13517_v49 = vld [vmem:[%s17977_s8 + $0x20] sm:$0xff] }
0x10f4   : > { %14939 = vmatprep.subr.mxu1 %v16420_v17  ;;  %v10849_v63 = vsub.f32 %v13518_v13, %v10765_v14 }
0x10fa   : > { %14937 = vmatmul.mubr.f32.vlgmr.msra.gmra.mrb[22].mxu1 %v7607_v28 }
0x10fb   : > { %14940 = vmatpush3.msra.mxu1 %v17413_v46  ;;  %14941 = vmatprep.mubr.msk.f32.mxu1 %vm16419_vm1, %v16420_v17  ;;  %v9456_v46 = vand.u32 4294901760, %v9455_v39 }
0x10fc   : > { %14974 = vmatprep.subr.mxu1 %v16420_v17 }
0x1102   : > { %14942 = vmatmul.mubr.f32.vlgmr.msra.gmra.mrb[22].mxu1 %v7607_v28 }
0x1103   : > { %14975 = vmatpush3.msra.mxu1 %v8459_v43  ;;  %14976 = vmatprep.mubr.msk.f32.mxu1 %vm16419_vm1, %v16420_v17 }
0x1104   : > { %14979 = vmatprep.subr.mxu1 %v16420_v17 }
0x1106   : > { %14977 = vmatmul.mubr.f32.vlgmr.msra.gmra.mrb[24].mxu1 %v8528_v21 }
0x1107   : > { %14980 = vmatpush3.msra.mxu1 %v8539_v22  ;;  %14981 = vmatprep.mubr.msk.f32.mxu1 %vm16419_vm1, %v16420_v17  ;;  %v10865_v22 = vsub.f32 %v10863_v26, %v10864_v3 }
0x1108   : > { %14984 = vmatprep.subr.mxu1 %v16420_v17 }
0x110e   : > { %14982 = vmatmul.mubr.f32.vlgmr.msra.gmra.mrb[24].mxu1 %v8524_v11 }
0x110f   : > { %14985 = vmatpush3.msra.mxu1 %v8536_v38  ;;  %14986 = vmatprep.mubr.msk.f32.mxu1 %vm16419_vm1, %v16420_v17 }
0x1110   : > { %14989 = vmatprep.subr.mxu1 %v16420_v17 }
0x1116   : > { %14987 = vmatmul.mubr.f32.vlgmr.msra.gmra.mrb[24].mxu1 %v8525_v51 }
0x1117   : > { %14990 = vmatpush3.msra.mxu1 %v8459_v43  ;;  %14991 = vmatprep.mubr.msk.f32.mxu1 %vm16419_vm1, %v16420_v17 }
0x1118   : > { %14994 = vmatprep.subr.mxu1 %v16420_v17 }
0x111e   : > { %14992 = vmatmul.mubr.f32.vlgmr.msra.gmra.mrb[24].mxu1 %v8526_v61 }
0x111f   : > { %14995 = vmatpush3.msra.mxu1 %v8537_v41  ;;  %14996 = vmatprep.mubr.msk.f32.mxu1 %vm16419_vm1, %v16420_v17  ;;  %v10857_v41 = vand.u32 4294901760, %v10856_v18 }
0x1120   : > { %14999 = vmatprep.subr.mxu1 %v16420_v17 }
0x1121   : > { %v10858_v21 = vsub.f32 %v10856_v18, %v10857_v41 }
0x1126   : > { %14997 = vmatmul.mubr.f32.vlgmr.msra.gmra.mrb[24].mxu1 %v8524_v11 }
0x1127   : > { %15000 = vmatpush3.msra.mxu1 %v8459_v43  ;;  %15001 = vmatprep.mubr.msk.f32.mxu1 %vm16419_vm1, %v16420_v17 }
0x1128   : > { %15034 = vmatprep.subr.mxu1 %v16420_v17 }
0x112e   : > { %15002 = vmatmul.mubr.f32.vlgmr.msra.gmra.mrb[24].mxu1 %v8524_v11  ;;  %v10850_v11 = vand.u32 4294901760, %v10849_v63 }
0x112f   : > { %15035 = vmatpush3.msra.mxu1 %v9376_v56  ;;  %15036 = vmatprep.mubr.msk.f32.mxu1 %vm16419_vm1, %v16420_v17 }
0x1130   : > { %15039 = vmatprep.subr.mxu1 %v16420_v17  ;;  %v10851_v51 = vsub.f32 %v10849_v63, %v10850_v11 }
0x1132   : > { %v10852_v61 = vand.u32 4294901760, %v10851_v51 }
0x1163   : > { %v9366_v25 = vpop.xlane.xlu1 %9365 }
0x1164   : > { %16397 = vrcp.f32 %v9366_v25  ;;  %v10859_v25 = vand.u32 4294901760, %v10858_v21 }
0x1167   : > { %v10287_v2 = vpop.permute.xlu1 %10286 }
0x1168   : > { %v10293_v53 = vand.u32 4294901760, %v10287_v2 }
0x116a   : > { %v10370_v58 = vsub.f32 %v10287_v2, %v10293_v53 }
0x116b   : > { %v10283_v47 = vpop.xlane.xlu0 %10282 }
0x116c   : > { %16399 = vrcp.f32 %v10283_v47  ;;  %v10371_v20 = vand.u32 4294901760, %v10370_v58 }
0x116e   : > { %v16398_v30 = vpop.eup %16397  ;;  %v10372_v42 = vsub.f32 %v10370_v58, %v10371_v20 }
0x116f   : > { %v9368_v0 = vmul.f32 %v16398_v30, %v17427_v35  ;;  %v10762_v35 = vand.u32 4294901760, %v13517_v49  ;;  %v10866_v30 = vand.u32 4294901760, %v10865_v22 }
0x1170   : > { %v10373_v4 = vand.u32 4294901760, %v10372_v42 }
0x1171   : > { %v9373_v1 = vsel %vm1173_vm2, %v9368_v0, 0  ;;  %v15851_v36 = vpack.c.bf16 %v10765_v14, %v10762_v35 }
0x1172   : > { %v9441_v32 = vand.u32 4294901760, %v9373_v1 }
0x1173   : > { %15852 = vmatpush3.bf16.msra.mxu0 %v15851_v36 }
0x1174   : > { %v9442_v37 = vsub.f32 %v9373_v1, %v9441_v32  ;;  %15853 = vmatprep.subr.bf16.mxu0 %v16418_v12  ;;  %v15866_v1 = vpack.c.bf16 %v10863_v26, %v10856_v18  ;;  %v13526_v18 = vld [vmem:[%s17981_s12 + $0x30] sm:$0xff] }
0x1176   : > { %v9443_v60 = vand.u32 4294901760, %v9442_v37  ;;  %v16400_v50 = vpop.eup %16399 }
0x1177   : > { %v10285_v9 = vmul.f32 %v16400_v50, %v17433_v54  ;;  %v10842_v54 = vsub.f32 %v13517_v49, %v10762_v35  ;;  %15855 = vmatpush3.bf16.msra.mxu0 %v15854_v8  ;;  %v13521_v35 = vld [vmem:[%s17978_s9 + $0x1] ss:$0 sm:$0xff] }
0x1178   : > { %v9444_v40 = vsub.f32 %v9442_v37, %v9443_v60  ;;  %15856 = vmatprep.subr.bf16.mxu0 %v16418_v12 }
0x1179   : > { %v10290_v10 = vsel %vm1173_vm2, %v10285_v9, 0  ;;  %v10843_v34 = vand.u32 4294901760, %v10842_v54  ;;  %v15863_v0 = vpack.c.bf16 %v10849_v63, %v10842_v54 }
0x117a   : > { %v9445_v45 = vand.u32 4294901760, %v9444_v40  ;;  %v10358_v52 = vand.u32 4294901760, %v10290_v10 }
0x117b   : > { %v10844_v43 = vsub.f32 %v10842_v54, %v10843_v34 }
0x117c   : > { %15037 = vmatmul.mubr.f32.vlgmr.msra.gmra.mrb[26].mxu1 %v9445_v45  ;;  %v10359_v57 = vsub.f32 %v10290_v10, %v10358_v52 }
0x117d   : > { %15040 = vmatpush3.msra.mxu1 %v9456_v46  ;;  %15041 = vmatprep.mubr.msk.f32.mxu1 %vm16419_vm1, %v16420_v17  ;;  %v10845_v38 = vand.u32 4294901760, %v10844_v43  ;;  %v11298_v43 = vand.u32 4294901760, %v13526_v18 }
0x117e   : > { %15044 = vmatprep.subr.mxu1 %v16420_v17  ;;  %v10360_v19 = vand.u32 4294901760, %v10359_v57 }
0x117f   : > { %v15857_v44 = vpack.c.bf16 %v10852_v61, %v10845_v38 }
0x1180   : > { %v10361_v59 = vsub.f32 %v10359_v57, %v10360_v19 }
0x1182   : > { %v10362_v62 = vand.u32 4294901760, %v10361_v59 }
0x1184   : > { %15042 = vmatmul.mubr.f32.vlgmr.msra.gmra.mrb[26].mxu1 %v9441_v32 }
0x1185   : > { %15045 = vmatpush3.msra.mxu1 %v9453_v31  ;;  %15046 = vmatprep.mubr.msk.f32.mxu1 %vm16419_vm1, %v16420_v17  ;;  %v15860_v31 = vpack.c.bf16 %v10866_v30, %v10859_v25 }
0x1186   : > { %15049 = vmatprep.subr.mxu1 %v16420_v17 }
0x118c   : > { %15047 = vmatmul.mubr.f32.vlgmr.msra.gmra.mrb[26].mxu1 %v9442_v37 }
0x118d   : > { %15050 = vmatpush3.msra.mxu1 %v9376_v56  ;;  %15051 = vmatprep.mubr.msk.f32.mxu1 %vm16419_vm1, %v16420_v17 }
0x118e   : > { %15054 = vmatprep.subr.mxu1 %v16420_v17 }
0x1194   : > { %15052 = vmatmul.mubr.f32.vlgmr.msra.gmra.mrb[26].mxu1 %v9443_v60 }
0x1195   : > { %15055 = vmatpush3.msra.mxu1 %v9454_v33  ;;  %15056 = vmatprep.mubr.msk.f32.mxu1 %vm16419_vm1, %v16420_v17  ;;  %v15878_v33 = vpack.c.bf16 %v10864_v3, %v10857_v41  ;;  %v11386_v3 = vsub.f32 %v13526_v18, %v11298_v43 }
0x1196   : > { %15059 = vmatprep.subr.mxu1 %v16420_v17 }
0x119c   : > { %15057 = vmatmul.mubr.f32.vlgmr.msra.gmra.mrb[26].mxu1 %v9441_v32 }
0x119d   : > { %15060 = vmatpush3.msra.mxu1 %v9376_v56  ;;  %15061 = vmatprep.mubr.msk.f32.mxu1 %vm16419_vm1, %v16420_v17 }
0x119e   : > { %15094 = vmatprep.subr.mxu1 %v16420_v17 }
0x11a4   : > { %15062 = vmatmul.mubr.f32.vlgmr.msra.gmra.mrb[26].mxu1 %v9441_v32  ;;  %v15875_v32 = vpack.c.bf16 %v10850_v11, %v10843_v34  ;;  %v13527_v11 = vld [vmem:[%s17981_s12 + $0x38] sm:$0xff] }
0x11a5   : > { %15095 = vmatpush3.msra.mxu1 %v10293_v53  ;;  %15096 = vmatprep.mubr.msk.f32.mxu1 %vm16419_vm1, %v16420_v17  ;;  %v11301_v51 = vand.u32 4294901760, %v13527_v11 }
0x11a6   : > { %15099 = vmatprep.subr.mxu1 %v16420_v17 }
0x11a7   : > { %v17583_v21 = vpack.c.bf16 %v11301_v51, %v11298_v43 }
0x11a8   : > { %15097 = vmatmul.mubr.f32.vlgmr.msra.gmra.mrb[28].mxu1 %v10362_v62 }
0x11a9   : > { %15100 = vmatpush3.msra.mxu1 %v10373_v4  ;;  %15101 = vmatprep.mubr.msk.f32.mxu1 %vm16419_vm1, %v16420_v17 }
0x11aa   : > { %15104 = vmatprep.subr.mxu1 %v16420_v17 }
0x11b0   : > { %15102 = vmatmul.mubr.f32.vlgmr.msra.gmra.mrb[28].mxu1 %v10358_v52 }
0x11b1   : > { %15105 = vmatpush3.msra.mxu1 %v10370_v58  ;;  %15106 = vmatprep.mubr.msk.f32.mxu1 %vm16419_vm1, %v16420_v17 }
0x11b2   : > { %15109 = vmatprep.subr.mxu1 %v16420_v17 }
0x11b8   : > { %15107 = vmatmul.mubr.f32.vlgmr.msra.gmra.mrb[28].mxu1 %v10359_v57 }
0x11b9   : > { %15110 = vmatpush3.msra.mxu1 %v10293_v53  ;;  %15111 = vmatprep.mubr.msk.f32.mxu1 %vm16419_vm1, %v16420_v17 }
0x11ba   : > { %15114 = vmatprep.subr.mxu1 %v16420_v17 }
0x11c0   : > { %15112 = vmatmul.mubr.f32.vlgmr.msra.gmra.mrb[28].mxu1 %v10360_v19 }
0x11c1   : > { %15115 = vmatpush3.msra.mxu1 %v10371_v20  ;;  %15116 = vmatprep.mubr.msk.f32.mxu1 %vm16419_vm1, %v16420_v17 }
0x11c2   : > { %15119 = vmatprep.subr.mxu1 %v16420_v17 }
0x11c8   : > { %15117 = vmatmul.mubr.f32.vlgmr.msra.gmra.mrb[28].mxu1 %v10358_v52 }
0x11c9   : > { %15120 = vmatpush3.msra.mxu1 %v10293_v53  ;;  %15121 = vmatprep.mubr.msk.f32.mxu1 %vm16419_vm1, %v16420_v17 }
0x11ca   : > { %15868 = vmatprep.subr.bf16.mxu1 %v16418_v12 }
0x11d0   : > { %15122 = vmatmul.mubr.f32.vlgmr.msra.gmra.mrb[28].mxu1 %v10358_v52 }
0x11d1   : > { %15165 = vmatprep.mubr.msk.f32.mxu1 %vm16419_vm1, %v16420_v17  ;;  %15870 = vmatpush3.bf16.msra.mxu1 %v15851_v36 }
0x11d2   : > { %15871 = vmatprep.subr.bf16.mxu1 %v16418_v12 }
0x11d5   : > { %v7983_v5 = vpop.f32.mrb[22].mxu1  ;;  %15873 = vmatpush3.bf16.msra.mxu1 %v15854_v8 }
0x11d6   : > { %v14943_v6 = vpop.f32.mrb[23].mxu1  ;;  %15880 = vmatprep.subr.bf16.mxu1 %v16418_v12 }
0x1201   : > { %v8900_v7 = vpop.f32.mrb[24].mxu1 }
0x1202   : > { %10739 = vrot.lane.b32.xlu0 %v8900_v7, %s18020_s3  ;;  %v15003_v27 = vpop.f32.mrb[25].mxu1 }
0x1274   : > { %v10740_v37 = vpop.permute.xlu0 %10739 }
0x1275   : > { %v10750_v39 = vsel %vm1173_vm2, %v7983_v5, %v10740_v37 }
0x1277   : > { %v9817_v48 = vpop.f32.mrb[26].mxu1 }
0x1278   : > { %10743 = vrot.lane.b32.xlu1 %v9817_v48, %s18021_s25  ;;  %v15063_v28 = vpop.f32.mrb[27].mxu1 }
0x12a3   : > { %v10734_v24 = vpop.f32.mrb[28].mxu1 }
0x12a4   : > { %10747 = vrot.lane.b32.xlu1 %v10734_v24, %s18022_s27  ;;  %v15123_v56 = vpop.f32.mrb[29].mxu1 }
0x12ea   : > { %v10744_v60 = vpop.permute.xlu1 %10743 }
0x12eb   : > { %v10751_v40 = vsel %vm4851_vm3, %v10750_v39, %v10744_v60 }
0x1316   : > { %v10748_v45 = vpop.permute.xlu1 %10747 }
0x1317   : > { %v10752_v46 = vsel %vm4853_vm4, %v10751_v40, %v10748_v45 }
0x1318   : > { %v10759_v47 = vsel %vm647_vm0, %v10752_v46, 0 }
0x1319   : > { %v10830_v50 = vand.u32 4294901760, %v10759_v47 }
0x131b   : > { %v10831_v9 = vsub.f32 %v10759_v47, %v10830_v50 }
0x131d   : > { %v10832_v10 = vand.u32 4294901760, %v10831_v9 }
0x131f   : > { %15166 = vmatmul.mubr.f32.vlgmr.msra.gmra.mrb[30].mxu1 %v10832_v10  ;;  %v10833_v2 = vsub.f32 %v10831_v9, %v10832_v10 }
0x1320   : > { %15882 = vmatpush3.bf16.msra.mxu1 %v15851_v36  ;;  %15187 = vmatprep.mubr.msk.f32.mxu1 %vm16419_vm1, %v16420_v17 }
0x1321   : > { %15883 = vmatprep.subr.bf16.mxu1 %v16418_v12  ;;  %v10834_v52 = vand.u32 4294901760, %v10833_v2 }
0x1323   : > { %15133 = vmatmul.mubr.f32.vlgmr.msra.gmra.mrb[34].mxu0 %v10834_v52 }
0x1324   : > { %15858 = vmatpush3.bf16.msra.mxu0 %v15857_v44  ;;  %15885 = vmatpush3.bf16.msra.mxu1 %v15854_v8  ;;  %v13524_v8 = vld [vmem:[%s17981_s12 + $0x20] sm:$0xff]  ;;  %v11393_v44 = vsub.f32 %v13527_v11, %v11301_v51  ;;  %v13536_v51 = vld [vmem:[%s17983_s14 + $0xb0] sm:$0xff] }
0x1325   : > { %15859 = vmatprep.subr.bf16.mxu0 %v16418_v12  ;;  %15143 = vmatprep.mubr.msk.f32.mxu0 %vm16419_vm1, %v16420_v17  ;;  %v11292_v26 = vand.u32 4294901760, %v13524_v8 }
0x1326   : > { %15922 = vmatprep.subr.bf16.mxu1 %v16418_v12  ;;  %v15902_v46 = vpack.c.bf16 %v11393_v44, %v11386_v3 }
0x1327   : > { %15188 = vmatmul.mubr.f32.vlgmr.msra.gmra.mrb[32].mxu1 %v10830_v50  ;;  %v11372_v61 = vsub.f32 %v13524_v8, %v11292_v26  ;;  %v13535_v8 = vld [vmem:[%s17983_s14 + $0xa8] sm:$0xff] }
0x1328   : > { %15861 = vmatpush3.bf16.msra.mxu0 %v15860_v31  ;;  %15288 = vmatprep.mubr.msk.f32.mxu1 %vm16419_vm1, %v16420_v17 }
0x1329   : > { %15862 = vmatprep.subr.bf16.mxu0 %v16418_v12  ;;  %v11373_v22 = vand.u32 4294901760, %v11372_v61 }
0x132b   : > { %15144 = vmatmul.mubr.f32.vlgmr.msra.gmra.mrb[36].mxu0 %v10830_v50  ;;  %v11374_v56 = vsub.f32 %v11372_v61, %v11373_v22 }
0x132c   : > { %15864 = vmatpush3.bf16.msra.mxu0 %v15863_v0  ;;  %15154 = vmatprep.mubr.msk.f32.mxu0 %vm16419_vm1, %v16420_v17  ;;  %v11387_v0 = vand.u32 4294901760, %v11386_v3 }
0x132d   : > { %15865 = vmatprep.subr.bf16.mxu0 %v16418_v12  ;;  %v11375_v30 = vand.u32 4294901760, %v11374_v56  ;;  %v13539_v56 = vld [vmem:[%s17983_s14 + $0xc8] sm:$0xff] }
0x1330   : > { %15867 = vmatpush3.bf16.msra.mxu0 %v15866_v1  ;;  %v11394_v1 = vand.u32 4294901760, %v11393_v44 }
0x1331   : > { %15874 = vmatprep.subr.bf16.mxu0 %v16418_v12 }
0x1332   : > { %v11395_v37 = vsub.f32 %v11393_v44, %v11394_v1 }
0x1333   : > { %15155 = vmatmul.mubr.f32.vlgmr.msra.gmra.mrb[38].mxu0 %v10831_v9 }
0x1334   : > { %15876 = vmatpush3.bf16.msra.mxu0 %v15875_v32  ;;  %15176 = vmatprep.mubr.msk.f32.mxu0 %vm16419_vm1, %v16420_v17  ;;  %v11396_v39 = vand.u32 4294901760, %v11395_v37  ;;  %v13541_v37 = vld [vmem:[%s17983_s14 + $0xd8] sm:$0xff] }
0x1335   : > { %15877 = vmatprep.subr.bf16.mxu0 %v16418_v12 }
0x1338   : > { %15879 = vmatpush3.bf16.msra.mxu0 %v15878_v33  ;;  %v11388_v33 = vsub.f32 %v11386_v3, %v11387_v0 }
0x1339   : > { %15886 = vmatprep.subr.bf16.mxu0 %v16418_v12 }
0x133a   : > { %v11389_v60 = vand.u32 4294901760, %v11388_v33  ;;  %v13540_v33 = vld [vmem:[%s17983_s14 + $0xd0] sm:$0xff] }
0x133b   : > { %15177 = vmatmul.mubr.f32.vlgmr.msra.gmra.mrb[40].mxu0 %v10830_v50  ;;  %v15914_v50 = vpack.c.bf16 %v11394_v1, %v11387_v0 }
0x133c   : > { %15198 = vmatprep.mubr.msk.f32.mxu0 %vm16419_vm1, %v16420_v17  ;;  %v15896_v40 = vpack.c.bf16 %v11396_v39, %v11389_v60  ;;  %v11832_v39 = vand.u32 4294901760, %v13540_v33 }
0x13f2   : > { %v11084_v53 = vpop.f32.mrb[30].mxu1 }
0x13f3   : > { %v15167_v57 = vpop.f32.mrb[31].mxu1 }
0x13f6   : > { %v10836_v58 = vpop.f32.mrb[34].mxu0 }
0x13f7   : > { %v15134_v19 = vpop.f32.mrb[35].mxu0 }
0x13fa   : > { %v11242_v20 = vpop.f32.mrb[32].mxu1 }
0x13fb   : > { %v15189_v59 = vpop.f32.mrb[33].mxu1 }
0x13fe   : > { %v10927_v42 = vpop.f32.mrb[36].mxu0 }
0x13ff   : > { %v10928_v62 = vadd.f32 %v10927_v42, %v10836_v58  ;;  %v15145_v4 = vpop.f32.mrb[37].mxu0  ;;  %v13523_v58 = vld [vmem:[%s17980_s11 + $0x1] ss:$0 sm:$0xff] }
0x1406   : > { %v11007_v5 = vpop.f32.mrb[38].mxu0 }
0x1407   : > { %v11008_v6 = vadd.f32 %v11007_v5, %v10928_v62  ;;  %v15156_v7 = vpop.f32.mrb[39].mxu0 }
0x1408   : > { %v13530_v7 = vld [vmem:[%s17983_s14 + $0x80] sm:$0xff] }
0x1409   : > { %v11085_v27 = vadd.f32 %v11084_v53, %v11008_v6  ;;  %v13522_v53 = vld [vmem:[%s17979_s10 + $0x1] ss:$0 sm:$0xff] }
0x140e   : > { %v11167_v48 = vpop.f32.mrb[40].mxu0 }
0x140f   : > { %v11168_v28 = vadd.f32 %v11167_v48, %v11085_v27  ;;  %v15178_v49 = vpop.f32.mrb[41].mxu0  ;;  %v13531_v27 = vld [vmem:[%s17983_s14 + $0x88] sm:$0xff]  ;;  %v11802_v48 = vand.u32 4294901760, %v13530_v7 }
0x1411   : > { %v11243_v13 = vadd.f32 %v11242_v20, %v11168_v28  ;;  %v11805_v28 = vand.u32 4294901760, %v13531_v27  ;;  %v17627_v49 = vsub.f32 %v13530_v7, %v11802_v48 }
0x1413   : > { %v11246_v14 = vadd.f32 %v11243_v13, %v17235_v29  ;;  %v13525_v29 = vld [vmem:[%s17981_s12 + $0x28] sm:$0xff]  ;;  %v17629_v13 = vsub.f32 %v13531_v27, %v11805_v28 }
0x1414   : > { %v11295_v34 = vand.u32 4294901760, %v13525_v29 }
0x1415   : > { %v17562_v36 = vadd.f32 %v13521_v35, %v11246_v14  ;;  %v13532_v35 = vld [vmem:[%s17983_s14 + $0x90] sm:$0xff]  ;;  %v13533_v14 = vld [vmem:[%s17983_s14 + $0x98] sm:$0xff] }
0x1416   : > { %v17580_v38 = vpack.c.bf16 %v11295_v34, %v11292_v26  ;;  %v11379_v41 = vsub.f32 %v13525_v29, %v11295_v34  ;;  %v11817_v26 = vand.u32 4294901760, %v13535_v8  ;;  %v17652_v34 = vpack.c.bf16 %v11805_v28, %v11802_v48 }
0x1417   : > { %v11255_v15 = vsel %vm647_vm0, %v17562_v36, 0.0  ;;  %v11895_v48 = vand.u32 4294901760, %v17627_v49  ;;  %v11902_v28 = vand.u32 4294901760, %v17629_v13 }
0x1418   : > { %11256 = vadd.xlane.f32.xlu1 %v11255_v15  ;;  %15888 = vmatpush3.bf16.msra.mxu0 %v17580_v38  ;;  %v11380_v24 = vand.u32 4294901760, %v11379_v41  ;;  %v15899_v45 = vpack.c.bf16 %v11379_v41, %v11372_v61  ;;  %v15971_v15 = vpack.c.bf16 %v17629_v13, %v17627_v49  ;;  %v17656_v43 = vsub.f32 %v13535_v8, %v11817_v26 }
0x1419   : > { %15889 = vmatprep.subr.bf16.mxu0 %v16418_v12  ;;  %15924 = vmatpush3.bf16.msra.mxu1 %v17652_v34 }
0x141a   : > { %v11381_v25 = vsub.f32 %v11379_v41, %v11380_v24  ;;  %v15911_v47 = vpack.c.bf16 %v11380_v24, %v11373_v22  ;;  %v11820_v41 = vand.u32 4294901760, %v13536_v51  ;;  %15925 = vmatprep.subr.bf16.mxu1 %v16418_v12  ;;  %v13538_v24 = vld [vmem:[%s17983_s14 + $0xc0] sm:$0xff] }
0x141c   : > { %15891 = vmatpush3.bf16.msra.mxu0 %v17583_v21  ;;  %v11382_v31 = vand.u32 4294901760, %v11381_v25 }
0x141d   : > { %15892 = vmatprep.subr.bf16.mxu0 %v16418_v12 }
0x141e   : > { %v15893_v32 = vpack.c.bf16 %v11382_v31, %v11375_v30  ;;  %v11826_v30 = vand.u32 4294901760, %v13538_v24  ;;  %v11829_v31 = vand.u32 4294901760, %v13539_v56 }
0x1420   : > { %v17688_v1 = vsub.f32 %v13538_v24, %v11826_v30 }
0x14a5   : > { %v11257_v16 = vpop.xlane.xlu1 %11256 }
0x14a6   : > { %v11258_v23 = vmul.f32 0.03125, %v11257_v16  ;;  %v11808_v16 = vand.u32 4294901760, %v13532_v35 }
0x14a8   : > { %v11259_v55 = vsub.f32 %v17562_v36, %v11258_v23  ;;  %v11811_v23 = vand.u32 4294901760, %v13533_v14 }
0x14aa   : > { %v11260_v54 = vmul.f32 %v11259_v55, %v11259_v55  ;;  %v17669_v44 = vpack.c.bf16 %v11811_v23, %v11808_v16 }
0x14ac   : > { %v11261_v63 = vsel %vm647_vm0, %v11260_v54, 0.0  ;;  %v17641_v54 = vsub.f32 %v13533_v14, %v11811_v23  ;;  %15927 = vmatpush3.bf16.msra.mxu1 %v17669_v44  ;;  %v11896_v23 = vsub.f32 %v17627_v49, %v11895_v48 }
0x14ad   : > { %11262 = vadd.xlane.f32.xlu0 %v11261_v63  ;;  %v13534_v63 = vld [vmem:[%s17983_s14 + $0xa0] sm:$0xff]  ;;  %15928 = vmatprep.subr.bf16.mxu1 %v16418_v12 }
0x14ae   : > { %v11814_v18 = vand.u32 4294901760, %v13534_v63 }
0x14b0   : > { %v17654_v11 = vsub.f32 %v13534_v63, %v11814_v18  ;;  %v17686_v0 = vpack.c.bf16 %v11817_v26, %v11814_v18  ;;  %v11903_v63 = vsub.f32 %v17629_v13, %v11902_v28 }
0x14b2   : > { %v15977_v61 = vpack.c.bf16 %v17656_v43, %v17654_v11  ;;  %15930 = vmatpush3.bf16.msra.mxu1 %v17686_v0  ;;  %v11904_v18 = vand.u32 4294901760, %v11903_v63  ;;  %v11923_v26 = vand.u32 4294901760, %v17654_v11 }
0x14b3   : > { %15931 = vmatprep.subr.bf16.mxu1 %v16418_v12 }
0x153a   : > { %v11263_v9 = vpop.xlane.xlu0 %11262 }
0x153b   : > { %v11264_v10 = vmul.f32 0.03125, %v11263_v9  ;;  %v13543_v9 = vld [vmem:[%s17983_s14 + $0xe8] sm:$0xff] }
0x153d   : > { %v11265_v2 = vadd.f32 1e-05, %v11264_v10 }
0x153f   : > { %16401 = vrsqrt.f32 %v11265_v2 }
0x1549   : > { %v16402_v52 = vpop.eup %16401 }
0x154a   : > { %v11267_v57 = vmul.f32 %v16402_v52, %v11259_v55  ;;  %v17639_v55 = vsub.f32 %v13532_v35, %v11808_v16  ;;  %v11841_v52 = vand.u32 4294901760, %v13543_v9  ;;  %v17754_v35 = vpack.c.bf16 %v11902_v28, %v11895_v48 }
0x154b   : > { %v11916_v16 = vand.u32 4294901760, %v17641_v54 }
0x154c   : > { %v11272_v19 = vmul.f32 %v13522_v53, %v11267_v57  ;;  %v15974_v29 = vpack.c.bf16 %v17641_v54, %v17639_v55  ;;  %v17720_v53 = vpack.c.bf16 %v11829_v31, %v11826_v30  ;;  %v11924_v30 = vsub.f32 %v17654_v11, %v11923_v26 }
0x154e   : > { %v11277_v20 = vadd.f32 %v13523_v58, %v11272_v19  ;;  %v17724_v58 = vsub.f32 %v13543_v9, %v11841_v52  ;;  %v13544_v19 = vld [vmem:[%s17983_s14 + $0xf0] sm:$0xff] }
0x1550   : > { %v11289_v59 = vsel %vm647_vm0, %v11277_v20, 0  ;;  %v13545_v20 = vld [vmem:[%s17983_s14 + $0xf8] sm:$0xff] }
0x1551   : > { %v11360_v42 = vand.u32 4294901760, %v11289_v59 }
0x1553   : > { %v11361_v62 = vsub.f32 %v11289_v59, %v11360_v42 }
0x1555   : > { %v11362_v4 = vand.u32 4294901760, %v11361_v62 }
0x1557   : > { %v11363_v5 = vsub.f32 %v11361_v62, %v11362_v4 }
0x1559   : > { %v11364_v6 = vand.u32 4294901760, %v11363_v5 }
0x155b   : > { %15199 = vmatmul.mubr.f32.vlgmr.msra.gmra.mrb[42].mxu0 %v11364_v6 }
0x155c   : > { %15894 = vmatpush3.bf16.msra.mxu0 %v15893_v32  ;;  %15209 = vmatprep.mubr.msk.f32.mxu0 %vm16419_vm1, %v16420_v17  ;;  %v17690_v32 = vsub.f32 %v13539_v56, %v11829_v31 }
0x155d   : > { %15895 = vmatprep.subr.bf16.mxu0 %v16418_v12 }
0x155e   : > { %v15983_v60 = vpack.c.bf16 %v17690_v32, %v17688_v1 }
0x1560   : > { %15897 = vmatpush3.bf16.msra.mxu0 %v15896_v40  ;;  %v11835_v40 = vand.u32 4294901760, %v13541_v37 }
0x1561   : > { %15898 = vmatprep.subr.bf16.mxu0 %v16418_v12 }
0x1563   : > { %15210 = vmatmul.mubr.f32.vlgmr.msra.gmra.mrb[42].mxu0 %v11360_v42 }
0x1564   : > { %15900 = vmatpush3.bf16.msra.mxu0 %v15899_v45  ;;  %15220 = vmatprep.mubr.msk.f32.mxu0 %vm16419_vm1, %v16420_v17 }
0x1565   : > { %15901 = vmatprep.subr.bf16.mxu0 %v16418_v12 }
0x1568   : > { %15903 = vmatpush3.bf16.msra.mxu0 %v15902_v46  ;;  %v17705_v46 = vsub.f32 %v13540_v33, %v11832_v39 }
0x1569   : > { %15904 = vmatprep.subr.bf16.mxu0 %v16418_v12 }
0x156b   : > { %15221 = vmatmul.mubr.f32.vlgmr.msra.gmra.mrb[42].mxu0 %v11361_v62  ;;  %v11847_v62 = vand.u32 4294901760, %v13545_v20 }
0x156c   : > { %15906 = vmatpush3.bf16.msra.mxu0 %v17580_v38  ;;  %15231 = vmatprep.mubr.msk.f32.mxu0 %vm16419_vm1, %v16420_v17 }
0x156d   : > { %15907 = vmatprep.subr.bf16.mxu0 %v16418_v12  ;;  %v17741_v6 = vsub.f32 %v13545_v20, %v11847_v62 }
0x1570   : > { %15909 = vmatpush3.bf16.msra.mxu0 %v17583_v21 }
0x1571   : > { %15910 = vmatprep.subr.bf16.mxu0 %v16418_v12 }
0x1573   : > { %15232 = vmatmul.mubr.f32.vlgmr.msra.gmra.mrb[42].mxu0 %v11362_v4  ;;  %v17737_v4 = vpack.c.bf16 %v11835_v40, %v11832_v39 }
0x1574   : > { %15912 = vmatpush3.bf16.msra.mxu0 %v15911_v47  ;;  %15242 = vmatprep.mubr.msk.f32.mxu0 %vm16419_vm1, %v16420_v17  ;;  %v17707_v47 = vsub.f32 %v13541_v37, %v11835_v40  ;;  %v11951_v37 = vand.u32 4294901760, %v17688_v1 }
0x1575   : > { %15913 = vmatprep.subr.bf16.mxu0 %v16418_v12 }
0x1576   : > { %v15986_v10 = vpack.c.bf16 %v17707_v47, %v17705_v46 }
0x1578   : > { %15915 = vmatpush3.bf16.msra.mxu0 %v15914_v50  ;;  %v13542_v50 = vld [vmem:[%s17983_s14 + $0xe0] sm:$0xff] }
0x1579   : > { %15916 = vmatprep.subr.bf16.mxu0 %v16418_v12  ;;  %v11838_v2 = vand.u32 4294901760, %v13542_v50 }
0x157b   : > { %15243 = vmatmul.mubr.f32.vlgmr.msra.gmra.mrb[42].mxu0 %v11360_v42  ;;  %v17722_v57 = vsub.f32 %v13542_v50, %v11838_v2  ;;  %v17748_v27 = vpack.c.bf16 %v11841_v52, %v11838_v2  ;;  %v11972_v52 = vand.u32 4294901760, %v17707_v47 }
0x157c   : > { %15918 = vmatpush3.bf16.msra.mxu0 %v17580_v38  ;;  %15253 = vmatprep.mubr.msk.f32.mxu0 %vm16419_vm1, %v16420_v17  ;;  %v13537_v38 = vld [vmem:[%s17983_s14 + $0xb8] sm:$0xff] }
0x157d   : > { %15919 = vmatprep.subr.bf16.mxu0 %v16418_v12  ;;  %v11823_v3 = vand.u32 4294901760, %v13537_v38  ;;  %v15989_v59 = vpack.c.bf16 %v17724_v58, %v17722_v57  ;;  %v11973_v48 = vsub.f32 %v17707_v47, %v11972_v52 }
0x157f   : > { %v17673_v22 = vsub.f32 %v13537_v38, %v11823_v3  ;;  %v17703_v45 = vpack.c.bf16 %v11823_v3, %v11820_v41 }
0x1580   : > { %15921 = vmatpush3.bf16.msra.mxu0 %v17583_v21  ;;  %v17671_v21 = vsub.f32 %v13536_v51, %v11820_v41  ;;  %v11930_v51 = vand.u32 4294901760, %v17656_v43 }
0x1581   : > { %15970 = vmatprep.subr.bf16.mxu0 %v16418_v12  ;;  %15933 = vmatpush3.bf16.msra.mxu1 %v17703_v45 }
0x1582   : > { %v15980_v25 = vpack.c.bf16 %v17673_v22, %v17671_v21  ;;  %15934 = vmatprep.subr.bf16.mxu1 %v16418_v12  ;;  %v17773_v49 = vpack.c.bf16 %v11930_v51, %v11923_v26  ;;  %v11937_v56 = vand.u32 4294901760, %v17671_v21  ;;  %v11931_v31 = vsub.f32 %v17656_v43, %v11930_v51 }
0x1583   : > { %15254 = vmatmul.mubr.f32.vlgmr.msra.gmra.mrb[42].mxu0 %v11360_v42  ;;  %v11844_v42 = vand.u32 4294901760, %v13544_v19  ;;  %v11965_v43 = vand.u32 4294901760, %v17705_v46 }
0x1584   : > { %15358 = vmatprep.mubr.msk.f32.mxu0 %vm16419_vm1, %v16420_v17  ;;  %15972 = vmatpush3.bf16.msra.mxu0 %v15971_v15  ;;  %v11909_v15 = vand.u32 4294901760, %v17639_v55  ;;  %v11938_v39 = vsub.f32 %v17671_v21, %v11937_v56 }
0x1585   : > { %15973 = vmatprep.subr.bf16.mxu0 %v16418_v12  ;;  %15936 = vmatpush3.bf16.msra.mxu1 %v17720_v53  ;;  %v17739_v5 = vsub.f32 %v13544_v19, %v11844_v42  ;;  %v17757_v14 = vpack.c.bf16 %v11847_v62, %v11844_v42  ;;  %v11952_v19 = vsub.f32 %v17688_v1, %v11951_v37  ;;  %v11979_v42 = vand.u32 4294901760, %v17722_v57 }
0x1586   : > { %15937 = vmatprep.subr.bf16.mxu1 %v16418_v12  ;;  %v17764_v8 = vpack.c.bf16 %v11916_v16, %v11909_v15  ;;  %v11910_v38 = vsub.f32 %v17639_v55, %v11909_v15  ;;  %v11925_v55 = vand.u32 4294901760, %v11924_v30  ;;  %v11986_v62 = vand.u32 4294901760, %v17724_v58 }
0x1587   : > { %v15992_v7 = vpack.c.bf16 %v17741_v6, %v17739_v5  ;;  %v11953_v21 = vand.u32 4294901760, %v11952_v19  ;;  %v11993_v1 = vand.u32 4294901760, %v17739_v5 }
0x1588   : > { %15975 = vmatpush3.bf16.msra.mxu0 %v15974_v29  ;;  %v11897_v29 = vand.u32 4294901760, %v11896_v23  ;;  %v11911_v13 = vand.u32 4294901760, %v11910_v38  ;;  %v16037_v15 = vpack.c.bf16 %v11986_v62, %v11979_v42  ;;  %v11974_v23 = vand.u32 4294901760, %v11973_v48 }
0x1589   : > { %15976 = vmatprep.subr.bf16.mxu0 %v16418_v12  ;;  %15939 = vmatpush3.bf16.msra.mxu1 %v17737_v4 }
0x158a   : > { %15940 = vmatprep.subr.bf16.mxu1 %v16418_v12  ;;  %v17771_v41 = vpack.c.bf16 %v11904_v18, %v11897_v29  ;;  %v11980_v29 = vsub.f32 %v17722_v57, %v11979_v42  ;;  %v11987_v18 = vsub.f32 %v17724_v58, %v11986_v62 }
0x158c   : > { %15978 = vmatpush3.bf16.msra.mxu0 %v15977_v61  ;;  %v11917_v61 = vsub.f32 %v17641_v54, %v11916_v16  ;;  %v11932_v54 = vand.u32 4294901760, %v11931_v31  ;;  %v11981_v51 = vand.u32 4294901760, %v11980_v29  ;;  %v11988_v38 = vand.u32 4294901760, %v11987_v18  ;;  %v13548_v18 = vld [vmem:[%s17986_s17] ss:$0 sm:$0xff] }
0x158d   : > { %15979 = vmatprep.subr.bf16.mxu0 %v16418_v12  ;;  %15942 = vmatpush3.bf16.msra.mxu1 %v17748_v27 }
0x158e   : > { %15943 = vmatprep.subr.bf16.mxu1 %v16418_v12  ;;  %v11918_v3 = vand.u32 4294901760, %v11917_v61  ;;  %v17787_v50 = vpack.c.bf16 %v11932_v54, %v11925_v55  ;;  %v15965_v61 = vpack.c.bf16 %v11988_v38, %v11981_v51 }
0x1590   : > { %15981 = vmatpush3.bf16.msra.mxu0 %v15980_v25  ;;  %v17775_v24 = vpack.c.bf16 %v11918_v3, %v11911_v13  ;;  %v11944_v25 = vand.u32 4294901760, %v17673_v22 }
0x1591   : > { %15982 = vmatprep.subr.bf16.mxu0 %v16418_v12  ;;  %15945 = vmatpush3.bf16.msra.mxu1 %v17757_v14 }
0x1592   : > { %15946 = vmatprep.subr.bf16.mxu1 %v16418_v12  ;;  %v17781_v33 = vpack.c.bf16 %v11944_v25, %v11937_v56  ;;  %v11945_v40 = vsub.f32 %v17673_v22, %v11944_v25  ;;  %v13528_v25 = vld [vmem:[%s17982_s13 + $0x1] ss:$0 sm:$0xff] }
0x1594   : > { %15984 = vmatpush3.bf16.msra.mxu0 %v15983_v60  ;;  %v11958_v60 = vand.u32 4294901760, %v17690_v32  ;;  %v11946_v11 = vand.u32 4294901760, %v11945_v40 }
0x1595   : > { %15985 = vmatprep.subr.bf16.mxu0 %v16418_v12 }
0x1596   : > { %v17789_v9 = vpack.c.bf16 %v11958_v60, %v11951_v37  ;;  %v11959_v20 = vsub.f32 %v17690_v32, %v11958_v60  ;;  %v12000_v32 = vand.u32 4294901760, %v17741_v6 }
0x1598   : > { %15987 = vmatpush3.bf16.msra.mxu0 %v15986_v10  ;;  %v11939_v10 = vand.u32 4294901760, %v11938_v39  ;;  %v11960_v22 = vand.u32 4294901760, %v11959_v20  ;;  %v16040_v26 = vpack.c.bf16 %v12000_v32, %v11993_v1  ;;  %v12001_v47 = vsub.f32 %v17741_v6, %v12000_v32  ;;  %v13547_v32 = vld [vmem:[%s17985_s16] ss:$0 sm:$0xff] }
0x1599   : > { %15988 = vmatprep.subr.bf16.mxu0 %v16418_v12 }
0x159a   : > { %v17791_v2 = vpack.c.bf16 %v11946_v11, %v11939_v10  ;;  %v15959_v28 = vpack.c.bf16 %v11960_v22, %v11953_v21  ;;  %v12002_v3 = vand.u32 4294901760, %v12001_v47 }
0x159c   : > { %15990 = vmatpush3.bf16.msra.mxu0 %v15989_v59  ;;  %v17797_v59 = vpack.c.bf16 %v11972_v52, %v11965_v43 }
0x159d   : > { %15991 = vmatprep.subr.bf16.mxu0 %v16418_v12 }
0x15a0   : > { %15993 = vmatpush3.bf16.msra.mxu0 %v15992_v7  ;;  %v11966_v7 = vsub.f32 %v17705_v46, %v11965_v43  ;;  %v11994_v46 = vsub.f32 %v17739_v5, %v11993_v1  ;;  %v13546_v43 = vld [vmem:[%s17984_s15 + $0x1] ss:$0 sm:$0xff] }
0x15a1   : > { %16018 = vmatprep.subr.bf16.mxu0 %v16418_v12 }
0x15a2   : > { %v11967_v16 = vand.u32 4294901760, %v11966_v7  ;;  %v11995_v13 = vand.u32 4294901760, %v11994_v46  ;;  %v12478_v7 = vld [vmem:[%s637_s29] sm:$0xff] }
0x15a4   : > { %v15962_v63 = vpack.c.bf16 %v11974_v23, %v11967_v16  ;;  %v15968_v56 = vpack.c.bf16 %v12002_v3, %v11995_v13 }
0x1656   : > { %v11772_v30 = vpop.f32.mrb[42].mxu0 }
0x1657   : > { %v16114_v31 = vadd.f32 %v13528_v25, %v11772_v30  ;;  %v15255_v57 = vpop.f32.mrb[43].mxu0  ;;  %v12928_v25 = vld [vmem:[%s17987_s18] sm:$0xff]  ;;  %v12929_v30 = vld [vmem:[%s17987_s18 + $0x8] sm:$0xff] }
0x1658   : > { %v12946_v57 = vand.u32 4294901760, %v12929_v30 }
0x1659   : > { %v13529_v55 = vmul.f32 -1.702, %v16114_v31 }
0x165b   : > { %v11778_v58 = vmul.f32 1.442695, %v13529_v55 }
0x165d   : > { %16403 = vpow2.f32 %v11778_v58 }
0x1667   : > { %v16404_v54 = vpop.eup %16403 }
0x1668   : > { %v11780_v37 = vadd.f32 1.0, %v16404_v54  ;;  %v13030_v54 = vsub.f32 %v12929_v30, %v12946_v57 }
0x166a   : > { %16405 = vrcp.f32 %v11780_v37  ;;  %v12930_v37 = vld [vmem:[%s17987_s18 + $0x10] sm:$0xff] }
0x1674   : > { %v16406_v5 = vpop.eup %16405 }
0x1675   : > { %v11783_v60 = vmul.f32 %v16406_v5, %v16114_v31  ;;  %v12943_v31 = vand.u32 4294901760, %v12928_v25  ;;  %v12931_v5 = vld [vmem:[%s17987_s18 + $0x18] sm:$0xff] }
0x1677   : > { %v17812_v6 = vand.u32 4294901760, %v11783_v60  ;;  %v17926_v55 = vpack.c.bf16 %v12946_v57, %v12943_v31  ;;  %v13023_v58 = vsub.f32 %v12928_v25, %v12943_v31 }
0x1679   : > { %v11883_v39 = vsub.f32 %v11783_v60, %v17812_v6  ;;  %v12949_v60 = vand.u32 4294901760, %v12930_v37 }
0x167b   : > { %v11884_v40 = vand.u32 4294901760, %v11883_v39  ;;  %15359 = vmatmul.mubr.f32.vlgmr.msra.gmra.mrb[44].mxu0 %v11883_v39 }
0x167c   : > { %16020 = vmatpush3.bf16.msra.mxu0 %v17754_v35  ;;  %15428 = vmatprep.mubr.msk.f32.mxu0 %vm16419_vm1, %v16420_v17 }
0x167d   : > { %16021 = vmatprep.subr.bf16.mxu0 %v16418_v12  ;;  %v11885_v10 = vsub.f32 %v11883_v39, %v11884_v40  ;;  %v13024_v39 = vand.u32 4294901760, %v13023_v58 }
0x167f   : > { %v11886_v11 = vand.u32 4294901760, %v11885_v10 }
0x1680   : > { %16023 = vmatpush3.bf16.msra.mxu0 %v17764_v8 }
0x1681   : > { %15289 = vmatmul.mubr.f32.vlgmr.msra.gmra.mrb[34].mxu1 %v11886_v11  ;;  %16024 = vmatprep.subr.bf16.mxu0 %v16418_v12  ;;  %v13037_v11 = vsub.f32 %v12930_v37, %v12949_v60 }
0x1682   : > { %15948 = vmatpush3.bf16.msra.mxu1 %v17771_v41  ;;  %15323 = vmatprep.mubr.msk.f32.mxu1 %vm16419_vm1, %v16420_v17 }
0x1683   : > { %15949 = vmatprep.subr.bf16.mxu1 %v16418_v12 }
0x1684   : > { %16026 = vmatpush3.bf16.msra.mxu0 %v17773_v49 }
0x1685   : > { %16027 = vmatprep.subr.bf16.mxu0 %v16418_v12 }
0x1686   : > { %15951 = vmatpush3.bf16.msra.mxu1 %v17775_v24 }
0x1687   : > { %15952 = vmatprep.subr.bf16.mxu1 %v16418_v12 }
0x1688   : > { %16029 = vmatpush3.bf16.msra.mxu0 %v17781_v33 }
0x1689   : > { %16030 = vmatprep.subr.bf16.mxu0 %v16418_v12 }
0x168a   : > { %15954 = vmatpush3.bf16.msra.mxu1 %v17787_v50 }
0x168b   : > { %15955 = vmatprep.subr.bf16.mxu1 %v16418_v12 }
0x168c   : > { %16032 = vmatpush3.bf16.msra.mxu0 %v17789_v9 }
0x168d   : > { %16033 = vmatprep.subr.bf16.mxu0 %v16418_v12 }
0x168e   : > { %15957 = vmatpush3.bf16.msra.mxu1 %v17791_v2 }
0x168f   : > { %15958 = vmatprep.subr.bf16.mxu1 %v16418_v12 }
0x1690   : > { %16035 = vmatpush3.bf16.msra.mxu0 %v17797_v59 }
0x1691   : > { %16036 = vmatprep.subr.bf16.mxu0 %v16418_v12 }
0x1692   : > { %15960 = vmatpush3.bf16.msra.mxu1 %v15959_v28 }
0x1693   : > { %15961 = vmatprep.subr.bf16.mxu1 %v16418_v12 }
0x1694   : > { %16038 = vmatpush3.bf16.msra.mxu0 %v16037_v15 }
0x1695   : > { %16039 = vmatprep.subr.bf16.mxu0 %v16418_v12 }
0x1696   : > { %15963 = vmatpush3.bf16.msra.mxu1 %v15962_v63 }
0x1697   : > { %15964 = vmatprep.subr.bf16.mxu1 %v16418_v12 }
0x1698   : > { %16041 = vmatpush3.bf16.msra.mxu0 %v16040_v26 }
0x1699   : > { %15466 = vmatprep.subr.mxu0 %v16420_v17 }
0x169a   : > { %15966 = vmatpush3.bf16.msra.mxu1 %v15965_v61 }
0x169b   : > { %15429 = vmatmul.mubr.f32.vlgmr.msra.gmra.mrb[46].mxu0 %v17812_v6  ;;  %15967 = vmatprep.subr.bf16.mxu1 %v16418_v12 }
0x169c   : > { %15468 = vmatprep.mubr.msk.f32.mxu0 %vm16419_vm1, %v16420_v17 }
0x169e   : > { %15969 = vmatpush3.bf16.msra.mxu1 %v15968_v56 }
0x169f   : > { %15994 = vmatprep.subr.bf16.mxu1 %v16418_v12 }
0x16a1   : > { %15324 = vmatmul.mubr.f32.vlgmr.msra.gmra.mrb[36].mxu1 %v17812_v6 }
0x16a2   : > { %15996 = vmatpush3.bf16.msra.mxu1 %v17652_v34  ;;  %15393 = vmatprep.mubr.msk.f32.mxu1 %vm16419_vm1, %v16420_v17 }
0x16a3   : > { %15997 = vmatprep.subr.bf16.mxu1 %v16418_v12 }
0x16a6   : > { %15999 = vmatpush3.bf16.msra.mxu1 %v17669_v44 }
0x16a7   : > { %16000 = vmatprep.subr.bf16.mxu1 %v16418_v12 }
0x16aa   : > { %16002 = vmatpush3.bf16.msra.mxu1 %v17686_v0 }
0x16ab   : > { %16003 = vmatprep.subr.bf16.mxu1 %v16418_v12 }
0x16ae   : > { %16005 = vmatpush3.bf16.msra.mxu1 %v17703_v45 }
0x16af   : > { %16006 = vmatprep.subr.bf16.mxu1 %v16418_v12 }
0x16b2   : > { %16008 = vmatpush3.bf16.msra.mxu1 %v17720_v53 }
0x16b3   : > { %16009 = vmatprep.subr.bf16.mxu1 %v16418_v12 }
0x16b6   : > { %16011 = vmatpush3.bf16.msra.mxu1 %v17737_v4 }
0x16b7   : > { %16012 = vmatprep.subr.bf16.mxu1 %v16418_v12 }
0x16ba   : > { %16014 = vmatpush3.bf16.msra.mxu1 %v17748_v27 }
0x16bb   : > { %16015 = vmatprep.subr.bf16.mxu1 %v16418_v12 }
0x16be   : > { %16017 = vmatpush3.bf16.msra.mxu1 %v17757_v14 }
0x16bf   : > { %16042 = vmatprep.subr.bf16.mxu1 %v16418_v12 }
0x16c1   : > { %15394 = vmatmul.mubr.f32.vlgmr.msra.gmra.mrb[38].mxu1 %v11884_v40  ;;  %v13031_v40 = vand.u32 4294901760, %v13030_v54 }
0x16c2   : > { %16044 = vmatpush3.bf16.msra.mxu1 %v17652_v34  ;;  %15463 = vmatprep.mubr.msk.f32.mxu1 %vm16419_vm1, %v16420_v17 }
0x16c3   : > { %16045 = vmatprep.subr.bf16.mxu1 %v16418_v12 }
0x16c6   : > { %16047 = vmatpush3.bf16.msra.mxu1 %v17669_v44 }
0x16c7   : > { %16048 = vmatprep.subr.bf16.mxu1 %v16418_v12 }
0x16ca   : > { %16050 = vmatpush3.bf16.msra.mxu1 %v17686_v0 }
0x16cb   : > { %16051 = vmatprep.subr.bf16.mxu1 %v16418_v12 }
0x16ce   : > { %16053 = vmatpush3.bf16.msra.mxu1 %v17703_v45 }
0x16cf   : > { %16054 = vmatprep.subr.bf16.mxu1 %v16418_v12 }
0x16d2   : > { %16056 = vmatpush3.bf16.msra.mxu1 %v17720_v53 }
0x16d3   : > { %16057 = vmatprep.subr.bf16.mxu1 %v16418_v12 }
0x16d6   : > { %16059 = vmatpush3.bf16.msra.mxu1 %v17737_v4 }
0x16d7   : > { %16060 = vmatprep.subr.bf16.mxu1 %v16418_v12 }
0x16da   : > { %16062 = vmatpush3.bf16.msra.mxu1 %v17748_v27 }
0x16db   : > { %16063 = vmatprep.subr.bf16.mxu1 %v16418_v12 }
0x16de   : > { %16065 = vmatpush3.bf16.msra.mxu1 %v17757_v14 }
0x16df   : > { %16066 = vmatprep.subr.bf16.mxu1 %v16418_v12 }
0x16e1   : > { %15464 = vmatmul.mubr.f32.vlgmr.msra.gmra.mrb[40].mxu1 %v17812_v6  ;;  %v12952_v6 = vand.u32 4294901760, %v12931_v5 }
0x16e2   : > { %15504 = vmatprep.mubr.msk.f32.mxu1 %vm16419_vm1, %v16420_v17  ;;  %16068 = vmatpush3.bf16.msra.mxu1 %v17926_v55 }
0x16e3   : > { %16069 = vmatprep.subr.bf16.mxu1 %v16418_v12  ;;  %v16070_v10 = vpack.c.bf16 %v12952_v6, %v12949_v60 }
0x16e6   : > { %16071 = vmatpush3.bf16.msra.mxu1 %v16070_v10 }
0x16e7   : > { %16072 = vmatprep.subr.bf16.mxu1 %v16418_v12 }
0x174e   : > { %v12143_v34 = vpop.f32.mrb[44].mxu0 }
0x174f   : > { %v15360_v44 = vpop.f32.mrb[45].mxu0 }
0x1750   : > { %v13025_v44 = vsub.f32 %v13023_v58, %v13024_v39 }
0x1754   : > { %v11888_v0 = vpop.f32.mrb[34].mxu1 }
0x1755   : > { %v15290_v45 = vpop.f32.mrb[35].mxu1 }
0x1756   : > { %v13026_v45 = vand.u32 4294901760, %v13025_v44 }
0x176e   : > { %v12351_v53 = vpop.f32.mrb[46].mxu0 }
0x176f   : > { %v15430_v4 = vpop.f32.mrb[47].mxu0 }
0x1774   : > { %v12039_v35 = vpop.f32.mrb[36].mxu1 }
0x1775   : > { %v12040_v8 = vadd.f32 %v12039_v35, %v11888_v0  ;;  %v15325_v27 = vpop.f32.mrb[37].mxu1  ;;  %v13032_v0 = vsub.f32 %v13030_v54, %v13031_v40 }
0x1777   : > { %v12144_v41 = vadd.f32 %v12143_v34, %v12040_v8  ;;  %v13044_v34 = vsub.f32 %v12931_v5, %v12952_v6  ;;  %v13033_v35 = vand.u32 4294901760, %v13032_v0 }
0x1779   : > { %v13045_v4 = vand.u32 4294901760, %v13044_v34 }
0x177b   : > { %v13046_v27 = vsub.f32 %v13044_v34, %v13045_v4 }
0x1794   : > { %v12232_v49 = vpop.f32.mrb[38].mxu1 }
0x1795   : > { %v12233_v24 = vadd.f32 %v12232_v49, %v12144_v41  ;;  %v15395_v14 = vpop.f32.mrb[39].mxu1  ;;  %v16073_v41 = vpack.c.bf16 %v13033_v35, %v13026_v45 }
0x1797   : > { %v12352_v33 = vadd.f32 %v12351_v53, %v12233_v24  ;;  %v13038_v53 = vand.u32 4294901760, %v13037_v11  ;;  %v13047_v24 = vand.u32 4294901760, %v13046_v27 }
0x1799   : > { %v13039_v8 = vsub.f32 %v13037_v11, %v13038_v53 }
0x179b   : > { %v13040_v49 = vand.u32 4294901760, %v13039_v8 }
0x179d   : > { %v16076_v14 = vpack.c.bf16 %v13047_v24, %v13040_v49 }
0x17b4   : > { %v12438_v50 = vpop.f32.mrb[40].mxu1 }
0x17b5   : > { %v12439_v9 = vadd.f32 %v12438_v50, %v12352_v33  ;;  %v15465_v2 = vpop.f32.mrb[41].mxu1  ;;  %v16079_v33 = vpack.c.bf16 %v13030_v54, %v13023_v58  ;;  %v16082_v50 = vpack.c.bf16 %v13044_v34, %v13037_v11 }
0x17b6   : > { %v16094_v2 = vpack.c.bf16 %v13045_v4, %v13038_v53 }
0x17b7   : > { %v12442_v52 = vadd.f32 %v12439_v9, %v17562_v36  ;;  %v12480_v36 = vsel %vm1173_vm2, %v12478_v7, 0  ;;  %v16091_v9 = vpack.c.bf16 %v13031_v40, %v13024_v39 }
0x17b8   : > { %v12548_v16 = vand.u32 4294901760, %v12480_v36 }
0x17b9   : > { %v12448_v19 = vadd.f32 %v13546_v43, %v12442_v52 }
0x17ba   : > { %v12549_v23 = vsub.f32 %v12480_v36, %v12548_v16 }
0x17bb   : > { %v12451_v20 = vsel %vm647_vm0, %v12448_v19, 0.0 }
0x17bc   : > { %12452 = vadd.xlane.f32.xlu1 %v12451_v20  ;;  %v12550_v63 = vand.u32 4294901760, %v12549_v23 }
0x17be   : > { %v12551_v26 = vsub.f32 %v12549_v23, %v12550_v63 }
0x17c0   : > { %v12552_v46 = vand.u32 4294901760, %v12551_v26 }
0x1849   : > { %v12453_v59 = vpop.xlane.xlu1 %12452 }
0x184a   : > { %v12454_v21 = vmul.f32 0.03125, %v12453_v59 }
0x184c   : > { %v12455_v22 = vsub.f32 %v12448_v19, %v12454_v21 }
0x184e   : > { %v12456_v42 = vmul.f32 %v12455_v22, %v12455_v22 }
0x1850   : > { %v12457_v62 = vsel %vm647_vm0, %v12456_v42, 0.0 }
0x1851   : > { %12458 = vadd.xlane.f32.xlu1 %v12457_v62  ;;  %v13549_v62 = vld [vmem:[%s17988_s19] ss:$0 sm:$0xff] }
0x18de   : > { %v12459_v48 = vpop.xlane.xlu1 %12458 }
0x18df   : > { %v12460_v28 = vmul.f32 0.03125, %v12459_v48 }
0x18e1   : > { %v12461_v15 = vadd.f32 1e-05, %v12460_v28 }
0x18e3   : > { %16407 = vrsqrt.f32 %v12461_v15 }
0x18ed   : > { %v16408_v1 = vpop.eup %16407 }
0x18ee   : > { %v12463_v29 = vmul.f32 %v16408_v1, %v12455_v22 }
0x18f0   : > { %v12470_v51 = vmul.f32 %v13547_v32, %v12463_v29 }
0x18f2   : > { %v12477_v38 = vadd.f32 %v13548_v18, %v12470_v51 }
0x18f4   : > { %v12483_v47 = vand.u32 4294901760, %v12477_v38 }
0x18f6   : > { %15467 = vmatpush3.msra.mxu0 %v12483_v47  ;;  %v12560_v61 = vsub.f32 %v12477_v38, %v12483_v47 }
0x18f7   : > { %15469 = vmatmul.mubr.f32.vlgmr.msra.gmra.mrb[48].mxu0 %v12552_v46  ;;  %15471 = vmatprep.subr.mxu0 %v16420_v17 }
0x18f8   : > { %v12561_v13 = vand.u32 4294901760, %v12560_v61  ;;  %15473 = vmatprep.mubr.msk.f32.mxu0 %vm16419_vm1, %v16420_v17 }
0x18fa   : > { %v12562_v3 = vsub.f32 %v12560_v61, %v12561_v13 }
0x18fc   : > { %v12563_v56 = vand.u32 4294901760, %v12562_v3 }
0x18fe   : > { %15472 = vmatpush3.msra.mxu0 %v12563_v56 }
0x18ff   : > { %15474 = vmatmul.mubr.f32.vlgmr.msra.gmra.mrb[48].mxu0 %v12548_v16  ;;  %15476 = vmatprep.subr.mxu0 %v16420_v17 }
0x1900   : > { %15477 = vmatpush3.msra.mxu0 %v12560_v61  ;;  %15478 = vmatprep.mubr.msk.f32.mxu0 %vm16419_vm1, %v16420_v17 }
0x1901   : > { %15481 = vmatprep.subr.mxu0 %v16420_v17 }
0x1907   : > { %15479 = vmatmul.mubr.f32.vlgmr.msra.gmra.mrb[48].mxu0 %v12549_v23 }
0x1908   : > { %15482 = vmatpush3.msra.mxu0 %v12483_v47  ;;  %15483 = vmatprep.mubr.msk.f32.mxu0 %vm16419_vm1, %v16420_v17 }
0x1909   : > { %15486 = vmatprep.subr.mxu0 %v16420_v17 }
0x190f   : > { %15484 = vmatmul.mubr.f32.vlgmr.msra.gmra.mrb[48].mxu0 %v12550_v63 }
0x1910   : > { %15487 = vmatpush3.msra.mxu0 %v12561_v13  ;;  %15488 = vmatprep.mubr.msk.f32.mxu0 %vm16419_vm1, %v16420_v17 }
0x1911   : > { %15491 = vmatprep.subr.mxu0 %v16420_v17 }
0x1917   : > { %15489 = vmatmul.mubr.f32.vlgmr.msra.gmra.mrb[48].mxu0 %v12548_v16 }
0x1918   : > { %15492 = vmatpush3.msra.mxu0 %v12483_v47  ;;  %15493 = vmatprep.mubr.msk.f32.mxu0 %vm16419_vm1, %v16420_v17 }
0x191f   : > { %15494 = vmatmul.mubr.f32.vlgmr.msra.gmra.mrb[48].mxu0 %v12548_v16 }
0x19f2   : > { %v12924_v43 = vpop.f32.mrb[48].mxu0 }
0x19f3   : > { %v12940_v52 = vsel %vm647_vm0, %v12924_v43, 0  ;;  %v15495_v19 = vpop.f32.mrb[49].mxu0 }
0x19f4   : > { %v13011_v20 = vand.u32 4294901760, %v12940_v52 }
0x19f6   : > { %v13012_v59 = vsub.f32 %v12940_v52, %v13011_v20 }
0x19f8   : > { %v13013_v21 = vand.u32 4294901760, %v13012_v59 }
0x19fa   : > { %v13014_v22 = vsub.f32 %v13012_v59, %v13013_v21 }
0x19fc   : > { %v13015_v42 = vand.u32 4294901760, %v13014_v22 }
0x19fe   : > { %15505 = vmatmul.mubr.f32.vlgmr.msra.gmra.mrb[42].mxu1 %v13015_v42 }
0x19ff   : > { %16074 = vmatpush3.bf16.msra.mxu1 %v16073_v41  ;;  %15515 = vmatprep.mubr.msk.f32.mxu1 %vm16419_vm1, %v16420_v17 }
0x1a00   : > { %16075 = vmatprep.subr.bf16.mxu1 %v16418_v12 }
0x1a03   : > { %16077 = vmatpush3.bf16.msra.mxu1 %v16076_v14 }
0x1a04   : > { %16078 = vmatprep.subr.bf16.mxu1 %v16418_v12 }
0x1a06   : > { %15516 = vmatmul.mubr.f32.vlgmr.msra.gmra.mrb[42].mxu1 %v13011_v20 }
0x1a07   : > { %16080 = vmatpush3.bf16.msra.mxu1 %v16079_v33  ;;  %15526 = vmatprep.mubr.msk.f32.mxu1 %vm16419_vm1, %v16420_v17 }
0x1a08   : > { %16081 = vmatprep.subr.bf16.mxu1 %v16418_v12 }
0x1a0b   : > { %16083 = vmatpush3.bf16.msra.mxu1 %v16082_v50 }
0x1a0c   : > { %16084 = vmatprep.subr.bf16.mxu1 %v16418_v12 }
0x1a0e   : > { %15527 = vmatmul.mubr.f32.vlgmr.msra.gmra.mrb[42].mxu1 %v13012_v59 }
0x1a0f   : > { %16086 = vmatpush3.bf16.msra.mxu1 %v17926_v55  ;;  %15537 = vmatprep.mubr.msk.f32.mxu1 %vm16419_vm1, %v16420_v17 }
0x1a10   : > { %16087 = vmatprep.subr.bf16.mxu1 %v16418_v12 }
0x1a13   : > { %16089 = vmatpush3.bf16.msra.mxu1 %v16070_v10 }
0x1a14   : > { %16090 = vmatprep.subr.bf16.mxu1 %v16418_v12 }
0x1a16   : > { %15538 = vmatmul.mubr.f32.vlgmr.msra.gmra.mrb[42].mxu1 %v13013_v21 }
0x1a17   : > { %16092 = vmatpush3.bf16.msra.mxu1 %v16091_v9  ;;  %15548 = vmatprep.mubr.msk.f32.mxu1 %vm16419_vm1, %v16420_v17 }
0x1a18   : > { %16093 = vmatprep.subr.bf16.mxu1 %v16418_v12 }
0x1a1b   : > { %16095 = vmatpush3.bf16.msra.mxu1 %v16094_v2 }
0x1a1c   : > { %16096 = vmatprep.subr.bf16.mxu1 %v16418_v12 }
0x1a1e   : > { %15549 = vmatmul.mubr.f32.vlgmr.msra.gmra.mrb[42].mxu1 %v13011_v20 }
0x1a1f   : > { %16098 = vmatpush3.bf16.msra.mxu1 %v17926_v55  ;;  %15559 = vmatprep.mubr.msk.f32.mxu1 %vm16419_vm1, %v16420_v17 }
0x1a20   : > { %16099 = vmatprep.subr.bf16.mxu1 %v16418_v12 }
0x1a23   : > { %16101 = vmatpush3.bf16.msra.mxu1 %v16070_v10 }
0x1a26   : > { %15560 = vmatmul.mubr.f32.vlgmr.msra.gmra.mrb[42].mxu1 %v13011_v20 }
0x1af9   : > { %v13423_v7 = vpop.f32.mrb[42].mxu1 }
0x1afa   : > { %v16115_v48 = vadd.f32 %v13549_v62, %v13423_v7  ;;  %v15561_v28 = vpop.f32.mrb[43].mxu1 }
0x1afc   : > { %13427 = vst [vmem:[%s641_s24] sm:$0xff] %v16115_v48 }
0x1afd PF: > { %s30_s1 = sadd.s32 1, %s16416_s1  }
0x1afe   : > { %p27_p4 = scmp.ge.s32.totalorder %s30_s1, 4  }
0x1b00   :  { %29 = sbr.rel (!%p27_p4) target bundleno = 6 (0x6), region = 137 }

</bundles_post_ra>
